<compile_context>
chip_gen: v6e
topology: v6e:2x2x1
jax: 0.10.0
libtpu: 0.0.40
codegen_flags: <defaults>
</compile_context>

<pallas_src>
import numpy as np
import jax
import jax.numpy as jnp
from jax import lax
from jax.experimental import pallas as pl
from jax.experimental.pallas import tpu as pltpu

OUT_RES = 4


def _bilinear_1d_matrix(in_size, out_size):
    """1-D bilinear resize weights, matching align_corners=False, antialias=False."""
    scale = in_size / out_size
    m = np.zeros((out_size, in_size), dtype=np.float32)
    for i in range(out_size):
        src = max((i + 0.5) * scale - 0.5, 0.0)
        i0 = min(int(np.floor(src)), in_size - 1)
        i1 = min(i0 + 1, in_size - 1)
        w1 = src - i0
        m[i, i0] += 1.0 - w1
        m[i, i1] += w1
    return m


def _resize_matrix(in_h, in_w, out_res):
    rh = _bilinear_1d_matrix(in_h, out_res)          # (out_res, in_h)
    rw = _bilinear_1d_matrix(in_w, out_res)          # (out_res, in_w)
    return np.kron(rh, rw)                           # (out_res^2, in_h*in_w)


def _choose_batch_block(n, max_tb=128):
    """Batch elements folded per grid step (TB).

    * multiple of 8 (sublane tiling) unless the whole batch is smaller than 8,
    * capped at `max_tb` so the double-buffered bf16 inputs stay ~15 MB of VMEM,
    * prefers >= 4 grid steps (so auto-pipelining can hide the DMAs) with an even
      step count (v7x load-balances the "parallel" axis over two TensorCores).
    """
    if n <= 8:
        return n
    top = min(max_tb, (n // 8) * 8)
    for tb in range(top, 7, -8):                    # biggest TB meeting both goals
        steps = -(-n // tb)
        if steps >= 4 and steps % 2 == 0:
            return tb
    for tb in range(top, 7, -8):                    # fall back: at least 2 steps
        if -(-n // tb) >= 2:
            return tb
    return top


def _add_model_kernel(x_low, x_mid, x_high, x_highest,
                      m_low, m_mid, m_high, m_highest, out_ref):
    """One batch block. Shapes:
         x_*    : (TB, C_l*HW_l)        bf16 activations (flattened NCHW, lane-dense)
         m_*    : (C_l*HW_l, out_dim*16) bf16 folded operators (conv+resize+/4)
         out_ref: (TB, out_dim*16)       f32
    """
    acc = jnp.dot(x_low[...], m_low[...], preferred_element_type=jnp.float32)
    acc = acc + jnp.dot(x_mid[...], m_mid[...], preferred_element_type=jnp.float32)
    acc = acc + jnp.dot(x_high[...], m_high[...], preferred_element_type=jnp.float32)
    acc = acc + jnp.dot(x_highest[...], m_highest[...],
                        preferred_element_type=jnp.float32)
    out_ref[...] = acc


def add_model_forward(out_list_nchw, weights_oi, out_res=OUT_RES,
                      compute_dtype=jnp.bfloat16):
    """out_list_nchw = [low, mid, high, highest] in NCHW;
       weights_oi[i] has shape (out_dim, in_dims[i]) (PyTorch 1x1-conv weight, squeezed)."""
    n = out_list_nchw[0].shape[0]
    out_dim = weights_oi[0].shape[0]
    o2 = out_res * out_res
    assert out_list_nchw[0].shape[2] == out_res and out_list_nchw[0].shape[3] == out_res, \
        "low-res level must already be out_res x out_res"

    # Activations: contiguous NCHW -> (N, C*H*W) reshape (free), cast to bf16.
    xs_flat, ks = [], []
    for x in out_list_nchw:
        nb, c, h, w = x.shape
        xs_flat.append(jnp.asarray(x, compute_dtype).reshape(nb, c * h * w))
        ks.append(c * h * w)

    # Folded per-level operators: (0.25 * kron(W_l, R_l))^T : (C_l*HW_l, out_dim*o2).
    # conv (channels), bilinear resize (spatial) and the /4 average all commute.
    m_mats = []
    for idx, (x, w) in enumerate(zip(out_list_nchw, weights_oi)):
        _, c, h, ww = x.shape
        r = (np.eye(o2, dtype=np.float32) if idx == 0
             else _resize_matrix(h, ww, out_res))                 # (o2, HW)
        m = 0.25 * np.kron(np.asarray(w, np.float32), r)          # (out_dim*o2, C*HW)
        m_mats.append(jnp.asarray(m.T, compute_dtype))            # (C*HW, out_dim*o2)

    tb = _choose_batch_block(n)
    grid = (pl.cdiv(n, tb),)

    def x_spec(k):
        return pl.BlockSpec((tb, k), lambda b: (b, 0))

    def w_spec(k):
        return pl.BlockSpec((k, out_dim * o2), lambda b: (0, 0))   # fetched once

    out_flat = pl.pallas_call(
        _add_model_kernel,
        out_shape=jax.ShapeDtypeStruct((n, out_dim * o2), jnp.float32),
        grid=grid,
        in_specs=[x_spec(ks[0]), x_spec(ks[1]), x_spec(ks[2]), x_spec(ks[3]),
                  w_spec(ks[0]), w_spec(ks[1]), w_spec(ks[2]), w_spec(ks[3])],
        out_specs=pl.BlockSpec((tb, out_dim * o2), lambda b: (b, 0)),
        compiler_params=pltpu.CompilerParams(
            dimension_semantics=("parallel",),        # batch axis -> both v7x TCs
            vmem_limit_bytes=40 * 1024 * 1024),       # > v5e's 16 MiB scoped default
    )(*xs_flat, *m_mats)

    # (N, out_dim*16) -> (N, out_dim, 4, 4): pure reshape, no transpose.
    return out_flat.reshape(n, out_dim, out_res, out_res)


def reference_forward(out_list_nchw, weights_oi, out_res=OUT_RES):
    """Pure-JAX f32 reference with the original op order: conv -> resize -> average."""
    outs = []
    for idx, (x, w) in enumerate(zip(out_list_nchw, weights_oi)):
        nb, c, h, ww = x.shape
        y = jnp.einsum('nchw,dc->ndhw', x, jnp.asarray(w, jnp.float32),
                       precision=lax.Precision.HIGHEST)
        if idx > 0:
            r = jnp.asarray(_resize_matrix(h, ww, out_res))   # (out_res^2, h*w)
            yf = y.reshape(nb, -1, h * ww)
            y = jnp.einsum('os,nds->ndo', r, yf,
                           precision=lax.Precision.HIGHEST
                           ).reshape(nb, -1, out_res, out_res)
        outs.append(y)
    return (outs[0] + outs[1] + outs[2] + outs[3]) / 4.0


if __name__ == "__main__":
    key = jax.random.PRNGKey(0)
    in_dims = (32, 24, 16, 8)           # [low, mid, high, highest] input channels
    out_dim = 8
    batch = 64                          # -> TB=16, grid=(4,): 4 even, pipelined steps
    spatial = (4, 8, 16, 32)            # low is already at out_res = 4

    keys = jax.random.split(key, 8)
    xs = [jax.random.normal(keys[i], (batch, in_dims[i], spatial[i], spatial[i]),
                            jnp.float32) for i in range(4)]
    ws = [0.1 * jax.random.normal(keys[4 + i], (out_dim, in_dims[i]), jnp.float32)
          for i in range(4)]            # synthetic (C_out, C_in) 1x1-conv weights

    out = add_model_forward(xs, ws)
    out = jax.block_until_ready(out)

    ref = reference_forward(xs, ws)
    assert out.shape == (batch, out_dim, OUT_RES, OUT_RES), out.shape
    # bf16 activations/operators vs f32 reference: ~0.5% relative error budget.
    assert np.allclose(np.asarray(out), np.asarray(ref), atol=2e-2, rtol=2e-2)
    print("KERNEL_OK")
</pallas_src>

<mosaic_0001>
module attributes {stable_mosaic.version = 11 : i64} {
  func.func @_add_model_kernel(%arg0: i32, %arg1: memref<16x512xbf16, #tpu.memory_space<vmem>>, %arg2: memref<16x1536xbf16, #tpu.memory_space<vmem>>, %arg3: memref<16x4096xbf16, #tpu.memory_space<vmem>>, %arg4: memref<16x8192xbf16, #tpu.memory_space<vmem>>, %arg5: memref<512x128xbf16, #tpu.memory_space<vmem>>, %arg6: memref<1536x128xbf16, #tpu.memory_space<vmem>>, %arg7: memref<4096x128xbf16, #tpu.memory_space<vmem>>, %arg8: memref<8192x128xbf16, #tpu.memory_space<vmem>>, %arg9: memref<16x128xf32, #tpu.memory_space<vmem>>) attributes {dimension_semantics = [#tpu.dimension_semantics<parallel>], iteration_bounds = array<i64: 4>, scalar_prefetch = 0 : i64, scratch_operands = 0 : i64, tpu.core_type = #tpu.core_type<tc>, window_params = [{transform_indices = @transform_0, window_bounds = array<i64: 16, 512>}, {transform_indices = @transform_1, window_bounds = array<i64: 16, 1536>}, {transform_indices = @transform_2, window_bounds = array<i64: 16, 4096>}, {transform_indices = @transform_3, window_bounds = array<i64: 16, 8192>}, {pipeline_mode = #tpu.pipeline_mode<synchronous>, transform_indices = @transform_4, window_bounds = array<i64: 512, 128>}, {pipeline_mode = #tpu.pipeline_mode<synchronous>, transform_indices = @transform_5, window_bounds = array<i64: 1536, 128>}, {pipeline_mode = #tpu.pipeline_mode<synchronous>, transform_indices = @transform_6, window_bounds = array<i64: 4096, 128>}, {pipeline_mode = #tpu.pipeline_mode<synchronous>, transform_indices = @transform_7, window_bounds = array<i64: 8192, 128>}, {transform_indices = @transform_8, window_bounds = array<i64: 16, 128>}]} {
    %c0 = arith.constant 0 : index
    %c0_0 = arith.constant 0 : index
    %0 = vector.load %arg1[%c0, %c0_0] : memref<16x512xbf16, #tpu.memory_space<vmem>>, vector<16x512xbf16>
    %c0_1 = arith.constant 0 : index
    %c0_2 = arith.constant 0 : index
    %1 = vector.load %arg5[%c0_1, %c0_2] : memref<512x128xbf16, #tpu.memory_space<vmem>>, vector<512x128xbf16>
    %cst = arith.constant dense<0.000000e+00> : vector<16x128xf32>
    %2 = tpu.matmul %0, %1, %cst {dimension_numbers = #tpu.dot_dimension_numbers<[1], [0], [0], [1], [0, 0, 1, 1], [], []>} : vector<16x512xbf16>, vector<512x128xbf16>, vector<16x128xf32> -> vector<16x128xf32>
    %c0_3 = arith.constant 0 : index
    %c0_4 = arith.constant 0 : index
    %3 = vector.load %arg2[%c0_3, %c0_4] : memref<16x1536xbf16, #tpu.memory_space<vmem>>, vector<16x1536xbf16>
    %c0_5 = arith.constant 0 : index
    %c0_6 = arith.constant 0 : index
    %4 = vector.load %arg6[%c0_5, %c0_6] : memref<1536x128xbf16, #tpu.memory_space<vmem>>, vector<1536x128xbf16>
    %cst_7 = arith.constant dense<0.000000e+00> : vector<16x128xf32>
    %5 = tpu.matmul %3, %4, %cst_7 {dimension_numbers = #tpu.dot_dimension_numbers<[1], [0], [0], [1], [0, 0, 1, 1], [], []>} : vector<16x1536xbf16>, vector<1536x128xbf16>, vector<16x128xf32> -> vector<16x128xf32>
    %6 = arith.addf %2, %5 : vector<16x128xf32>
    %c0_8 = arith.constant 0 : index
    %c0_9 = arith.constant 0 : index
    %7 = vector.load %arg3[%c0_8, %c0_9] : memref<16x4096xbf16, #tpu.memory_space<vmem>>, vector<16x4096xbf16>
    %c0_10 = arith.constant 0 : index
    %c0_11 = arith.constant 0 : index
    %8 = vector.load %arg7[%c0_10, %c0_11] : memref<4096x128xbf16, #tpu.memory_space<vmem>>, vector<4096x128xbf16>
    %cst_12 = arith.constant dense<0.000000e+00> : vector<16x128xf32>
    %9 = tpu.matmul %7, %8, %cst_12 {dimension_numbers = #tpu.dot_dimension_numbers<[1], [0], [0], [1], [0, 0, 1, 1], [], []>} : vector<16x4096xbf16>, vector<4096x128xbf16>, vector<16x128xf32> -> vector<16x128xf32>
    %10 = arith.addf %6, %9 : vector<16x128xf32>
    %c0_13 = arith.constant 0 : index
    %c0_14 = arith.constant 0 : index
    %11 = vector.load %arg4[%c0_13, %c0_14] : memref<16x8192xbf16, #tpu.memory_space<vmem>>, vector<16x8192xbf16>
    %c0_15 = arith.constant 0 : index
    %c0_16 = arith.constant 0 : index
    %12 = vector.load %arg8[%c0_15, %c0_16] : memref<8192x128xbf16, #tpu.memory_space<vmem>>, vector<8192x128xbf16>
    %cst_17 = arith.constant dense<0.000000e+00> : vector<16x128xf32>
    %13 = tpu.matmul %11, %12, %cst_17 {dimension_numbers = #tpu.dot_dimension_numbers<[1], [0], [0], [1], [0, 0, 1, 1], [], []>} : vector<16x8192xbf16>, vector<8192x128xbf16>, vector<16x128xf32> -> vector<16x128xf32>
    %14 = arith.addf %10, %13 : vector<16x128xf32>
    %c0_18 = arith.constant 0 : index
    %c0_19 = arith.constant 0 : index
    %15 = vector.load %arg9[%c0_18, %c0_19] : memref<16x128xf32, #tpu.memory_space<vmem>>, vector<16x128xf32>
    tpu.vector_store %arg9[%c0_18, %c0_19], %14 {strides = array<i32>} : memref<16x128xf32, #tpu.memory_space<vmem>>, vector<16x128xf32>,
    return
  }
  func.func @transform_0(%arg0: i32) -> (i32, i32) {
    %c0_i32 = arith.constant 0 : i32
    %c0_i32_0 = arith.constant 0 : i32
    return %arg0, %c0_i32 : i32, i32
  }
  func.func @transform_1(%arg0: i32) -> (i32, i32) {
    %c0_i32 = arith.constant 0 : i32
    %c0_i32_0 = arith.constant 0 : i32
    return %arg0, %c0_i32 : i32, i32
  }
  func.func @transform_2(%arg0: i32) -> (i32, i32) {
    %c0_i32 = arith.constant 0 : i32
    %c0_i32_0 = arith.constant 0 : i32
    return %arg0, %c0_i32 : i32, i32
  }
  func.func @transform_3(%arg0: i32) -> (i32, i32) {
    %c0_i32 = arith.constant 0 : i32
    %c0_i32_0 = arith.constant 0 : i32
    return %arg0, %c0_i32 : i32, i32
  }
  func.func @transform_4(%arg0: i32) -> (i32, i32) {
    %c0_i32 = arith.constant 0 : i32
    %c0_i32_0 = arith.constant 0 : i32
    %c0_i32_1 = arith.constant 0 : i32
    return %c0_i32, %c0_i32_0 : i32, i32
  }
  func.func @transform_5(%arg0: i32) -> (i32, i32) {
    %c0_i32 = arith.constant 0 : i32
    %c0_i32_0 = arith.constant 0 : i32
    %c0_i32_1 = arith.constant 0 : i32
    return %c0_i32, %c0_i32_0 : i32, i32
  }
  func.func @transform_6(%arg0: i32) -> (i32, i32) {
    %c0_i32 = arith.constant 0 : i32
    %c0_i32_0 = arith.constant 0 : i32
    %c0_i32_1 = arith.constant 0 : i32
    return %c0_i32, %c0_i32_0 : i32, i32
  }
  func.func @transform_7(%arg0: i32) -> (i32, i32) {
    %c0_i32 = arith.constant 0 : i32
    %c0_i32_0 = arith.constant 0 : i32
    %c0_i32_1 = arith.constant 0 : i32
    return %c0_i32, %c0_i32_0 : i32, i32
  }
  func.func @transform_8(%arg0: i32) -> (i32, i32) {
    %c0_i32 = arith.constant 0 : i32
    %c0_i32_0 = arith.constant 0 : i32
    return %arg0, %c0_i32 : i32, i32
  }
}

</mosaic_0001>

<bundles_post_ra>
// kernel: tpu_custom_call.1
= control target key start
LH: loop header
LB: loop body
LE: loop exit
PB: predicated region body
PF: predicated region fallthrough
CT: control target
= control target key end

     0   :  { %s15338_s0 = inlined_call_operand.hbm [shape: bf16[64,512], index: 0, kind: input, shape index: {}]   ;;  %s15339_s1 = inlined_call_operand.hbm [shape: bf16[64,1536], index: 1, kind: input, shape index: {}]   ;;  %s15340_s2 = inlined_call_operand.hbm [shape: bf16[64,4096], index: 2, kind: input, shape index: {}]   ;;  %s15341_s3 = inlined_call_operand.hbm [shape: bf16[64,8192], index: 3, kind: input, shape index: {}]   ;;  %s15342_s4 = inlined_call_operand.hbm [shape: bf16[512,128], index: 4, kind: input, shape index: {}]   ;;  %s15343_s5 = inlined_call_operand.hbm [shape: bf16[1536,128], index: 5, kind: input, shape index: {}]   ;;  %s15344_s6 = inlined_call_operand.hbm [shape: bf16[4096,128], index: 6, kind: input, shape index: {}]   ;;  %s15345_s7 = inlined_call_operand.hbm [shape: bf16[8192,128], index: 7, kind: input, shape index: {}]   ;;  %s15346_s8 = inlined_call_operand.hbm [shape: f32[64,128], index: 8, kind: output, shape index: {}]  }
   0x1   :  { %15363 = sst [smem:[#allocation46_spill]] %s15338_s0 }
   0x2   :  { %15364 = sst [smem:[#allocation47_spill]] %s15339_s1 }
   0x3   :  { %15365 = sst [smem:[#allocation48_spill]] %s15342_s4 }
   0x4   :  { %15366 = sst [smem:[#allocation49_spill]] %s15343_s5 }
   0x5   :  { %13 = vsyncpa [#allocation3], 0 }
   0x6   :  { %15 = vsyncpa [#allocation3 + $0x1], 0 }
   0x7   :  { %16 = vsyncpa [#allocation6], 0 }
   0x8   :  { %18 = vsyncpa [#allocation6 + $0x1], 0 }
   0x9   :  { %19 = vsyncpa [#allocation9], 0 }
   0xa   :  { %21 = vsyncpa [#allocation9 + $0x1], 0 }
   0xb   :  { %22 = vsyncpa [#allocation12], 0 }
   0xc   :  { %23 = vsyncpa [#allocation15], 0 }
   0xd   :  { %24 = vsyncpa [#allocation4], 0 }
   0xe   :  { %26 = vsyncpa [#allocation4 + $0x1], 0  ;;  %s14528_s27 = smov 0   ;;  %s14530_s28 = smov 0  }
   0xf   :  { %s14532_s29 = smov 0   ;;  %s14534_s30 = smov 0  }
  0x10 LB: > { %15367 = sst [smem:[#allocation24_spill]] %s14457_s29  ;;  %s14549_s9 = sadd.s32 4294967295, %s14461_s30   ;;  %s14461_s30 = sphi %s14534_s30, %s15436_s30   ;;  %s14457_s29 = sphi %s14532_s29, %s15438_s29   ;;  %s14453_s28 = sphi %s14530_s28, %s15440_s28   ;;  %s14449_s27 = sphi %s14528_s27, %s15439_s27  }
  0x11   : > { %s10842_s10 = sadd.s32 4294967294, %s14461_s30   ;;  %p52_p0 = scmp.ne.s32.totalorder %s14453_s28, %s14449_s27 }
  0x12   : > { %p15351_p1 = scmp.eq.s32.totalorder %s14549_s9, 0  ;;  %p238_p2 = scmp.eq.s32.totalorder %s14549_s9, 3 }
  0x13   : > { %p244_p3 = scmp.eq.s32.totalorder %s10842_s10, 3  ;;  %p10843_p5 = scmp.ge.s32.totalorder %s14461_s30, 1 }
  0x14   : > { %p14558_p4 = por %p15351_p1, %p52_p0  ;;  %p251_p7 = scmp.lt.s32.totalorder %s14461_s30, 5 }
  0x15   : > { %p14563_p6 = por %p244_p3, %p52_p0  ;;  %s14463_s14 = smov [#allocation10]  }
  0x16   : > { %s15368_s11 = scalar_select %p14558_p4, 1, 0 }
  0x17   : > { %s15369_s12 = scalar_select %p14563_p6, 1, 0 }
  0x18   : > { %p14568_p8 = pnand %p10843_p5, %p251_p7  ;;  %s263_s15 = sshll.u32 %s14463_s14, 4  ;;  %s264_s15 = int_to_ptr.vmem [resolvable:$true] %s263_s15 }
  0x19   : > { %s14464_s17 = smov [#allocation11]   ;;  %s14172_s19 = scalar_lea.vmem %s264_s15, 4096 }
  0x1a   : > { %s15370_s13 = scalar_select %p14568_p8, 1, 0 }
  0x1b   : > { %p13154_p9 = pneg %p14568_p8  ;;  %s276_s18 = sshll.u32 %s14464_s17, 4  ;;  %s277_s18 = int_to_ptr.vmem [resolvable:$true] %s276_s18 }
  0x1c   : > { %p14173_p12 = scmp.ne.s32.totalorder %s264_s15, %s14172_s19  ;;  %p14180_p3 = scmp.lt.s32.totalorder %s264_s15, %s264_s15 }
  0x1d   : > { %p14576_p10 = pnand %p13154_p9, %p15351_p1  ;;  %p14181_p5 = scmp.lt.s32.totalorder %s14172_s19, %s14172_s19 }
  0x1f   : > { %s15371_s16 = scalar_select %p14576_p10, 1, 0 }
  0x20   : > { %p15352_p11 = pneg %p14576_p10  ;;  %p14182_p7 = por %p14181_p5, %p14180_p3 }
  0x22   : > { %p14175_p13 = pnand %p14173_p12, %p15352_p11 }
  0x24   : > { %p14176_p0 = pneg %p14175_p13 }
  0x26   : > { %p14183_p9 = pnand %p14182_p7, %p14176_p0 }
  0x28   : > { %14186 = shalt.err (!%p14183_p9)
}
  0x29   : > { %s15347_s20 = smov 64   ;;  %s15349_s21 = smov 4  }
  0x2a   : > { %s15372_s4 = sld [smem:[#allocation48_spill]]  ;;  %s14198_s24 = scalar_lea.vmem %s277_s18, 12288 }
  0x2b   : > { %p14199_p12 = scmp.ne.s32.totalorder %s277_s18, %s14198_s24  ;;  %p14206_p0 = scmp.lt.s32.totalorder %s277_s18, %s277_s18 }
  0x2c   : > { %p14207_p5 = scmp.lt.s32.totalorder %s14198_s24, %s14198_s24 }
  0x2d   : > { %p14201_p13 = pnand %p14199_p12, %p15352_p11 }
  0x2e   : > { %p14208_p7 = por %p14207_p5, %p14206_p0 }
  0x2f   : > { %p14202_p3 = pneg %p14201_p13 }
  0x30   : > { %13157 = dma.hbm_to_vmem [thread:$0]  (!%p14576_p10), %s15372_s4, 4096, %s264_s15, [#allocation9], %s15347_s20, %s15347_s20, %s15349_s21  }
  0x31   : > { %p14209_p9 = pnand %p14208_p7, %p14202_p3 }
  0x33   : > { %14212 = shalt.err (!%p14209_p9)
}
  0x34   : > { %s15373_s5 = sld [smem:[#allocation49_spill]]  ;;  %s14605_s10 = sadd.s32 1, %s14461_s30  }
  0x35   : > { %15374 = sst [smem:[#allocation25_spill]] %s14605_s10  ;;  %s39_s14 = sadd.s32 1, %s14457_s29 }
  0x36   : > { %s36_s15 = ssub.s32 %s14461_s30, %s14605_s10  ;;  %p46_p12 = scmp.ne.s32.totalorder %s14457_s29, %s14453_s28 }
  0x37   : > { %p37_p13 = scmp.eq.s32.totalorder %s36_s15, 0  ;;  %p47_p3 = scmp.eq.s32.totalorder %s14461_s30, 0 }
  0x38   : > { %p14615_p0 = por %p238_p2, %p46_p12  ;;  %p13188_p5 = scmp.lt.s32.totalorder %s14461_s30, 4 }
  0x39   : > { %s14621_s19 = scalar_select %p37_p13, %s14457_s29, %s39_s14  }
  0x3a   : > { %13160 = dma.hbm_to_vmem [thread:$0]  (!%p14576_p10), %s15373_s5, 12288, %s277_s18, [#allocation12], %s15347_s20, %s15347_s20, %s15349_s21  }
  0x3b   : > { %s15375_s17 = scalar_select %p14615_p0, 1, 0 }
  0x3c   : > { %15376 = sst [smem:[#allocation26_spill]] %s14621_s19  ;;  %p48_p7 = por %p47_p3, %p46_p12 }
  0x3d   : > { %s14624_s22 = sand.u32 1, %s14457_s29   ;;  %s15353_s18 = sand.u32 1, %s14461_s30  }
  0x3e   : > { %s13125_s23 = smul.u32 96, %s14624_s22  ;;  %p14628_p9 = pnand %p13188_p5, %p48_p7 }
  0x3f   : > { %s13126_s25 = smul.u32 1536, %s14461_s30  ;;  %s15378_s1 = sld [smem:[#allocation47_spill]] }
  0x40   : > { %s342_s26 = scalar_lea.vmem [#allocation5], %s13125_s23  ;;  %s14642_s14 = scalar_lea.sflag [#allocation6], %s15353_s18 }
  0x41   : > { %s350_s15 = sshll.u32 %s342_s26, 4  ;;  %p14648_p12 = pneg %p14628_p9  ;;  %s14638_s15 = int_to_ptr.vmem [resolvable:$true] %s350_s15 }
  0x45   : > { %s14636_s4 = scalar_lea.hbm %s15378_s1, %s13126_s25  ;;  %s14218_s23 = scalar_lea.hbm %s15378_s1, 6144 }
  0x46   : > { %s14213_s5 = scalar_lea.hbm %s14636_s4, 1536  ;;  %p14219_p5 = scmp.lt.s32.totalorder %s14636_s4, %s15378_s1 }
  0x47   : > { %p14214_p2 = scmp.ne.s32.totalorder %s14636_s4, %s14213_s5  ;;  %p14220_p7 = scmp.lt.s32.totalorder %s14218_s23, %s14213_s5 }
  0x49   : > { %p14216_p13 = pnand %p14648_p12, %p14214_p2  ;;  %p14221_p1 = por %p14220_p7, %p14219_p5 }
  0x4b   : > { %p14217_p3 = pneg %p14216_p13 }
  0x4d   : > { %p14222_p11 = pnand %p14221_p1, %p14217_p3 }
  0x4f   : > { %14225 = shalt.err (!%p14222_p11)
}
  0x50   : > { %s14226_s18 = scalar_lea.vmem %s14638_s15, 1536  ;;  %s14467_s29 = smov [#allocation5]  }
  0x51   : > { %p14227_p6 = scmp.ne.s32.totalorder %s14638_s15, %s14226_s18  ;;  %s14231_s20 = sshll.u32 %s14467_s29, 4  ;;  %s14232_s20 = int_to_ptr.vmem [resolvable:$false] %s14231_s20 }
  0x52   : > { %s14233_s21 = scalar_lea.vmem %s14232_s20, 3072  ;;  %p14234_p0 = scmp.lt.s32.totalorder %s14638_s15, %s14232_s20 }
  0x53   : > { %p14229_p2 = pnand %p14227_p6, %p14648_p12  ;;  %p14235_p4 = scmp.lt.s32.totalorder %s14233_s21, %s14226_s18 }
  0x55   : > { %p14230_p13 = pneg %p14229_p2  ;;  %p14236_p8 = por %p14235_p4, %p14234_p0 }
  0x57   : > { %p14237_p10 = pnand %p14236_p8, %p14230_p13 }
  0x59   : > { %14240 = shalt.err (!%p14237_p10)
}
  0x5a   : > { %s14468_s5 = smov 768   ;;  %s14469_s23 = smov 48  }
  0x5b   : > { %13173 = dma.hbm_to_vmem [thread:$0]  (!%p14628_p9), %s14636_s4, 1536, %s14638_s15, %s14642_s14, %s14468_s5, %s14468_s5, %s14469_s23  }
  0x5c   : > { %s14470_s25 = smov [#allocation13]   ;;  %s14471_s29 = smov [#allocation14]  }
  0x5d   : > { %s289_s26 = sshll.u32 %s14470_s25, 4  ;;  %s302_s1 = sshll.u32 %s14471_s29, 4  ;;  %s290_s26 = int_to_ptr.vmem [resolvable:$true] %s289_s26  ;;  %s303_s1 = int_to_ptr.vmem [resolvable:$true] %s302_s1 }
  0x5e   : > { %s14252_s10 = scalar_lea.vmem %s290_s26, 32768  ;;  %p15380_p6 = scmp.ne.s32.totalorder %s15371_s16, 0 }
  0x5f   : > { %p14253_p1 = scmp.ne.s32.totalorder %s290_s26, %s14252_s10  ;;  %p14260_p11 = scmp.lt.s32.totalorder %s290_s26, %s290_s26 }
  0x60   : > { %p15381_p4 = pneg %p15380_p6  ;;  %p14261_p0 = scmp.lt.s32.totalorder %s14252_s10, %s14252_s10 }
  0x62   : > { %p14255_p8 = pnand %p14253_p1, %p15381_p4  ;;  %p14262_p3 = por %p14261_p0, %p14260_p11 }
  0x64   : > { %p14256_p10 = pneg %p14255_p8 }
  0x66   : > { %p14263_p5 = pnand %p14262_p3, %p14256_p10 }
  0x68   : > { %14266 = shalt.err (!%p14263_p5)
}
  0x69   : > { %s15382_s18 = smov 4   ;;  %s15383_s4 = smov 64  }
  0x6a   : > { %13163 = dma.hbm_to_vmem [thread:$0]  (!%p15380_p6), %s15344_s6, 32768, %s290_s26, [#allocation12], %s15383_s4, %s15383_s4, %s15382_s18  }
  0x6b   : > { %s14278_s21 = scalar_lea.vmem %s303_s1, 65536  ;;  %p15384_p2 = pmov %p15381_p4 }
  0x6c   : > { %p14279_p7 = scmp.ne.s32.totalorder %s303_s1, %s14278_s21  ;;  %p14286_p4 = scmp.lt.s32.totalorder %s303_s1, %s303_s1 }
  0x6d   : > { %p14287_p8 = scmp.lt.s32.totalorder %s14278_s21, %s14278_s21 }
  0x6e   : > { %p14281_p13 = pnand %p14279_p7, %p15384_p2 }
  0x6f   : > { %p14288_p10 = por %p14287_p8, %p14286_p4 }
  0x70   : > { %p14282_p1 = pneg %p14281_p13 }
  0x72   : > { %p14289_p11 = pnand %p14288_p10, %p14282_p1 }
  0x74   : > { %14292 = shalt.err (!%p14289_p11)
}
  0x75   : > { %13166 = dma.hbm_to_vmem [thread:$0]  (!%p15380_p6), %s15345_s7, 65536, %s303_s1, [#allocation15], %s15383_s4, %s15383_s4, %s15382_s18  }
  0x76   : > { %s10849_s23 = sshll.u32 %s14624_s22, 5  ;;  %s11887_s25 = sshll.u32 %s14461_s30, 9 }
  0x77   : > { %s15385_s0 = sld [smem:[#allocation46_spill]]  ;;  %s320_s16 = scalar_lea.vmem [#allocation2], %s10849_s23 }
  0x78   : > { %s328_s20 = sshll.u32 %s320_s16, 4  ;;  %s317_s21 = scalar_lea.sflag [#allocation3], %s14624_s22  ;;  %s14700_s20 = int_to_ptr.vmem [resolvable:$true] %s328_s20 }
  0x7d   : > { %s14698_s15 = scalar_lea.hbm %s15385_s0, %s11887_s25  ;;  %s14298_s4 = scalar_lea.hbm %s15385_s0, 2048 }
  0x7e   : > { %s14293_s10 = scalar_lea.hbm %s14698_s15, 512  ;;  %p14299_p5 = scmp.lt.s32.totalorder %s14698_s15, %s15385_s0 }
  0x7f   : > { %p14294_p0 = scmp.ne.s32.totalorder %s14698_s15, %s14293_s10  ;;  %p14300_p7 = scmp.lt.s32.totalorder %s14298_s4, %s14293_s10 }
  0x81   : > { %p14296_p3 = pnand %p14294_p0, %p14648_p12  ;;  %p14301_p2 = por %p14300_p7, %p14299_p5 }
  0x83   : > { %p14297_p6 = pneg %p14296_p3 }
  0x85   : > { %p14302_p13 = pnand %p14301_p2, %p14297_p6 }
  0x87   : > { %14305 = shalt.err (!%p14302_p13)
}
  0x88   : > { %s14306_s23 = scalar_lea.vmem %s14700_s20, 512  ;;  %s14472_s26 = smov [#allocation2]  }
  0x89   : > { %p14307_p1 = scmp.ne.s32.totalorder %s14700_s20, %s14306_s23  ;;  %s14311_s29 = sshll.u32 %s14472_s26, 4  ;;  %s14312_s29 = int_to_ptr.vmem [resolvable:$false] %s14311_s29 }
  0x8a   : > { %s14313_s16 = scalar_lea.vmem %s14312_s29, 1024  ;;  %p14314_p10 = scmp.lt.s32.totalorder %s14700_s20, %s14312_s29 }
  0x8b   : > { %p14309_p4 = pnand %p14307_p1, %p14648_p12  ;;  %p14315_p11 = scmp.lt.s32.totalorder %s14313_s16, %s14306_s23 }
  0x8d   : > { %p14310_p8 = pneg %p14309_p4  ;;  %p14316_p0 = por %p14315_p11, %p14314_p10 }
  0x8f   : > { %p14317_p3 = pnand %p14316_p0, %p14310_p8 }
  0x91   : > { %14320 = shalt.err (!%p14317_p3)
}
  0x92   : > { %s15362_s10 = smov 256   ;;  %s14474_s1 = smov 16  }
  0x93   : > { %13170 = dma.hbm_to_vmem [thread:$0]  (!%p14628_p9), %s14698_s15, 512, %s14700_s20, %s317_s21, %s15362_s10, %s15362_s10, %s14474_s1  }
  0x94   : > { %s10856_s18 = sshll.u32 %s14624_s22, 8  ;;  %s11889_s4 = sshll.u32 %s14461_s30, 12 }
  0x95   : > { %s14732_s23 = scalar_lea.hbm %s15340_s2, %s11889_s4  ;;  %s364_s26 = scalar_lea.vmem [#allocation7], %s10856_s18 }
  0x96   : > { %s372_s29 = sshll.u32 %s364_s26, 4  ;;  %s14321_s16 = scalar_lea.hbm %s14732_s23, 4096  ;;  %s14734_s29 = int_to_ptr.vmem [resolvable:$true] %s372_s29 }
  0x97   : > { %p14322_p6 = scmp.ne.s32.totalorder %s14732_s23, %s14321_s16  ;;  %s14326_s21 = scalar_lea.hbm %s15340_s2, 16384 }
  0x98   : > { %p14327_p2 = scmp.lt.s32.totalorder %s14732_s23, %s15340_s2  ;;  %p14328_p13 = scmp.lt.s32.totalorder %s14326_s21, %s14321_s16 }
  0x99   : > { %p14324_p5 = pnand %p14322_p6, %p14648_p12 }
  0x9a   : > { %p14329_p1 = por %p14328_p13, %p14327_p2 }
  0x9b   : > { %p14325_p7 = pneg %p14324_p5 }
  0x9d   : > { %p14330_p4 = pnand %p14329_p1, %p14325_p7 }
  0x9f   : > { %14333 = shalt.err (!%p14330_p4)
}
  0xa0   : > { %s14334_s18 = scalar_lea.vmem %s14734_s29, 4096  ;;  %s14475_s4 = smov [#allocation7]  }
  0xa1   : > { %p14335_p8 = scmp.ne.s32.totalorder %s14734_s29, %s14334_s18  ;;  %s14339_s25 = sshll.u32 %s14475_s4, 4  ;;  %s14340_s25 = int_to_ptr.vmem [resolvable:$false] %s14339_s25 }
  0xa2   : > { %s14341_s26 = scalar_lea.vmem %s14340_s25, 8192  ;;  %p14342_p0 = scmp.lt.s32.totalorder %s14734_s29, %s14340_s25 }
  0xa3   : > { %p14337_p10 = pnand %p14335_p8, %p14648_p12  ;;  %p14343_p3 = scmp.lt.s32.totalorder %s14341_s26, %s14334_s18 }
  0xa5   : > { %p14338_p11 = pneg %p14337_p10  ;;  %p14344_p6 = por %p14343_p3, %p14342_p0 }
  0xa7   : > { %p14345_p5 = pnand %p14344_p6, %p14338_p11 }
  0xa9   : > { %14348 = shalt.err (!%p14345_p5)
}
  0xaa   : > { %s14476_s16 = smov 2048   ;;  %s14477_s15 = smov 128  }
  0xab   : > { %13176 = dma.hbm_to_vmem [thread:$0]  (!%p14628_p9), %s14732_s23, 4096, %s14734_s29, %s14642_s14, %s14476_s16, %s14476_s16, %s14477_s15  }
  0xac   : > { %s10860_s20 = sshll.u32 %s14624_s22, 9  ;;  %s11891_s21 = sshll.u32 %s14461_s30, 13 }
  0xad   : > { %s14762_s18 = scalar_lea.hbm %s15341_s3, %s11891_s21  ;;  %s386_s4 = scalar_lea.vmem [#allocation8], %s10860_s20 }
  0xae   : > { %s394_s25 = sshll.u32 %s386_s4, 4  ;;  %s15386_s26 = sand.u32 1, %s14461_s30   ;;  %s14764_s25 = int_to_ptr.vmem [resolvable:$true] %s394_s25 }
  0xaf   : > { %s14768_s10 = scalar_lea.sflag [#allocation9], %s15386_s26  ;;  %s14349_s0 = scalar_lea.hbm %s14762_s18, 8192 }
  0xb0   : > { %p14350_p7 = scmp.ne.s32.totalorder %s14762_s18, %s14349_s0  ;;  %s14354_s23 = scalar_lea.hbm %s15341_s3, 32768 }
  0xb1   : > { %p14355_p1 = scmp.lt.s32.totalorder %s14762_s18, %s15341_s3  ;;  %p14356_p4 = scmp.lt.s32.totalorder %s14354_s23, %s14349_s0 }
  0xb2   : > { %p14352_p2 = pnand %p14350_p7, %p14648_p12 }
  0xb3   : > { %p14357_p8 = por %p14356_p4, %p14355_p1 }
  0xb4   : > { %p14353_p13 = pneg %p14352_p2 }
  0xb6   : > { %p14358_p10 = pnand %p14357_p8, %p14353_p13 }
  0xb8   : > { %14361 = shalt.err (!%p14358_p10)
}
  0xb9   : > { %s14362_s15 = scalar_lea.vmem %s14764_s25, 8192  ;;  %s14478_s20 = smov [#allocation8]  }
  0xba   : > { %p14363_p11 = scmp.ne.s32.totalorder %s14764_s25, %s14362_s15  ;;  %s14367_s21 = sshll.u32 %s14478_s20, 4  ;;  %s14368_s21 = int_to_ptr.vmem [resolvable:$false] %s14367_s21 }
  0xbb   : > { %s14369_s1 = scalar_lea.vmem %s14368_s21, 16384  ;;  %p14370_p6 = scmp.lt.s32.totalorder %s14764_s25, %s14368_s21 }
  0xbc   : > { %p14365_p0 = pnand %p14363_p11, %p14648_p12  ;;  %p14371_p5 = scmp.lt.s32.totalorder %s14369_s1, %s14362_s15 }
  0xbe   : > { %p14366_p3 = pneg %p14365_p0  ;;  %p14372_p7 = por %p14371_p5, %p14370_p6 }
  0xc0   : > { %p14373_p2 = pnand %p14372_p7, %p14366_p3 }
  0xc2   : > { %14376 = shalt.err (!%p14373_p2)
}
  0xc3   : > { %s14479_s0 = smov 4096   ;;  %s15387_s5 = smov 256  }
  0xc4   : > { %13179 = dma.hbm_to_vmem [thread:$0]  (!%p14628_p9), %s14762_s18, 8192, %s14764_s25, %s14768_s10, %s14479_s0, %s14479_s0, %s15387_s5  }
  0xc5   : > { %p15388_p12 = scmp.ne.s32.totalorder %s15370_s13, 0 }
  0xc7   : > { %406 = sbr.rel (%p15388_p12) target bundleno = 1352 (0x548), region = 52 }
  0xcc   : > { %s14795_s19 = sand.u32 1, %s14453_s28   ;;  %p15389_p13 = scmp.ne.s32.totalorder %s15368_s11, 0 }
  0xcd   : > { %s10865_s4 = sshll.u32 %s14795_s19, 5  ;;  %s409_s26 = scalar_lea.sflag [#allocation3], %s14795_s19 }
  0xce   : > { %s14799_s22 = scalar_lea.vmem [#allocation2], %s10865_s4 }
  0xcf   : > { %14420 = dma.done.wait (%p15389_p13), %s409_s26, 512  }
  0xd0   : > { %14422 = vsyncadd (%p15389_p13), %s409_s26, 4294966784  ;;  %s417_s13 = sand.u32 1, %s14549_s9   ;;  %s13127_s24 = smul.u32 96, %s14795_s19 }
  0xd1   : > { %s418_s10 = scalar_lea.sflag [#allocation6], %s417_s13 }
  0xd2   : > { %s14807_s18 = scalar_lea.vmem [#allocation5], %s13127_s24 }
  0xd3   : > { %14424 = dma.done.wait (%p15389_p13), %s418_s10, 5632  }
  0xd4   : > { %14426 = vsyncadd (%p15389_p13), %s418_s10, 4294961664  ;;  %s10866_s25 = sshll.u32 %s14795_s19, 8  ;;  %s10867_s14 = sshll.u32 %s14795_s19, 9 }
  0xd5   : > { %s14815_s23 = scalar_lea.vmem [#allocation7], %s10866_s25  ;;  %s436_s29 = scalar_lea.sflag [#allocation9], %s417_s13 }
  0xd6   : > { %s14817_s16 = scalar_lea.vmem [#allocation8], %s10867_s14 }
  0xd7   : > { %14428 = dma.done.wait (%p15389_p13), %s436_s29, 8192  }
  0xd8   : > { %14430 = vsyncadd (%p15389_p13), %s436_s29, 4294959104  ;;  %p15390_p9 = scmp.eq.s32.totalorder %s14549_s9, 0 }
  0xda   : > { %14432 = dma.done.wait (%p15390_p9), [#allocation9], 4096   ;;  %p15391_p1 = pmov %p15390_p9 }
  0xdc   : > { %14434 = vsyncadd (%p15391_p1), [#allocation9], 4294963200  ;;  %p15392_p4 = pmov %p15391_p1 }
  0xdd   : > { %p15393_p8 = pmov %p15391_p1 }
  0xde   : > { %14436 = dma.done.wait (%p15392_p4), [#allocation12], 45056  }
  0xdf   : > { %14438 = vsyncadd (%p15393_p8), [#allocation12], 4294922240  ;;  %p15394_p10 = pmov %p15391_p1 }
  0xe0   : > { %p15395_p11 = pmov %p15391_p1 }
  0xe1   : > { %14440 = dma.done.wait (%p15394_p10), [#allocation15], 65536  }
  0xe2   : > { %14442 = vsyncadd (%p15395_p11), [#allocation15], 4294901760  ;;  %v13241_v0 = vld [vmem:[#allocation11 + $0x78] sm:$0xff]   ;;  %v13245_v4 = vld [vmem:[#allocation11 + $0x70] sm:$0xff]   ;;  %s10872_s11 = sshll.u32 %s14795_s19, 4  ;;  %s11892_s21 = sshll.u32 %s14549_s9, 8 }
  0xe3   : > { %v13242_v1 = vld [vmem:[#allocation11 + $0xf8] sm:$0xff]   ;;  %11893 = vmatprep.subr.bf16.mxu0 %v13241_v0  ;;  %v13246_v5 = vld [vmem:[#allocation11 + $0xf0] sm:$0xff]   ;;  %v13249_v8 = vld [vmem:[#allocation11 + $0x68] sm:$0xff]   ;;  %s502_s15 = scalar_lea.vmem [#allocation16], %s10872_s11  ;;  %s15295_s5 = scalar_lea.hbm %s15346_s8, %s11892_s21 }
  0xe4   : > { %v13243_v2 = vld [vmem:[#allocation11 + $0x38] sm:$0xff]   ;;  %11915 = vmatprep.subr.bf16.mxu1 %v13242_v1  ;;  %v13247_v6 = vld [vmem:[#allocation11 + $0x30] sm:$0xff]   ;;  %v13250_v9 = vld [vmem:[#allocation11 + $0xe8] sm:$0xff]   ;;  %s10665_s20 = sshll.u32 %s502_s15, 4  ;;  %s10652_s4 = scalar_lea.sflag [#allocation4], %s14795_s19  ;;  %s15290_s20 = int_to_ptr.vmem [resolvable:$true] %s10665_s20 }
  0xe5   : > { %v13244_v3 = vld [vmem:[#allocation11 + $0xb8] sm:$0xff]   ;;  %11894 = vmatpush3.bf16.msra.mxu0 %v13243_v2  ;;  %v13248_v7 = vld [vmem:[#allocation11 + $0xb0] sm:$0xff]   ;;  %v13251_v10 = vld [vmem:[#allocation11 + $0x28] sm:$0xff]   ;;  %s14377_s26 = scalar_lea.vmem %s15290_s20, 256  ;;  %p15434_p3 = scmp.ne.s32.totalorder %s15375_s17, 0 }
  0xe6   : > { %11916 = vmatpush3.bf16.msra.mxu1 %v13244_v3  ;;  %11895 = vmatprep.subr.bf16.mxu0 %v13245_v4  ;;  %v13252_v11 = vld [vmem:[#allocation11 + $0xa8] sm:$0xff]   ;;  %v13253_v12 = vld [vmem:[#allocation11 + $0x60] sm:$0xff]   ;;  %v13257_v16 = vld [vmem:[#allocation11 + $0x58] sm:$0xff]   ;;  %p14378_p0 = scmp.ne.s32.totalorder %s15290_s20, %s14377_s26  ;;  %s14480_s9 = smov [#allocation16]  }
  0xe7   : > { %11917 = vmatprep.subr.bf16.mxu1 %v13246_v5  ;;  %v13254_v13 = vld [vmem:[#allocation11 + $0xe0] sm:$0xff]   ;;  %v13258_v17 = vld [vmem:[#allocation11 + $0xd8] sm:$0xff]   ;;  %v13261_v20 = vld [vmem:[#allocation11 + $0x50] sm:$0xff]  }
  0xe8   : > { %v13255_v14 = vld [vmem:[#allocation11 + $0x20] sm:$0xff]   ;;  %v13259_v18 = vld [vmem:[#allocation11 + $0x18] sm:$0xff]   ;;  %v13262_v21 = vld [vmem:[#allocation11 + $0xd0] sm:$0xff]   ;;  %p14379_p6 = pnand %p14378_p0, %p15434_p3 }
  0xe9   : > { %11896 = vmatpush3.bf16.msra.mxu0 %v13247_v6  ;;  %v13256_v15 = vld [vmem:[#allocation11 + $0xa0] sm:$0xff]   ;;  %v13260_v19 = vld [vmem:[#allocation11 + $0x98] sm:$0xff]   ;;  %v13263_v22 = vld [vmem:[#allocation11 + $0x10] sm:$0xff]  }
  0xea   : > { %11918 = vmatpush3.bf16.msra.mxu1 %v13248_v7  ;;  %11897 = vmatprep.subr.bf16.mxu0 %v13249_v8  ;;  %v13264_v23 = vld [vmem:[#allocation11 + $0x90] sm:$0xff]   ;;  %v13265_v24 = vld [vmem:[#allocation11 + $0x48] sm:$0xff]   ;;  %v13269_v28 = vld [vmem:[#allocation11 + $0x40] sm:$0xff]   ;;  %p14380_p5 = pneg %p14379_p6 }
  0xeb   : > { %11919 = vmatprep.subr.bf16.mxu1 %v13250_v9  ;;  %v13266_v25 = vld [vmem:[#allocation11 + $0xc8] sm:$0xff]   ;;  %v13270_v29 = vld [vmem:[#allocation11 + $0xc0] sm:$0xff]   ;;  %v13279_v36 = vld [vmem:[#allocation11 + $0x178] sm:$0xff]  }
  0xec   : > { %v13267_v26 = vld [vmem:[#allocation11 + $0x8] sm:$0xff]   ;;  %v13271_v30 = vld [vmem:[#allocation11] sm:$0xff]   ;;  %v13280_v37 = vld [vmem:[#allocation11 + $0x1f8] sm:$0xff]  }
  0xed   : > { %11898 = vmatpush3.bf16.msra.mxu0 %v13251_v10  ;;  %v13268_v27 = vld [vmem:[#allocation11 + $0x88] sm:$0xff]   ;;  %v13272_v31 = vld [vmem:[#allocation11 + $0x80] sm:$0xff]   ;;  %v13281_v38 = vld [vmem:[#allocation11 + $0x138] sm:$0xff]  }
  0xee   : > { %11920 = vmatpush3.bf16.msra.mxu1 %v13252_v11  ;;  %11899 = vmatprep.subr.bf16.mxu0 %v13253_v12  ;;  %v13273_v32 = vld [vmem:[%s14807_s18] ss:$48 sps:$4 sm:$0xff]   ;;  %v13275_v33 = vld [vmem:[%s14807_s18 + $0x4] ss:$48 sps:$4 sm:$0xff]   ;;  %v13276_v34 = vld [vmem:[%s14807_s18 + $0x8] ss:$48 sps:$4 sm:$0xff]  }
  0xef   : > { %11921 = vmatprep.subr.bf16.mxu1 %v13254_v13  ;;  %v13278_v35 = vld [vmem:[%s14807_s18 + $0xc] ss:$48 sps:$4 sm:$0xff]   ;;  %1449 = vmatprep.mubr.bf16.mxu0 %v13275_v33  ;;  %v13283_v40 = vld [vmem:[#allocation11 + $0x170] sm:$0xff]   ;;  %v13291_v48 = vld [vmem:[#allocation11 + $0x160] sm:$0xff]  }
  0xf0   : > { %1490 = vmatprep.mubr.bf16.mxu1 %v13278_v35  ;;  %v13282_v39 = vld [vmem:[#allocation11 + $0x1b8] sm:$0xff]   ;;  %v13284_v41 = vld [vmem:[#allocation11 + $0x1f0] sm:$0xff]   ;;  %v13287_v44 = vld [vmem:[#allocation11 + $0x168] sm:$0xff]  }
  0xf1   : > { %11900 = vmatpush3.bf16.msra.mxu0 %v13255_v14  ;;  %v13285_v42 = vld [vmem:[#allocation11 + $0x130] sm:$0xff]   ;;  %v13288_v45 = vld [vmem:[#allocation11 + $0x1e8] sm:$0xff]   ;;  %v13292_v49 = vld [vmem:[#allocation11 + $0x1e0] sm:$0xff]  }
  0xf2   : > { %11922 = vmatpush3.bf16.msra.mxu1 %v13256_v15  ;;  %11901 = vmatprep.subr.bf16.mxu0 %v13257_v16  ;;  %v13286_v43 = vld [vmem:[#allocation11 + $0x1b0] sm:$0xff]   ;;  %v13289_v46 = vld [vmem:[#allocation11 + $0x128] sm:$0xff]   ;;  %v13293_v50 = vld [vmem:[#allocation11 + $0x120] sm:$0xff]  }
  0xf3   : > { %11923 = vmatprep.subr.bf16.mxu1 %v13258_v17  ;;  %v13290_v47 = vld [vmem:[#allocation11 + $0x1a8] sm:$0xff]   ;;  %v13294_v51 = vld [vmem:[#allocation11 + $0x1a0] sm:$0xff]   ;;  %v13295_v52 = vld [vmem:[#allocation11 + $0x158] sm:$0xff]  }
  0xf4   : > { %v13296_v53 = vld [vmem:[#allocation11 + $0x1d8] sm:$0xff]   ;;  %v13299_v56 = vld [vmem:[#allocation11 + $0x150] sm:$0xff]   ;;  %v13303_v60 = vld [vmem:[#allocation11 + $0x148] sm:$0xff]  }
  0xf5   : > { %11902 = vmatpush3.bf16.msra.mxu0 %v13259_v18  ;;  %v13297_v54 = vld [vmem:[#allocation11 + $0x118] sm:$0xff]   ;;  %v13300_v57 = vld [vmem:[#allocation11 + $0x1d0] sm:$0xff]   ;;  %v13304_v61 = vld [vmem:[#allocation11 + $0x1c8] sm:$0xff]  }
  0xf6   : > { %11924 = vmatpush3.bf16.msra.mxu1 %v13260_v19  ;;  %11903 = vmatprep.subr.bf16.mxu0 %v13261_v20  ;;  %v13298_v55 = vld [vmem:[#allocation11 + $0x198] sm:$0xff]   ;;  %v13301_v58 = vld [vmem:[#allocation11 + $0x110] sm:$0xff]   ;;  %v13305_v62 = vld [vmem:[#allocation11 + $0x108] sm:$0xff]  }
  0xf7   : > { %11925 = vmatprep.subr.bf16.mxu1 %v13262_v21  ;;  %v13302_v59 = vld [vmem:[#allocation11 + $0x190] sm:$0xff]   ;;  %v13306_v63 = vld [vmem:[#allocation11 + $0x188] sm:$0xff]   ;;  %v13307_v0 = vld [vmem:[#allocation11 + $0x140] sm:$0xff]  }
  0xf8   : > { %v13308_v1 = vld [vmem:[#allocation11 + $0x1c0] sm:$0xff]   ;;  %v13314_v6 = vld [vmem:[%s14807_s18 + $0x18] ss:$48 sps:$4 sm:$0xff]   ;;  %v13316_v7 = vld [vmem:[%s14807_s18 + $0x1c] ss:$48 sps:$4 sm:$0xff]  }
  0xf9   : > { %11904 = vmatpush3.bf16.msra.mxu0 %v13263_v22  ;;  %v13309_v2 = vld [vmem:[#allocation11 + $0x100] sm:$0xff]   ;;  %v13317_v8 = vld [vmem:[#allocation11 + $0x278] sm:$0xff]   ;;  %v13321_v12 = vld [vmem:[#allocation11 + $0x270] sm:$0xff]  }
  0xfa   : > { %11926 = vmatpush3.bf16.msra.mxu1 %v13264_v23  ;;  %11905 = vmatprep.subr.bf16.mxu0 %v13265_v24  ;;  %v13310_v3 = vld [vmem:[#allocation11 + $0x180] sm:$0xff]   ;;  %v13318_v9 = vld [vmem:[#allocation11 + $0x2f8] sm:$0xff]   ;;  %v13322_v13 = vld [vmem:[#allocation11 + $0x2f0] sm:$0xff]  }
  0xfb   : > { %11927 = vmatprep.subr.bf16.mxu1 %v13266_v25  ;;  %v13311_v4 = vld [vmem:[%s14807_s18 + $0x10] ss:$48 sps:$4 sm:$0xff]   ;;  %v13313_v5 = vld [vmem:[%s14807_s18 + $0x14] ss:$48 sps:$4 sm:$0xff]   ;;  %v13319_v10 = vld [vmem:[#allocation11 + $0x238] sm:$0xff]  }
  0xfc   : > { %v13320_v11 = vld [vmem:[#allocation11 + $0x2b8] sm:$0xff]   ;;  %v13323_v14 = vld [vmem:[#allocation11 + $0x230] sm:$0xff]   ;;  %v13325_v16 = vld [vmem:[#allocation11 + $0x268] sm:$0xff]  }
  0xfd   : > { %11906 = vmatpush3.bf16.msra.mxu0 %v13267_v26  ;;  %v13324_v15 = vld [vmem:[#allocation11 + $0x2b0] sm:$0xff]   ;;  %v13326_v17 = vld [vmem:[#allocation11 + $0x2e8] sm:$0xff]   ;;  %v13329_v20 = vld [vmem:[#allocation11 + $0x260] sm:$0xff]  }
  0xfe   : > { %11928 = vmatpush3.bf16.msra.mxu1 %v13268_v27  ;;  %11907 = vmatprep.subr.bf16.mxu0 %v13269_v28  ;;  %v13327_v18 = vld [vmem:[#allocation11 + $0x228] sm:$0xff]   ;;  %v13330_v21 = vld [vmem:[#allocation11 + $0x2e0] sm:$0xff]   ;;  %v13333_v24 = vld [vmem:[#allocation11 + $0x258] sm:$0xff]  }
  0xff   : > { %11929 = vmatprep.subr.bf16.mxu1 %v13270_v29  ;;  %v13328_v19 = vld [vmem:[#allocation11 + $0x2a8] sm:$0xff]   ;;  %v13331_v22 = vld [vmem:[#allocation11 + $0x220] sm:$0xff]   ;;  %v13334_v25 = vld [vmem:[#allocation11 + $0x2d8] sm:$0xff]  }
 0x100   : > { %v13332_v23 = vld [vmem:[#allocation11 + $0x2a0] sm:$0xff]   ;;  %v13335_v26 = vld [vmem:[#allocation11 + $0x218] sm:$0xff]   ;;  %v13337_v28 = vld [vmem:[#allocation11 + $0x250] sm:$0xff]  }
 0x101   : > { %11908 = vmatpush3.bf16.msra.mxu0 %v13271_v30  ;;  %v13336_v27 = vld [vmem:[#allocation11 + $0x298] sm:$0xff]   ;;  %v13338_v29 = vld [vmem:[#allocation11 + $0x2d0] sm:$0xff]   ;;  %v13342_v33 = vld [vmem:[#allocation11 + $0x2c8] sm:$0xff]  }
 0x102   : > { %11930 = vmatpush3.bf16.msra.mxu1 %v13272_v31  ;;  %11937 = vmatprep.subr.bf16.mxu0 %v13279_v36  ;;  %v13339_v30 = vld [vmem:[#allocation11 + $0x210] sm:$0xff]   ;;  %v13344_v35 = vld [vmem:[#allocation11 + $0x288] sm:$0xff]   ;;  %v13345_v36 = vld [vmem:[#allocation11 + $0x240] sm:$0xff]  }
 0x103   : > { %11959 = vmatprep.subr.bf16.mxu1 %v13280_v37  ;;  %v13340_v31 = vld [vmem:[#allocation11 + $0x290] sm:$0xff]   ;;  %v13346_v37 = vld [vmem:[#allocation11 + $0x2c0] sm:$0xff]  }
 0x104   : > { %1450 = vmatmul.mubr.bf16.vlgmr.msra.gmra.mxu0 %v13273_v32  ;;  %v13341_v32 = vld [vmem:[#allocation11 + $0x248] sm:$0xff]  }
 0x105   : > { %1491 = vmatmul.mubr.bf16.vlgmr.msra.gmra.mxu1 %v13276_v34  ;;  %11938 = vmatpush3.bf16.msra.mxu0 %v13281_v38  ;;  %v13343_v34 = vld [vmem:[#allocation11 + $0x208] sm:$0xff]   ;;  %v13347_v38 = vld [vmem:[#allocation11 + $0x200] sm:$0xff]  }
 0x106   : > { %11960 = vmatpush3.bf16.msra.mxu1 %v13282_v39  ;;  %11939 = vmatprep.subr.bf16.mxu0 %v13283_v40  ;;  %v13348_v39 = vld [vmem:[#allocation11 + $0x280] sm:$0xff]  }
 0x107   : > { %11961 = vmatprep.subr.bf16.mxu1 %v13284_v41  ;;  %1531 = vmatprep.mubr.bf16.mxu0 %v13313_v5  ;;  %v13349_v40 = vld [vmem:[%s14807_s18 + $0x20] ss:$48 sps:$4 sm:$0xff]   ;;  %v13351_v41 = vld [vmem:[%s14807_s18 + $0x24] ss:$48 sps:$4 sm:$0xff]   ;;  %v13380_v5 = vld [vmem:[#allocation10 + $0xc8] sm:$0xff]  }
 0x108   : > { %1572 = vmatprep.mubr.bf16.mxu1 %v13316_v7  ;;  %v13382_v7 = vld [vmem:[#allocation10 + $0x88] sm:$0xff]  }
 0x109   : > { %11940 = vmatpush3.bf16.msra.mxu0 %v13285_v42  ;;  %v13352_v42 = vld [vmem:[%s14807_s18 + $0x28] ss:$48 sps:$4 sm:$0xff]  }
 0x10a   : > { %11962 = vmatpush3.bf16.msra.mxu1 %v13286_v43  ;;  %11941 = vmatprep.subr.bf16.mxu0 %v13287_v44  ;;  %v13354_v43 = vld [vmem:[%s14807_s18 + $0x2c] ss:$48 sps:$4 sm:$0xff]  }
 0x10b   : > { %11963 = vmatprep.subr.bf16.mxu1 %v13288_v45  ;;  %v13355_v44 = vld [vmem:[#allocation10 + $0x78] sm:$0xff]  }
 0x10c   : > { %v13356_v45 = vld [vmem:[#allocation10 + $0xf8] sm:$0xff]  }
 0x10d   : > { %11942 = vmatpush3.bf16.msra.mxu0 %v13289_v46  ;;  %v13357_v46 = vld [vmem:[#allocation10 + $0x38] sm:$0xff]  }
 0x10e   : > { %11964 = vmatpush3.bf16.msra.mxu1 %v13290_v47  ;;  %11943 = vmatprep.subr.bf16.mxu0 %v13291_v48  ;;  %v13358_v47 = vld [vmem:[#allocation10 + $0xb8] sm:$0xff]   ;;  %v13359_v48 = vld [vmem:[#allocation10 + $0x70] sm:$0xff]  }
 0x10f   : > { %11965 = vmatprep.subr.bf16.mxu1 %v13292_v49  ;;  %v13360_v49 = vld [vmem:[#allocation10 + $0xf0] sm:$0xff]  }
 0x111   : > { %11944 = vmatpush3.bf16.msra.mxu0 %v13293_v50  ;;  %v13361_v50 = vld [vmem:[#allocation10 + $0x30] sm:$0xff]  }
 0x112   : > { %11966 = vmatpush3.bf16.msra.mxu1 %v13294_v51  ;;  %11945 = vmatprep.subr.bf16.mxu0 %v13295_v52  ;;  %v13362_v51 = vld [vmem:[#allocation10 + $0xb0] sm:$0xff]   ;;  %v13363_v52 = vld [vmem:[#allocation10 + $0x68] sm:$0xff]  }
 0x113   : > { %11967 = vmatprep.subr.bf16.mxu1 %v13296_v53  ;;  %v13364_v53 = vld [vmem:[#allocation10 + $0xe8] sm:$0xff]  }
 0x115   : > { %11946 = vmatpush3.bf16.msra.mxu0 %v13297_v54  ;;  %v13365_v54 = vld [vmem:[#allocation10 + $0x28] sm:$0xff]  }
 0x116   : > { %11968 = vmatpush3.bf16.msra.mxu1 %v13298_v55  ;;  %11947 = vmatprep.subr.bf16.mxu0 %v13299_v56  ;;  %v13366_v55 = vld [vmem:[#allocation10 + $0xa8] sm:$0xff]   ;;  %v13367_v56 = vld [vmem:[#allocation10 + $0x60] sm:$0xff]  }
 0x117   : > { %11969 = vmatprep.subr.bf16.mxu1 %v13300_v57  ;;  %v13368_v57 = vld [vmem:[#allocation10 + $0xe0] sm:$0xff]  }
 0x119   : > { %11948 = vmatpush3.bf16.msra.mxu0 %v13301_v58  ;;  %v13369_v58 = vld [vmem:[#allocation10 + $0x20] sm:$0xff]  }
 0x11a   : > { %11970 = vmatpush3.bf16.msra.mxu1 %v13302_v59  ;;  %11949 = vmatprep.subr.bf16.mxu0 %v13303_v60  ;;  %v13370_v59 = vld [vmem:[#allocation10 + $0xa0] sm:$0xff]   ;;  %v13371_v60 = vld [vmem:[#allocation10 + $0x58] sm:$0xff]  }
 0x11b   : > { %11971 = vmatprep.subr.bf16.mxu1 %v13304_v61  ;;  %v13372_v61 = vld [vmem:[#allocation10 + $0xd8] sm:$0xff]  }
 0x11d   : > { %11950 = vmatpush3.bf16.msra.mxu0 %v13305_v62  ;;  %v13373_v62 = vld [vmem:[#allocation10 + $0x18] sm:$0xff]  }
 0x11e   : > { %11972 = vmatpush3.bf16.msra.mxu1 %v13306_v63  ;;  %11951 = vmatprep.subr.bf16.mxu0 %v13307_v0  ;;  %v13374_v63 = vld [vmem:[#allocation10 + $0x98] sm:$0xff]   ;;  %v13375_v0 = vld [vmem:[#allocation10 + $0x50] sm:$0xff]  }
 0x11f   : > { %11973 = vmatprep.subr.bf16.mxu1 %v13308_v1  ;;  %v13376_v1 = vld [vmem:[#allocation10 + $0xd0] sm:$0xff]  }
 0x121   : > { %11952 = vmatpush3.bf16.msra.mxu0 %v13309_v2  ;;  %v13377_v2 = vld [vmem:[#allocation10 + $0x10] sm:$0xff]  }
 0x122   : > { %11974 = vmatpush3.bf16.msra.mxu1 %v13310_v3  ;;  %11981 = vmatprep.subr.bf16.mxu0 %v13317_v8  ;;  %v13378_v3 = vld [vmem:[#allocation10 + $0x90] sm:$0xff]   ;;  %v13383_v8 = vld [vmem:[#allocation10 + $0x40] sm:$0xff]  }
 0x123   : > { %12003 = vmatprep.subr.bf16.mxu1 %v13318_v9  ;;  %v13384_v9 = vld [vmem:[#allocation10 + $0xc0] sm:$0xff]  }
 0x124   : > { %1532 = vmatmul.mubr.bf16.vlgmr.msra.gmra.mxu0 %v13311_v4  ;;  %v13379_v4 = vld [vmem:[#allocation10 + $0x48] sm:$0xff]  }
 0x125   : > { %1573 = vmatmul.mubr.bf16.vlgmr.msra.gmra.mxu1 %v13314_v6  ;;  %11982 = vmatpush3.bf16.msra.mxu0 %v13319_v10  ;;  %v13381_v6 = vld [vmem:[#allocation10 + $0x8] sm:$0xff]   ;;  %v13385_v10 = vld [vmem:[#allocation10] sm:$0xff]  }
 0x126   : > { %12004 = vmatpush3.bf16.msra.mxu1 %v13320_v11  ;;  %11983 = vmatprep.subr.bf16.mxu0 %v13321_v12  ;;  %v13386_v11 = vld [vmem:[#allocation10 + $0x80] sm:$0xff]  }
 0x127   : > { %12005 = vmatprep.subr.bf16.mxu1 %v13322_v13  ;;  %1613 = vmatprep.mubr.bf16.mxu0 %v13351_v41  ;;  %v13387_v12 = vld [vmem:[%s14799_s22] ss:$16 sps:$4 sm:$0xff]   ;;  %v13389_v13 = vld [vmem:[%s14799_s22 + $0x4] ss:$16 sps:$4 sm:$0xff]   ;;  %v13418_v41 = vld [vmem:[#allocation13 + $0xc8] sm:$0xff]  }
 0x128   : > { %1654 = vmatprep.mubr.bf16.mxu1 %v13354_v43  ;;  %v13420_v43 = vld [vmem:[#allocation13 + $0x88] sm:$0xff]  }
 0x129   : > { %11984 = vmatpush3.bf16.msra.mxu0 %v13323_v14  ;;  %v13390_v14 = vld [vmem:[%s14799_s22 + $0x8] ss:$16 sps:$4 sm:$0xff]  }
 0x12a   : > { %12006 = vmatpush3.bf16.msra.mxu1 %v13324_v15  ;;  %11985 = vmatprep.subr.bf16.mxu0 %v13325_v16  ;;  %v13392_v15 = vld [vmem:[%s14799_s22 + $0xc] ss:$16 sps:$4 sm:$0xff]   ;;  %s14381_s22 = sshll.u32 %s14480_s9, 4  ;;  %s14382_s22 = int_to_ptr.vmem [resolvable:$false] %s14381_s22 }
 0x12b   : > { %12007 = vmatprep.subr.bf16.mxu1 %v13326_v17  ;;  %v13393_v16 = vld [vmem:[#allocation13 + $0x78] sm:$0xff]   ;;  %s14383_s13 = scalar_lea.vmem %s14382_s22, 512  ;;  %p14384_p7 = scmp.lt.s32.totalorder %s15290_s20, %s14382_s22 }
 0x12c   : > { %v13394_v17 = vld [vmem:[#allocation13 + $0xf8] sm:$0xff]   ;;  %p14385_p2 = scmp.lt.s32.totalorder %s14383_s13, %s14377_s26 }
 0x12d   : > { %11986 = vmatpush3.bf16.msra.mxu0 %v13327_v18  ;;  %v13395_v18 = vld [vmem:[#allocation13 + $0x38] sm:$0xff]  }
 0x12e   : > { %12008 = vmatpush3.bf16.msra.mxu1 %v13328_v19  ;;  %11987 = vmatprep.subr.bf16.mxu0 %v13329_v20  ;;  %v13396_v19 = vld [vmem:[#allocation13 + $0xb8] sm:$0xff]   ;;  %v13397_v20 = vld [vmem:[#allocation13 + $0x70] sm:$0xff]   ;;  %p14386_p12 = por %p14385_p2, %p14384_p7 }
 0x12f   : > { %12009 = vmatprep.subr.bf16.mxu1 %v13330_v21  ;;  %v13398_v21 = vld [vmem:[#allocation13 + $0xf0] sm:$0xff]  }
 0x130   : > { %p14387_p13 = pnand %p14386_p12, %p14380_p5 }
 0x131   : > { %11988 = vmatpush3.bf16.msra.mxu0 %v13331_v22  ;;  %v13399_v22 = vld [vmem:[#allocation13 + $0x30] sm:$0xff]  }
 0x132   : > { %12010 = vmatpush3.bf16.msra.mxu1 %v13332_v23  ;;  %11989 = vmatprep.subr.bf16.mxu0 %v13333_v24  ;;  %v13400_v23 = vld [vmem:[#allocation13 + $0xb0] sm:$0xff]   ;;  %v13401_v24 = vld [vmem:[#allocation13 + $0x68] sm:$0xff]  }
 0x133   : > { %12011 = vmatprep.subr.bf16.mxu1 %v13334_v25  ;;  %v13402_v25 = vld [vmem:[#allocation13 + $0xe8] sm:$0xff]  }
 0x135   : > { %11990 = vmatpush3.bf16.msra.mxu0 %v13335_v26  ;;  %v13403_v26 = vld [vmem:[#allocation13 + $0x28] sm:$0xff]  }
 0x136   : > { %12012 = vmatpush3.bf16.msra.mxu1 %v13336_v27  ;;  %11991 = vmatprep.subr.bf16.mxu0 %v13337_v28  ;;  %v13404_v27 = vld [vmem:[#allocation13 + $0xa8] sm:$0xff]   ;;  %v13405_v28 = vld [vmem:[#allocation13 + $0x60] sm:$0xff]  }
 0x137   : > { %12013 = vmatprep.subr.bf16.mxu1 %v13338_v29  ;;  %v13406_v29 = vld [vmem:[#allocation13 + $0xe0] sm:$0xff]  }
 0x139   : > { %11992 = vmatpush3.bf16.msra.mxu0 %v13339_v30  ;;  %v13407_v30 = vld [vmem:[#allocation13 + $0x20] sm:$0xff]  }
 0x13a   : > { %12014 = vmatpush3.bf16.msra.mxu1 %v13340_v31  ;;  %11993 = vmatprep.subr.bf16.mxu0 %v13341_v32  ;;  %v13408_v31 = vld [vmem:[#allocation13 + $0xa0] sm:$0xff]   ;;  %v13409_v32 = vld [vmem:[#allocation13 + $0x58] sm:$0xff]  }
 0x13b   : > { %12015 = vmatprep.subr.bf16.mxu1 %v13342_v33  ;;  %v13410_v33 = vld [vmem:[#allocation13 + $0xd8] sm:$0xff]  }
 0x13d   : > { %11994 = vmatpush3.bf16.msra.mxu0 %v13343_v34  ;;  %v13411_v34 = vld [vmem:[#allocation13 + $0x18] sm:$0xff]  }
 0x13e   : > { %12016 = vmatpush3.bf16.msra.mxu1 %v13344_v35  ;;  %11995 = vmatprep.subr.bf16.mxu0 %v13345_v36  ;;  %v13412_v35 = vld [vmem:[#allocation13 + $0x98] sm:$0xff]   ;;  %v13413_v36 = vld [vmem:[#allocation13 + $0x50] sm:$0xff]  }
 0x13f   : > { %12017 = vmatprep.subr.bf16.mxu1 %v13346_v37  ;;  %v13414_v37 = vld [vmem:[#allocation13 + $0xd0] sm:$0xff]  }
 0x141   : > { %11996 = vmatpush3.bf16.msra.mxu0 %v13347_v38  ;;  %v13415_v38 = vld [vmem:[#allocation13 + $0x10] sm:$0xff]  }
 0x142   : > { %12018 = vmatpush3.bf16.msra.mxu1 %v13348_v39  ;;  %12025 = vmatprep.subr.bf16.mxu0 %v13355_v44  ;;  %v13416_v39 = vld [vmem:[#allocation13 + $0x90] sm:$0xff]   ;;  %v13421_v44 = vld [vmem:[#allocation13 + $0x40] sm:$0xff]  }
 0x143   : > { %12047 = vmatprep.subr.bf16.mxu1 %v13356_v45  ;;  %v13422_v45 = vld [vmem:[#allocation13 + $0xc0] sm:$0xff]  }
 0x144   : > { %1614 = vmatmul.mubr.bf16.vlgmr.msra.gmra.mxu0 %v13349_v40  ;;  %v13417_v40 = vld [vmem:[#allocation13 + $0x48] sm:$0xff]  }
 0x145   : > { %1655 = vmatmul.mubr.bf16.vlgmr.msra.gmra.mxu1 %v13352_v42  ;;  %12026 = vmatpush3.bf16.msra.mxu0 %v13357_v46  ;;  %v13419_v42 = vld [vmem:[#allocation13 + $0x8] sm:$0xff]   ;;  %v13423_v46 = vld [vmem:[#allocation13] sm:$0xff]  }
 0x146   : > { %12048 = vmatpush3.bf16.msra.mxu1 %v13358_v47  ;;  %12027 = vmatprep.subr.bf16.mxu0 %v13359_v48  ;;  %v13424_v47 = vld [vmem:[#allocation13 + $0x80] sm:$0xff]  }
 0x147   : > { %12049 = vmatprep.subr.bf16.mxu1 %v13360_v49  ;;  %1907 = vmatprep.mubr.bf16.mxu0 %v13389_v13  ;;  %v1957_v48 = vld [vmem:[%s14815_s23] sm:$0xff]  ;;  %v13446_v13 = vld [vmem:[#allocation13 + $0x1d0] sm:$0xff]  }
 0x148   : > { %1948 = vmatprep.mubr.bf16.mxu1 %v13392_v15  ;;  %v1973_v49 = vld [vmem:[%s14815_s23 + $0x80] sm:$0xff]  ;;  %v13448_v15 = vld [vmem:[#allocation13 + $0x190] sm:$0xff]  }
 0x149   : > { %12028 = vmatpush3.bf16.msra.mxu0 %v13361_v50  ;;  %v1958_v50 = vld [vmem:[%s14815_s23 + $0x8] sm:$0xff] }
 0x14a   : > { %12050 = vmatpush3.bf16.msra.mxu1 %v13362_v51  ;;  %12029 = vmatprep.subr.bf16.mxu0 %v13363_v52  ;;  %v1974_v51 = vld [vmem:[%s14815_s23 + $0x88] sm:$0xff]  ;;  %v11017_v52 = vcombine.low %v1957_v48, %v1973_v49 }
 0x14b   : > { %12051 = vmatprep.subr.bf16.mxu1 %v13364_v53  ;;  %v11018_v53 = vcombine.high %v1957_v48, %v1973_v49  ;;  %v13473_v48 = vld [vmem:[#allocation13 + $0x258] sm:$0xff]  }
 0x14c   : > { %v13474_v49 = vld [vmem:[#allocation13 + $0x2d8] sm:$0xff]  }
 0x14d   : > { %12030 = vmatpush3.bf16.msra.mxu0 %v13365_v54  ;;  %v11019_v54 = vcombine.low %v1958_v50, %v1974_v51 }
 0x14e   : > { %12052 = vmatpush3.bf16.msra.mxu1 %v13366_v55  ;;  %12031 = vmatprep.subr.bf16.mxu0 %v13367_v56  ;;  %v11020_v55 = vcombine.high %v1958_v50, %v1974_v51  ;;  %v13425_v56 = vld [vmem:[#allocation13 + $0x178] sm:$0xff]  }
 0x14f   : > { %12053 = vmatprep.subr.bf16.mxu1 %v13368_v57  ;;  %v13426_v57 = vld [vmem:[#allocation13 + $0x1f8] sm:$0xff]  }
 0x150   : > { %v13475_v50 = vld [vmem:[#allocation13 + $0x218] sm:$0xff]  }
 0x151   : > { %12032 = vmatpush3.bf16.msra.mxu0 %v13369_v58  ;;  %v13427_v58 = vld [vmem:[#allocation13 + $0x138] sm:$0xff]  }
 0x152   : > { %12054 = vmatpush3.bf16.msra.mxu1 %v13370_v59  ;;  %12033 = vmatprep.subr.bf16.mxu0 %v13371_v60  ;;  %v13428_v59 = vld [vmem:[#allocation13 + $0x1b8] sm:$0xff]   ;;  %v13429_v60 = vld [vmem:[#allocation13 + $0x170] sm:$0xff]  }
 0x153   : > { %12055 = vmatprep.subr.bf16.mxu1 %v13372_v61  ;;  %v13430_v61 = vld [vmem:[#allocation13 + $0x1f0] sm:$0xff]   ;;  %v13476_v51 = vld [vmem:[#allocation13 + $0x298] sm:$0xff]  }
 0x155   : > { %12034 = vmatpush3.bf16.msra.mxu0 %v13373_v62  ;;  %v13431_v62 = vld [vmem:[#allocation13 + $0x130] sm:$0xff]  }
 0x156   : > { %12056 = vmatpush3.bf16.msra.mxu1 %v13374_v63  ;;  %12035 = vmatprep.subr.bf16.mxu0 %v13375_v0  ;;  %v13432_v63 = vld [vmem:[#allocation13 + $0x1b0] sm:$0xff]   ;;  %v13433_v0 = vld [vmem:[#allocation13 + $0x168] sm:$0xff]  }
 0x157   : > { %12057 = vmatprep.subr.bf16.mxu1 %v13376_v1  ;;  %v13434_v1 = vld [vmem:[#allocation13 + $0x1e8] sm:$0xff]  }
 0x159   : > { %12036 = vmatpush3.bf16.msra.mxu0 %v13377_v2  ;;  %v13435_v2 = vld [vmem:[#allocation13 + $0x128] sm:$0xff]  }
 0x15a   : > { %12058 = vmatpush3.bf16.msra.mxu1 %v13378_v3  ;;  %12037 = vmatprep.subr.bf16.mxu0 %v13379_v4  ;;  %v13436_v3 = vld [vmem:[#allocation13 + $0x1a8] sm:$0xff]   ;;  %v13437_v4 = vld [vmem:[#allocation13 + $0x160] sm:$0xff]  }
 0x15b   : > { %12059 = vmatprep.subr.bf16.mxu1 %v13380_v5  ;;  %v13438_v5 = vld [vmem:[#allocation13 + $0x1e0] sm:$0xff]  }
 0x15d   : > { %12038 = vmatpush3.bf16.msra.mxu0 %v13381_v6  ;;  %v13439_v6 = vld [vmem:[#allocation13 + $0x120] sm:$0xff]  }
 0x15e   : > { %12060 = vmatpush3.bf16.msra.mxu1 %v13382_v7  ;;  %12039 = vmatprep.subr.bf16.mxu0 %v13383_v8  ;;  %v13440_v7 = vld [vmem:[#allocation13 + $0x1a0] sm:$0xff]   ;;  %v13441_v8 = vld [vmem:[#allocation13 + $0x158] sm:$0xff]  }
 0x15f   : > { %12061 = vmatprep.subr.bf16.mxu1 %v13384_v9  ;;  %v13442_v9 = vld [vmem:[#allocation13 + $0x1d8] sm:$0xff]  }
 0x161   : > { %12040 = vmatpush3.bf16.msra.mxu0 %v13385_v10  ;;  %v13443_v10 = vld [vmem:[#allocation13 + $0x118] sm:$0xff]  }
 0x162   : > { %12062 = vmatpush3.bf16.msra.mxu1 %v13386_v11  ;;  %12069 = vmatprep.subr.bf16.mxu0 %v13393_v16  ;;  %v13444_v11 = vld [vmem:[#allocation13 + $0x198] sm:$0xff]   ;;  %v13449_v16 = vld [vmem:[#allocation13 + $0x148] sm:$0xff]  }
 0x163   : > { %12091 = vmatprep.subr.bf16.mxu1 %v13394_v17  ;;  %v13450_v17 = vld [vmem:[#allocation13 + $0x1c8] sm:$0xff]  }
 0x164   : > { %1908 = vmatmul.mubr.bf16.vlgmr.msra.gmra.mxu0 %v13387_v12  ;;  %v13445_v12 = vld [vmem:[#allocation13 + $0x150] sm:$0xff]  }
 0x165   : > { %1949 = vmatmul.mubr.bf16.vlgmr.msra.gmra.mxu1 %v13390_v14  ;;  %12070 = vmatpush3.bf16.msra.mxu0 %v13395_v18  ;;  %v13447_v14 = vld [vmem:[#allocation13 + $0x110] sm:$0xff]   ;;  %v13451_v18 = vld [vmem:[#allocation13 + $0x108] sm:$0xff]  }
 0x166   : > { %12092 = vmatpush3.bf16.msra.mxu1 %v13396_v19  ;;  %12071 = vmatprep.subr.bf16.mxu0 %v13397_v20  ;;  %v13452_v19 = vld [vmem:[#allocation13 + $0x188] sm:$0xff]   ;;  %v13453_v20 = vld [vmem:[#allocation13 + $0x140] sm:$0xff]  }
 0x167   : > { %12093 = vmatprep.subr.bf16.mxu1 %v13398_v21  ;;  %4229 = vmatprep.mubr.bf16.mxu0 %v11018_v53  ;;  %v13454_v21 = vld [vmem:[#allocation13 + $0x1c0] sm:$0xff]   ;;  %v13478_v53 = vld [vmem:[#allocation13 + $0x2d0] sm:$0xff]  }
 0x168   : > { %4270 = vmatprep.mubr.bf16.mxu1 %v11020_v55 }
 0x169   : > { %12072 = vmatpush3.bf16.msra.mxu0 %v13399_v22  ;;  %v13455_v22 = vld [vmem:[#allocation13 + $0x100] sm:$0xff]  }
 0x16a   : > { %12094 = vmatpush3.bf16.msra.mxu1 %v13400_v23  ;;  %12073 = vmatprep.subr.bf16.mxu0 %v13401_v24  ;;  %v13456_v23 = vld [vmem:[#allocation13 + $0x180] sm:$0xff]   ;;  %v1959_v24 = vld [vmem:[%s14815_s23 + $0x10] sm:$0xff] }
 0x16b   : > { %12095 = vmatprep.subr.bf16.mxu1 %v13402_v25  ;;  %v1975_v25 = vld [vmem:[%s14815_s23 + $0x90] sm:$0xff] }
 0x16d   : > { %12074 = vmatpush3.bf16.msra.mxu0 %v13403_v26  ;;  %v1960_v26 = vld [vmem:[%s14815_s23 + $0x18] sm:$0xff] }
 0x16e   : > { %12096 = vmatpush3.bf16.msra.mxu1 %v13404_v27  ;;  %12075 = vmatprep.subr.bf16.mxu0 %v13405_v28  ;;  %v11021_v27 = vcombine.low %v1959_v24, %v1975_v25  ;;  %v11022_v28 = vcombine.high %v1959_v24, %v1975_v25  ;;  %v13491_v24 = vld [vmem:[#allocation13 + $0x338] sm:$0xff]  }
 0x16f   : > { %12097 = vmatprep.subr.bf16.mxu1 %v13406_v29  ;;  %v1976_v29 = vld [vmem:[%s14815_s23 + $0x98] sm:$0xff] }
 0x170   : > { %v13492_v25 = vld [vmem:[#allocation13 + $0x3b8] sm:$0xff]  }
 0x171   : > { %12076 = vmatpush3.bf16.msra.mxu0 %v13407_v30  ;;  %v11023_v30 = vcombine.low %v1960_v26, %v1976_v29 }
 0x172   : > { %12098 = vmatpush3.bf16.msra.mxu1 %v13408_v31  ;;  %12077 = vmatprep.subr.bf16.mxu0 %v13409_v32  ;;  %v11024_v31 = vcombine.high %v1960_v26, %v1976_v29  ;;  %v13457_v32 = vld [vmem:[#allocation13 + $0x278] sm:$0xff]   ;;  %v13493_v26 = vld [vmem:[#allocation13 + $0x370] sm:$0xff]  }
 0x173   : > { %12099 = vmatprep.subr.bf16.mxu1 %v13410_v33  ;;  %v13458_v33 = vld [vmem:[#allocation13 + $0x2f8] sm:$0xff]   ;;  %v13496_v29 = vld [vmem:[#allocation13 + $0x3b0] sm:$0xff]  }
 0x175   : > { %12078 = vmatpush3.bf16.msra.mxu0 %v13411_v34  ;;  %v13459_v34 = vld [vmem:[#allocation13 + $0x238] sm:$0xff]  }
 0x176   : > { %12100 = vmatpush3.bf16.msra.mxu1 %v13412_v35  ;;  %12079 = vmatprep.subr.bf16.mxu0 %v13413_v36  ;;  %v13460_v35 = vld [vmem:[#allocation13 + $0x2b8] sm:$0xff]   ;;  %v13461_v36 = vld [vmem:[#allocation13 + $0x270] sm:$0xff]  }
 0x177   : > { %12101 = vmatprep.subr.bf16.mxu1 %v13414_v37  ;;  %v13462_v37 = vld [vmem:[#allocation13 + $0x2f0] sm:$0xff]  }
 0x179   : > { %12080 = vmatpush3.bf16.msra.mxu0 %v13415_v38  ;;  %v13463_v38 = vld [vmem:[#allocation13 + $0x230] sm:$0xff]  }
 0x17a   : > { %12102 = vmatpush3.bf16.msra.mxu1 %v13416_v39  ;;  %12081 = vmatprep.subr.bf16.mxu0 %v13417_v40  ;;  %v13464_v39 = vld [vmem:[#allocation13 + $0x2b0] sm:$0xff]   ;;  %v13465_v40 = vld [vmem:[#allocation13 + $0x268] sm:$0xff]  }
 0x17b   : > { %12103 = vmatprep.subr.bf16.mxu1 %v13418_v41  ;;  %v13466_v41 = vld [vmem:[#allocation13 + $0x2e8] sm:$0xff]  }
 0x17d   : > { %12082 = vmatpush3.bf16.msra.mxu0 %v13419_v42  ;;  %v13467_v42 = vld [vmem:[#allocation13 + $0x228] sm:$0xff]  }
 0x17e   : > { %12104 = vmatpush3.bf16.msra.mxu1 %v13420_v43  ;;  %12083 = vmatprep.subr.bf16.mxu0 %v13421_v44  ;;  %v13468_v43 = vld [vmem:[#allocation13 + $0x2a8] sm:$0xff]   ;;  %v13469_v44 = vld [vmem:[#allocation13 + $0x260] sm:$0xff]  }
 0x17f   : > { %12105 = vmatprep.subr.bf16.mxu1 %v13422_v45  ;;  %v13470_v45 = vld [vmem:[#allocation13 + $0x2e0] sm:$0xff]  }
 0x181   : > { %12084 = vmatpush3.bf16.msra.mxu0 %v13423_v46  ;;  %v13471_v46 = vld [vmem:[#allocation13 + $0x220] sm:$0xff]  }
 0x182   : > { %12106 = vmatpush3.bf16.msra.mxu1 %v13424_v47  ;;  %12113 = vmatprep.subr.bf16.mxu0 %v13425_v56  ;;  %v13472_v47 = vld [vmem:[#allocation13 + $0x2a0] sm:$0xff]   ;;  %v13480_v56 = vld [vmem:[#allocation13 + $0x290] sm:$0xff]  }
 0x183   : > { %12135 = vmatprep.subr.bf16.mxu1 %v13426_v57 }
 0x184   : > { %4230 = vmatmul.mubr.bf16.vlgmr.msra.gmra.mxu0 %v11017_v52  ;;  %v13477_v52 = vld [vmem:[#allocation13 + $0x250] sm:$0xff]  }
 0x185   : > { %4271 = vmatmul.mubr.bf16.vlgmr.msra.gmra.mxu1 %v11019_v54  ;;  %12114 = vmatpush3.bf16.msra.mxu0 %v13427_v58  ;;  %v13479_v54 = vld [vmem:[#allocation13 + $0x210] sm:$0xff]   ;;  %v13481_v58 = vld [vmem:[#allocation13 + $0x248] sm:$0xff]  }
 0x186   : > { %12136 = vmatpush3.bf16.msra.mxu1 %v13428_v59  ;;  %12115 = vmatprep.subr.bf16.mxu0 %v13429_v60  ;;  %v13482_v60 = vld [vmem:[#allocation13 + $0x2c8] sm:$0xff]  }
 0x187   : > { %12137 = vmatprep.subr.bf16.mxu1 %v13430_v61  ;;  %4311 = vmatprep.mubr.bf16.mxu0 %v11022_v28  ;;  %v13495_v28 = vld [vmem:[#allocation13 + $0x330] sm:$0xff]  }
 0x188   : > { %4352 = vmatprep.mubr.bf16.mxu1 %v11024_v31  ;;  %v13498_v31 = vld [vmem:[#allocation13 + $0x3e8] sm:$0xff]  }
 0x189   : > { %12116 = vmatpush3.bf16.msra.mxu0 %v13431_v62 }
 0x18a   : > { %12138 = vmatpush3.bf16.msra.mxu1 %v13432_v63  ;;  %12117 = vmatprep.subr.bf16.mxu0 %v13433_v0  ;;  %v13483_v63 = vld [vmem:[#allocation13 + $0x208] sm:$0xff]  }
 0x18b   : > { %12139 = vmatprep.subr.bf16.mxu1 %v13434_v1 }
 0x18d   : > { %12118 = vmatpush3.bf16.msra.mxu0 %v13435_v2  ;;  %v13484_v2 = vld [vmem:[#allocation13 + $0x288] sm:$0xff]  }
 0x18e   : > { %12140 = vmatpush3.bf16.msra.mxu1 %v13436_v3  ;;  %12119 = vmatprep.subr.bf16.mxu0 %v13437_v4  ;;  %v13485_v4 = vld [vmem:[#allocation13 + $0x240] sm:$0xff]  }
 0x18f   : > { %12141 = vmatprep.subr.bf16.mxu1 %v13438_v5 }
 0x191   : > { %12120 = vmatpush3.bf16.msra.mxu0 %v13439_v6 }
 0x192   : > { %12142 = vmatpush3.bf16.msra.mxu1 %v13440_v7  ;;  %12121 = vmatprep.subr.bf16.mxu0 %v13441_v8  ;;  %v13486_v7 = vld [vmem:[#allocation13 + $0x2c0] sm:$0xff]  }
 0x193   : > { %12143 = vmatprep.subr.bf16.mxu1 %v13442_v9 }
 0x195   : > { %12122 = vmatpush3.bf16.msra.mxu0 %v13443_v10  ;;  %v13487_v10 = vld [vmem:[#allocation13 + $0x200] sm:$0xff]  }
 0x196   : > { %12144 = vmatpush3.bf16.msra.mxu1 %v13444_v11  ;;  %12123 = vmatprep.subr.bf16.mxu0 %v13445_v12  ;;  %v13488_v12 = vld [vmem:[#allocation13 + $0x280] sm:$0xff]  }
 0x197   : > { %12145 = vmatprep.subr.bf16.mxu1 %v13446_v13  ;;  %v1961_v13 = vld [vmem:[%s14815_s23 + $0x20] sm:$0xff] }
 0x199   : > { %12124 = vmatpush3.bf16.msra.mxu0 %v13447_v14  ;;  %v1977_v14 = vld [vmem:[%s14815_s23 + $0xa0] sm:$0xff] }
 0x19a   : > { %12146 = vmatpush3.bf16.msra.mxu1 %v13448_v15  ;;  %12125 = vmatprep.subr.bf16.mxu0 %v13449_v16  ;;  %v11025_v15 = vcombine.low %v1961_v13, %v1977_v14  ;;  %v11026_v16 = vcombine.high %v1961_v13, %v1977_v14  ;;  %v13521_v13 = vld [vmem:[#allocation13 + $0x478] sm:$0xff]  }
 0x19b   : > { %12147 = vmatprep.subr.bf16.mxu1 %v13450_v17  ;;  %v1962_v17 = vld [vmem:[%s14815_s23 + $0x28] sm:$0xff]  ;;  %v13522_v14 = vld [vmem:[#allocation13 + $0x4f8] sm:$0xff]  }
 0x19d   : > { %12126 = vmatpush3.bf16.msra.mxu0 %v13451_v18  ;;  %v1978_v18 = vld [vmem:[%s14815_s23 + $0xa8] sm:$0xff] }
 0x19e   : > { %12148 = vmatpush3.bf16.msra.mxu1 %v13452_v19  ;;  %12127 = vmatprep.subr.bf16.mxu0 %v13453_v20  ;;  %v11027_v20 = vcombine.low %v1962_v17, %v1978_v18 }
 0x19f   : > { %12149 = vmatprep.subr.bf16.mxu1 %v13454_v21  ;;  %v11028_v21 = vcombine.high %v1962_v17, %v1978_v18  ;;  %v13524_v17 = vld [vmem:[#allocation13 + $0x4b8] sm:$0xff]   ;;  %v13525_v18 = vld [vmem:[#allocation13 + $0x470] sm:$0xff]  }
 0x1a1   : > { %12128 = vmatpush3.bf16.msra.mxu0 %v13455_v22  ;;  %v13489_v22 = vld [vmem:[#allocation13 + $0x378] sm:$0xff]  }
 0x1a2   : > { %12150 = vmatpush3.bf16.msra.mxu1 %v13456_v23  ;;  %12157 = vmatprep.subr.bf16.mxu0 %v13457_v32  ;;  %v13490_v23 = vld [vmem:[#allocation13 + $0x3f8] sm:$0xff]   ;;  %v13499_v32 = vld [vmem:[#allocation13 + $0x328] sm:$0xff]  }
 0x1a3   : > { %12179 = vmatprep.subr.bf16.mxu1 %v13458_v33  ;;  %v13500_v33 = vld [vmem:[#allocation13 + $0x3a8] sm:$0xff]  }
 0x1a4   : > { %4312 = vmatmul.mubr.bf16.vlgmr.msra.gmra.mxu0 %v11021_v27  ;;  %v13494_v27 = vld [vmem:[#allocation13 + $0x3f0] sm:$0xff]  }
 0x1a5   : > { %4353 = vmatmul.mubr.bf16.vlgmr.msra.gmra.mxu1 %v11023_v30  ;;  %12158 = vmatpush3.bf16.msra.mxu0 %v13459_v34  ;;  %v13497_v30 = vld [vmem:[#allocation13 + $0x368] sm:$0xff]   ;;  %v13501_v34 = vld [vmem:[#allocation13 + $0x360] sm:$0xff]  }
 0x1a6   : > { %12180 = vmatpush3.bf16.msra.mxu1 %v13460_v35  ;;  %12159 = vmatprep.subr.bf16.mxu0 %v13461_v36  ;;  %v13502_v35 = vld [vmem:[#allocation13 + $0x3e0] sm:$0xff]  }
 0x1a7   : > { %12181 = vmatprep.subr.bf16.mxu1 %v13462_v37  ;;  %4393 = vmatprep.mubr.bf16.mxu0 %v11026_v16  ;;  %v13503_v36 = vld [vmem:[#allocation13 + $0x320] sm:$0xff]   ;;  %v13523_v16 = vld [vmem:[#allocation13 + $0x438] sm:$0xff]  }
 0x1a8   : > { %4434 = vmatprep.mubr.bf16.mxu1 %v11028_v21  ;;  %v13504_v37 = vld [vmem:[#allocation13 + $0x3a0] sm:$0xff]   ;;  %v13528_v21 = vld [vmem:[#allocation13 + $0x4b0] sm:$0xff]  }
 0x1a9   : > { %12160 = vmatpush3.bf16.msra.mxu0 %v13463_v38  ;;  %v13505_v38 = vld [vmem:[#allocation13 + $0x358] sm:$0xff]  }
 0x1aa   : > { %12182 = vmatpush3.bf16.msra.mxu1 %v13464_v39  ;;  %12161 = vmatprep.subr.bf16.mxu0 %v13465_v40  ;;  %v13506_v39 = vld [vmem:[#allocation13 + $0x3d8] sm:$0xff]  }
 0x1ab   : > { %12183 = vmatprep.subr.bf16.mxu1 %v13466_v41  ;;  %v13507_v40 = vld [vmem:[#allocation13 + $0x318] sm:$0xff]  }
 0x1ac   : > { %v13508_v41 = vld [vmem:[#allocation13 + $0x398] sm:$0xff]  }
 0x1ad   : > { %12162 = vmatpush3.bf16.msra.mxu0 %v13467_v42  ;;  %v13509_v42 = vld [vmem:[#allocation13 + $0x350] sm:$0xff]  }
 0x1ae   : > { %12184 = vmatpush3.bf16.msra.mxu1 %v13468_v43  ;;  %12163 = vmatprep.subr.bf16.mxu0 %v13469_v44  ;;  %v13510_v43 = vld [vmem:[#allocation13 + $0x3d0] sm:$0xff]  }
 0x1af   : > { %12185 = vmatprep.subr.bf16.mxu1 %v13470_v45  ;;  %v13511_v44 = vld [vmem:[#allocation13 + $0x310] sm:$0xff]  }
 0x1b0   : > { %v13512_v45 = vld [vmem:[#allocation13 + $0x390] sm:$0xff]  }
 0x1b1   : > { %12164 = vmatpush3.bf16.msra.mxu0 %v13471_v46 }
 0x1b2   : > { %12186 = vmatpush3.bf16.msra.mxu1 %v13472_v47  ;;  %12165 = vmatprep.subr.bf16.mxu0 %v13473_v48  ;;  %v13513_v47 = vld [vmem:[#allocation13 + $0x348] sm:$0xff]  }
 0x1b3   : > { %12187 = vmatprep.subr.bf16.mxu1 %v13474_v49  ;;  %v13514_v48 = vld [vmem:[#allocation13 + $0x3c8] sm:$0xff]  }
 0x1b5   : > { %12166 = vmatpush3.bf16.msra.mxu0 %v13475_v50 }
 0x1b6   : > { %12188 = vmatpush3.bf16.msra.mxu1 %v13476_v51  ;;  %12167 = vmatprep.subr.bf16.mxu0 %v13477_v52  ;;  %v13515_v51 = vld [vmem:[#allocation13 + $0x308] sm:$0xff]  }
 0x1b7   : > { %12189 = vmatprep.subr.bf16.mxu1 %v13478_v53  ;;  %v13516_v53 = vld [vmem:[#allocation13 + $0x388] sm:$0xff]  }
 0x1b9   : > { %12168 = vmatpush3.bf16.msra.mxu0 %v13479_v54 }
 0x1ba   : > { %12190 = vmatpush3.bf16.msra.mxu1 %v13480_v56  ;;  %12169 = vmatprep.subr.bf16.mxu0 %v13481_v58  ;;  %v13517_v56 = vld [vmem:[#allocation13 + $0x340] sm:$0xff]  }
 0x1bb   : > { %12191 = vmatprep.subr.bf16.mxu1 %v13482_v60 }
 0x1bd   : > { %12170 = vmatpush3.bf16.msra.mxu0 %v13483_v63 }
 0x1be   : > { %12192 = vmatpush3.bf16.msra.mxu1 %v13484_v2  ;;  %12171 = vmatprep.subr.bf16.mxu0 %v13485_v4  ;;  %v1963_v2 = vld [vmem:[%s14815_s23 + $0x30] sm:$0xff] }
 0x1bf   : > { %12193 = vmatprep.subr.bf16.mxu1 %v13486_v7  ;;  %v1979_v4 = vld [vmem:[%s14815_s23 + $0xb0] sm:$0xff] }
 0x1c1   : > { %12172 = vmatpush3.bf16.msra.mxu0 %v13487_v10  ;;  %v11030_v10 = vcombine.high %v1963_v2, %v1979_v4 }
 0x1c2   : > { %12194 = vmatpush3.bf16.msra.mxu1 %v13488_v12  ;;  %12201 = vmatprep.subr.bf16.mxu0 %v13489_v22  ;;  %v13529_v22 = vld [vmem:[#allocation13 + $0x468] sm:$0xff]  }
 0x1c3   : > { %12223 = vmatprep.subr.bf16.mxu1 %v13490_v23  ;;  %v13530_v23 = vld [vmem:[#allocation13 + $0x4e8] sm:$0xff]  }
 0x1c4   : > { %v11909_v55 = vpop.f32.mrf.mxu0  ;;  %4394 = vmatmul.mubr.bf16.vlgmr.msra.gmra.mxu0 %v11025_v15 }
 0x1c5   : > { %v11931_v57 = vpop.f32.mrf.mxu1  ;;  %4435 = vmatmul.mubr.bf16.vlgmr.msra.gmra.mxu1 %v11027_v20  ;;  %12202 = vmatpush3.bf16.msra.mxu0 %v13491_v24  ;;  %v13527_v20 = vld [vmem:[#allocation13 + $0x430] sm:$0xff]   ;;  %v13531_v24 = vld [vmem:[#allocation13 + $0x428] sm:$0xff]  }
 0x1c6   : > { %v11910_v59 = vpop.f32.mrf.mxu0  ;;  %12224 = vmatpush3.bf16.msra.mxu1 %v13492_v25  ;;  %12203 = vmatprep.subr.bf16.mxu0 %v13493_v26  ;;  %v13532_v25 = vld [vmem:[#allocation13 + $0x4a8] sm:$0xff]   ;;  %v13533_v26 = vld [vmem:[#allocation13 + $0x460] sm:$0xff]  }
 0x1c7   : > { %v11911_v61 = vadd.f32 %v11910_v59, %v11909_v55  ;;  %v11932_v62 = vpop.f32.mrf.mxu1  ;;  %12225 = vmatprep.subr.bf16.mxu1 %v13494_v27  ;;  %v13518_v59 = vld [vmem:[#allocation13 + $0x3c0] sm:$0xff]   ;;  %4475 = vmatprep.mubr.bf16.mxu0 %v11030_v10  ;;  %v13557_v10 = vld [vmem:[#allocation13 + $0x570] sm:$0xff]  }
 0x1c8   : > { %v11933_v0 = vadd.f32 %v11932_v62, %v11931_v57  ;;  %v11912_v1 = vpop.f32.mrf.mxu0  ;;  %v13519_v62 = vld [vmem:[#allocation13 + $0x300] sm:$0xff]  }
 0x1c9   : > { %v11934_v3 = vpop.f32.mrf.mxu1  ;;  %12204 = vmatpush3.bf16.msra.mxu0 %v13495_v28  ;;  %v13534_v27 = vld [vmem:[#allocation13 + $0x4e0] sm:$0xff]  }
 0x1ca   : > { %v14859_v5 = vadd.f32 %v11933_v0, %v11911_v61  ;;  %v11913_v6 = vpop.f32.mrf.mxu0  ;;  %12226 = vmatpush3.bf16.msra.mxu1 %v13496_v29  ;;  %12205 = vmatprep.subr.bf16.mxu0 %v13497_v30  ;;  %v13535_v28 = vld [vmem:[#allocation13 + $0x420] sm:$0xff]   ;;  %v13537_v30 = vld [vmem:[#allocation13 + $0x458] sm:$0xff]  }
 0x1cb   : > { %v11914_v8 = vadd.f32 %v11913_v6, %v11912_v1  ;;  %v11935_v9 = vpop.f32.mrf.mxu1  ;;  %12227 = vmatprep.subr.bf16.mxu1 %v13498_v31  ;;  %v13520_v1 = vld [vmem:[#allocation13 + $0x380] sm:$0xff]   ;;  %v1964_v6 = vld [vmem:[%s14815_s23 + $0x38] sm:$0xff] }
 0x1cc   : > { %v11936_v11 = vadd.f32 %v11935_v9, %v11934_v3  ;;  %v11029_v9 = vcombine.low %v1963_v2, %v1979_v4  ;;  %v13536_v29 = vld [vmem:[#allocation13 + $0x4a0] sm:$0xff]   ;;  %v13538_v31 = vld [vmem:[#allocation13 + $0x4d8] sm:$0xff]  }
 0x1cd   : > { %12206 = vmatpush3.bf16.msra.mxu0 %v13499_v32  ;;  %v13539_v32 = vld [vmem:[#allocation13 + $0x418] sm:$0xff]  }
 0x1ce   : > { %v14865_v19 = vadd.f32 %v11936_v11, %v11914_v8  ;;  %12228 = vmatpush3.bf16.msra.mxu1 %v13500_v33  ;;  %12207 = vmatprep.subr.bf16.mxu0 %v13501_v34  ;;  %v13540_v33 = vld [vmem:[#allocation13 + $0x498] sm:$0xff]   ;;  %v13541_v34 = vld [vmem:[#allocation13 + $0x450] sm:$0xff]  }
 0x1cf   : > { %12229 = vmatprep.subr.bf16.mxu1 %v13502_v35  ;;  %v13542_v35 = vld [vmem:[#allocation13 + $0x4d0] sm:$0xff]  }
 0x1d1   : > { %12208 = vmatpush3.bf16.msra.mxu0 %v13503_v36  ;;  %v13543_v36 = vld [vmem:[#allocation13 + $0x410] sm:$0xff]  }
 0x1d2   : > { %12230 = vmatpush3.bf16.msra.mxu1 %v13504_v37  ;;  %12209 = vmatprep.subr.bf16.mxu0 %v13505_v38  ;;  %v13544_v37 = vld [vmem:[#allocation13 + $0x490] sm:$0xff]   ;;  %v13545_v38 = vld [vmem:[#allocation13 + $0x448] sm:$0xff]  }
 0x1d3   : > { %12231 = vmatprep.subr.bf16.mxu1 %v13506_v39  ;;  %v13546_v39 = vld [vmem:[#allocation13 + $0x4c8] sm:$0xff]  }
 0x1d5   : > { %12210 = vmatpush3.bf16.msra.mxu0 %v13507_v40 }
 0x1d6   : > { %12232 = vmatpush3.bf16.msra.mxu1 %v13508_v41  ;;  %12211 = vmatprep.subr.bf16.mxu0 %v13509_v42  ;;  %v13547_v41 = vld [vmem:[#allocation13 + $0x408] sm:$0xff]  }
 0x1d7   : > { %12233 = vmatprep.subr.bf16.mxu1 %v13510_v43  ;;  %v13548_v43 = vld [vmem:[#allocation13 + $0x488] sm:$0xff]  }
 0x1d9   : > { %12212 = vmatpush3.bf16.msra.mxu0 %v13511_v44 }
 0x1da   : > { %12234 = vmatpush3.bf16.msra.mxu1 %v13512_v45  ;;  %12213 = vmatprep.subr.bf16.mxu0 %v13513_v47  ;;  %v13549_v45 = vld [vmem:[#allocation13 + $0x440] sm:$0xff]  }
 0x1db   : > { %12235 = vmatprep.subr.bf16.mxu1 %v13514_v48  ;;  %v13550_v48 = vld [vmem:[#allocation13 + $0x4c0] sm:$0xff]  }
 0x1dd   : > { %12214 = vmatpush3.bf16.msra.mxu0 %v13515_v51  ;;  %v13551_v51 = vld [vmem:[#allocation13 + $0x400] sm:$0xff]  }
 0x1de   : > { %12236 = vmatpush3.bf16.msra.mxu1 %v13516_v53  ;;  %12215 = vmatprep.subr.bf16.mxu0 %v13517_v56  ;;  %v1965_v56 = vld [vmem:[%s14815_s23 + $0x40] sm:$0xff] }
 0x1df   : > { %12237 = vmatprep.subr.bf16.mxu1 %v13518_v59 }
 0x1e1   : > { %12216 = vmatpush3.bf16.msra.mxu0 %v13519_v62 }
 0x1e2   : > { %12238 = vmatpush3.bf16.msra.mxu1 %v13520_v1  ;;  %12245 = vmatprep.subr.bf16.mxu0 %v13521_v13  ;;  %v1982_v1 = vld [vmem:[%s14815_s23 + $0xc8] sm:$0xff]  ;;  %v13560_v13 = vld [vmem:[#allocation13 + $0x5b0] sm:$0xff]  }
 0x1e3   : > { %12267 = vmatprep.subr.bf16.mxu1 %v13522_v14  ;;  %v13561_v14 = vld [vmem:[#allocation13 + $0x568] sm:$0xff]  }
 0x1e4   : > { %v11953_v46 = vpop.f32.mrf.mxu0  ;;  %4476 = vmatmul.mubr.bf16.vlgmr.msra.gmra.mxu0 %v11029_v9  ;;  %v13556_v9 = vld [vmem:[#allocation13 + $0x5b8] sm:$0xff]  }
 0x1e5   : > { %v11975_v49 = vpop.f32.mrf.mxu1  ;;  %12246 = vmatpush3.bf16.msra.mxu0 %v13523_v16  ;;  %v13563_v16 = vld [vmem:[#allocation13 + $0x528] sm:$0xff]  }
 0x1e6   : > { %v11954_v50 = vpop.f32.mrf.mxu0  ;;  %12247 = vmatprep.subr.bf16.mxu0 %v13525_v18  ;;  %v13565_v18 = vld [vmem:[#allocation13 + $0x560] sm:$0xff]  }
 0x1e7   : > { %v11955_v52 = vadd.f32 %v11954_v50, %v11953_v46  ;;  %v11976_v54 = vpop.f32.mrf.mxu1 }
 0x1e8   : > { %v11956_v55 = vpop.f32.mrf.mxu0  ;;  %v11977_v58 = vadd.f32 %v11976_v54, %v11975_v49  ;;  %v13552_v54 = vld [vmem:[#allocation13 + $0x480] sm:$0xff]  }
 0x1e9   : > { %v1534_v57 = vadd.f32 %v11955_v52, %v14859_v5  ;;  %v11978_v60 = vpop.f32.mrf.mxu1  ;;  %v1980_v5 = vld [vmem:[%s14815_s23 + $0xb8] sm:$0xff]  ;;  %12248 = vmatpush3.bf16.msra.mxu0 %v13527_v20  ;;  %v13567_v20 = vld [vmem:[#allocation13 + $0x520] sm:$0xff]  }
 0x1ea   : > { %v11957_v61 = vpop.f32.mrf.mxu0  ;;  %v11031_v11 = vcombine.low %v1964_v6, %v1980_v5  ;;  %v11032_v12 = vcombine.high %v1964_v6, %v1980_v5  ;;  %12249 = vmatprep.subr.bf16.mxu0 %v13529_v22  ;;  %v13554_v5 = vld [vmem:[#allocation13 + $0x5f8] sm:$0xff]  }
 0x1eb   : > { %v14868_v63 = vadd.f32 %v11977_v58, %v1534_v57  ;;  %v11958_v0 = vadd.f32 %v11957_v61, %v11956_v55  ;;  %v11979_v3 = vpop.f32.mrf.mxu1  ;;  %v1981_v57 = vld [vmem:[%s14815_s23 + $0xc0] sm:$0xff]  ;;  %v1966_v58 = vld [vmem:[%s14815_s23 + $0x48] sm:$0xff]  ;;  %v13569_v22 = vld [vmem:[#allocation13 + $0x558] sm:$0xff]  }
 0x1ec   : > { %v11980_v8 = vadd.f32 %v11979_v3, %v11978_v60  ;;  %4516 = vmatprep.mubr.bf16.mxu1 %v11032_v12  ;;  %v11033_v62 = vcombine.low %v1965_v56, %v1981_v57  ;;  %v11035_v3 = vcombine.low %v1966_v58, %v1982_v1  ;;  %v11036_v4 = vcombine.high %v1966_v58, %v1982_v1  ;;  %v13559_v12 = vld [vmem:[#allocation13 + $0x530] sm:$0xff]   ;;  %v13588_v1 = vld [vmem:[#allocation13 + $0x6b8] sm:$0xff]  }
 0x1ed   : > { %v1537_v7 = vadd.f32 %v11958_v0, %v14865_v19  ;;  %4517 = vmatmul.mubr.bf16.vlgmr.msra.gmra.mxu1 %v11031_v11  ;;  %v13526_v19 = vld [vmem:[#allocation13 + $0x4f0] sm:$0xff]   ;;  %12250 = vmatpush3.bf16.msra.mxu0 %v13531_v24  ;;  %v11034_v0 = vcombine.high %v1965_v56, %v1981_v57  ;;  %v13571_v24 = vld [vmem:[#allocation13 + $0x518] sm:$0xff]  }
 0x1ee   : > { %12268 = vmatpush3.bf16.msra.mxu1 %v13524_v17  ;;  %12251 = vmatprep.subr.bf16.mxu0 %v13533_v26  ;;  %v13558_v11 = vld [vmem:[#allocation13 + $0x5f0] sm:$0xff]   ;;  %v13564_v17 = vld [vmem:[#allocation13 + $0x5a8] sm:$0xff]   ;;  %v13585_v56 = vld [vmem:[#allocation13 + $0x678] sm:$0xff]  }
 0x1ef   : > { %v14875_v15 = vadd.f32 %v11980_v8, %v1537_v7  ;;  %12269 = vmatprep.subr.bf16.mxu1 %v13526_v19  ;;  %4557 = vmatprep.mubr.bf16.mxu0 %v11034_v0  ;;  %v13555_v7 = vld [vmem:[#allocation13 + $0x538] sm:$0xff]   ;;  %v13566_v19 = vld [vmem:[#allocation13 + $0x5e0] sm:$0xff]   ;;  %v13573_v26 = vld [vmem:[#allocation13 + $0x550] sm:$0xff]  }
 0x1f0   : > { %4598 = vmatprep.mubr.bf16.mxu1 %v11036_v4  ;;  %v13590_v4 = vld [vmem:[#allocation13 + $0x6f0] sm:$0xff]  }
 0x1f1   : > { %12252 = vmatpush3.bf16.msra.mxu0 %v13535_v28  ;;  %v13575_v28 = vld [vmem:[#allocation13 + $0x510] sm:$0xff]  }
 0x1f2   : > { %12270 = vmatpush3.bf16.msra.mxu1 %v13528_v21  ;;  %12253 = vmatprep.subr.bf16.mxu0 %v13537_v30  ;;  %v13568_v21 = vld [vmem:[#allocation13 + $0x5a0] sm:$0xff]   ;;  %v13577_v30 = vld [vmem:[#allocation13 + $0x548] sm:$0xff]  }
 0x1f3   : > { %12271 = vmatprep.subr.bf16.mxu1 %v13530_v23  ;;  %v13570_v23 = vld [vmem:[#allocation13 + $0x5d8] sm:$0xff]  }
 0x1f5   : > { %12254 = vmatpush3.bf16.msra.mxu0 %v13539_v32  ;;  %v13579_v32 = vld [vmem:[#allocation13 + $0x508] sm:$0xff]  }
 0x1f6   : > { %12272 = vmatpush3.bf16.msra.mxu1 %v13532_v25  ;;  %12255 = vmatprep.subr.bf16.mxu0 %v13541_v34  ;;  %v13572_v25 = vld [vmem:[#allocation13 + $0x598] sm:$0xff]   ;;  %v13580_v34 = vld [vmem:[#allocation13 + $0x588] sm:$0xff]  }
 0x1f7   : > { %12273 = vmatprep.subr.bf16.mxu1 %v13534_v27  ;;  %v13574_v27 = vld [vmem:[#allocation13 + $0x5d0] sm:$0xff]  }
 0x1f9   : > { %12256 = vmatpush3.bf16.msra.mxu0 %v13543_v36  ;;  %v13581_v36 = vld [vmem:[#allocation13 + $0x540] sm:$0xff]  }
 0x1fa   : > { %12274 = vmatpush3.bf16.msra.mxu1 %v13536_v29  ;;  %12257 = vmatprep.subr.bf16.mxu0 %v13545_v38  ;;  %v13576_v29 = vld [vmem:[#allocation13 + $0x590] sm:$0xff]   ;;  %v13582_v38 = vld [vmem:[#allocation13 + $0x5c0] sm:$0xff]  }
 0x1fb   : > { %12275 = vmatprep.subr.bf16.mxu1 %v13538_v31  ;;  %v13578_v31 = vld [vmem:[#allocation13 + $0x5c8] sm:$0xff]  }
 0x1fd   : > { %12258 = vmatpush3.bf16.msra.mxu0 %v13547_v41  ;;  %v13583_v41 = vld [vmem:[#allocation13 + $0x500] sm:$0xff]  }
 0x1fe   : > { %12276 = vmatpush3.bf16.msra.mxu1 %v13540_v33  ;;  %12259 = vmatprep.subr.bf16.mxu0 %v13549_v45  ;;  %v1967_v45 = vld [vmem:[%s14815_s23 + $0x50] sm:$0xff] }
 0x1ff   : > { %12277 = vmatprep.subr.bf16.mxu1 %v13542_v35 }
 0x201   : > { %12260 = vmatpush3.bf16.msra.mxu0 %v13551_v51  ;;  %v1968_v51 = vld [vmem:[%s14815_s23 + $0x58] sm:$0xff] }
 0x202   : > { %12278 = vmatpush3.bf16.msra.mxu1 %v13544_v37 }
 0x203   : > { %12279 = vmatprep.subr.bf16.mxu1 %v13546_v39 }
 0x204   : > { %v11997_v40 = vpop.f32.mrf.mxu0  ;;  %4558 = vmatmul.mubr.bf16.vlgmr.msra.gmra.mxu0 %v11033_v62 }
 0x205   : > { %v12019_v42 = vpop.f32.mrf.mxu1 }
 0x206   : > { %v11998_v44 = vpop.f32.mrf.mxu0  ;;  %12280 = vmatpush3.bf16.msra.mxu1 %v13548_v43 }
 0x207   : > { %v11999_v46 = vadd.f32 %v11998_v44, %v11997_v40  ;;  %v12020_v47 = vpop.f32.mrf.mxu1  ;;  %12281 = vmatprep.subr.bf16.mxu1 %v13550_v48  ;;  %v13584_v44 = vld [vmem:[#allocation13 + $0x580] sm:$0xff]  }
 0x208   : > { %v12021_v49 = vadd.f32 %v12020_v47, %v12019_v42  ;;  %v12000_v50 = vpop.f32.mrf.mxu0 }
 0x209   : > { %v1616_v52 = vadd.f32 %v11999_v46, %v14868_v63  ;;  %v12022_v53 = vpop.f32.mrf.mxu1  ;;  %v13553_v63 = vld [vmem:[#allocation13 + $0x578] sm:$0xff]   ;;  %v1983_v46 = vld [vmem:[%s14815_s23 + $0xd0] sm:$0xff] }
 0x20a   : > { %v12001_v55 = vpop.f32.mrf.mxu0  ;;  %12282 = vmatpush3.bf16.msra.mxu1 %v13552_v54  ;;  %12289 = vmatprep.subr.bf16.mxu0 %v13553_v63  ;;  %v13591_v63 = vld [vmem:[#allocation13 + $0x630] sm:$0xff]  }
 0x20b   : > { %v14881_v59 = vadd.f32 %v12021_v49, %v1616_v52  ;;  %v12002_v60 = vadd.f32 %v12001_v55, %v12000_v50  ;;  %v12023_v61 = vpop.f32.mrf.mxu1  ;;  %12311 = vmatprep.subr.bf16.mxu1 %v13554_v5  ;;  %12290 = vmatpush3.bf16.msra.mxu0 %v13555_v7  ;;  %v11037_v49 = vcombine.low %v1967_v45, %v1983_v46  ;;  %v1984_v52 = vld [vmem:[%s14815_s23 + $0xd8] sm:$0xff]  ;;  %v13593_v5 = vld [vmem:[#allocation13 + $0x668] sm:$0xff]  }
 0x20c   : > { %v12024_v2 = vadd.f32 %v12023_v61, %v12022_v53  ;;  %12291 = vmatprep.subr.bf16.mxu0 %v13557_v10  ;;  %v11038_v50 = vcombine.high %v1967_v45, %v1983_v46  ;;  %v11039_v54 = vcombine.low %v1968_v51, %v1984_v52  ;;  %v11040_v55 = vcombine.high %v1968_v51, %v1984_v52  ;;  %v13586_v61 = vld [vmem:[#allocation13 + $0x6f8] sm:$0xff]   ;;  %v13594_v7 = vld [vmem:[#allocation13 + $0x6e8] sm:$0xff]   ;;  %v13597_v10 = vld [vmem:[#allocation13 + $0x660] sm:$0xff]  }
 0x20d   : > { %v1619_v6 = vadd.f32 %v12002_v60, %v14875_v15  ;;  %4599 = vmatmul.mubr.bf16.vlgmr.msra.gmra.mxu1 %v11035_v3  ;;  %v13562_v15 = vld [vmem:[#allocation13 + $0x5e8] sm:$0xff]   ;;  %v13617_v46 = vld [vmem:[#allocation13 + $0x778] sm:$0xff]  }
 0x20e   : > { %12312 = vmatpush3.bf16.msra.mxu1 %v13556_v9  ;;  %4639 = vmatprep.mubr.bf16.mxu0 %v11038_v50  ;;  %v13596_v9 = vld [vmem:[#allocation13 + $0x6a8] sm:$0xff]   ;;  %v13619_v51 = vld [vmem:[#allocation13 + $0x738] sm:$0xff]  }
 0x20f   : > { %v14885_v8 = vadd.f32 %v12024_v2, %v1619_v6  ;;  %12313 = vmatprep.subr.bf16.mxu1 %v13558_v11  ;;  %12292 = vmatpush3.bf16.msra.mxu0 %v13559_v12  ;;  %v13589_v2 = vld [vmem:[#allocation13 + $0x670] sm:$0xff]   ;;  %v13598_v11 = vld [vmem:[#allocation13 + $0x6e0] sm:$0xff]  }
 0x210   : > { %12293 = vmatprep.subr.bf16.mxu0 %v13561_v14  ;;  %4680 = vmatprep.mubr.bf16.mxu1 %v11040_v55  ;;  %v13592_v6 = vld [vmem:[#allocation13 + $0x6b0] sm:$0xff]   ;;  %v13599_v12 = vld [vmem:[#allocation13 + $0x620] sm:$0xff]   ;;  %v13601_v14 = vld [vmem:[#allocation13 + $0x658] sm:$0xff]  }
 0x211   : > { %v13621_v55 = vld [vmem:[#allocation13 + $0x770] sm:$0xff]  }
 0x212   : > { %12314 = vmatpush3.bf16.msra.mxu1 %v13560_v13  ;;  %v13600_v13 = vld [vmem:[#allocation13 + $0x6a0] sm:$0xff]  }
 0x213   : > { %12315 = vmatprep.subr.bf16.mxu1 %v13562_v15  ;;  %12294 = vmatpush3.bf16.msra.mxu0 %v13563_v16  ;;  %v13602_v15 = vld [vmem:[#allocation13 + $0x6d8] sm:$0xff]  }
 0x214   : > { %12295 = vmatprep.subr.bf16.mxu0 %v13565_v18  ;;  %v13603_v16 = vld [vmem:[#allocation13 + $0x618] sm:$0xff]   ;;  %v13605_v18 = vld [vmem:[#allocation13 + $0x650] sm:$0xff]  }
 0x216   : > { %12316 = vmatpush3.bf16.msra.mxu1 %v13564_v17  ;;  %v13604_v17 = vld [vmem:[#allocation13 + $0x698] sm:$0xff]  }
 0x217   : > { %12317 = vmatprep.subr.bf16.mxu1 %v13566_v19  ;;  %12296 = vmatpush3.bf16.msra.mxu0 %v13567_v20  ;;  %v13606_v19 = vld [vmem:[#allocation13 + $0x6d0] sm:$0xff]  }
 0x218   : > { %12297 = vmatprep.subr.bf16.mxu0 %v13569_v22  ;;  %v13607_v20 = vld [vmem:[#allocation13 + $0x610] sm:$0xff]   ;;  %v13609_v22 = vld [vmem:[#allocation13 + $0x648] sm:$0xff]  }
 0x21a   : > { %12318 = vmatpush3.bf16.msra.mxu1 %v13568_v21  ;;  %v13608_v21 = vld [vmem:[#allocation13 + $0x690] sm:$0xff]  }
 0x21b   : > { %12319 = vmatprep.subr.bf16.mxu1 %v13570_v23  ;;  %12298 = vmatpush3.bf16.msra.mxu0 %v13571_v24  ;;  %v13610_v23 = vld [vmem:[#allocation13 + $0x6c8] sm:$0xff]  }
 0x21c   : > { %12299 = vmatprep.subr.bf16.mxu0 %v13573_v26  ;;  %v13611_v24 = vld [vmem:[#allocation13 + $0x608] sm:$0xff]   ;;  %v13613_v26 = vld [vmem:[#allocation13 + $0x640] sm:$0xff]  }
 0x21e   : > { %12320 = vmatpush3.bf16.msra.mxu1 %v13572_v25  ;;  %v13612_v25 = vld [vmem:[#allocation13 + $0x688] sm:$0xff]  }
 0x21f   : > { %12321 = vmatprep.subr.bf16.mxu1 %v13574_v27  ;;  %12300 = vmatpush3.bf16.msra.mxu0 %v13575_v28 }
 0x220   : > { %12301 = vmatprep.subr.bf16.mxu0 %v13577_v30  ;;  %v13615_v30 = vld [vmem:[#allocation13 + $0x600] sm:$0xff]  }
 0x222   : > { %12322 = vmatpush3.bf16.msra.mxu1 %v13576_v29  ;;  %v13614_v29 = vld [vmem:[#allocation13 + $0x6c0] sm:$0xff]  }
 0x223   : > { %12323 = vmatprep.subr.bf16.mxu1 %v13578_v31  ;;  %12302 = vmatpush3.bf16.msra.mxu0 %v13579_v32 }
 0x224   : > { %v12041_v33 = vpop.f32.mrf.mxu0  ;;  %12303 = vmatprep.subr.bf16.mxu0 %v13581_v36 }
 0x225   : > { %v12063_v35 = vpop.f32.mrf.mxu1 }
 0x226   : > { %v12042_v37 = vpop.f32.mrf.mxu0  ;;  %12324 = vmatpush3.bf16.msra.mxu1 %v13580_v34  ;;  %v1969_v34 = vld [vmem:[%s14815_s23 + $0x60] sm:$0xff] }
 0x227   : > { %v12043_v39 = vadd.f32 %v12042_v37, %v12041_v33  ;;  %v12064_v40 = vpop.f32.mrf.mxu1  ;;  %12325 = vmatprep.subr.bf16.mxu1 %v13582_v38  ;;  %12304 = vmatpush3.bf16.msra.mxu0 %v13583_v41  ;;  %v13616_v33 = vld [vmem:[#allocation13 + $0x680] sm:$0xff]   ;;  %v1970_v38 = vld [vmem:[%s14815_s23 + $0x68] sm:$0xff] }
 0x228   : > { %v12065_v42 = vadd.f32 %v12064_v40, %v12063_v35  ;;  %v12044_v43 = vpop.f32.mrf.mxu0  ;;  %12333 = vmatprep.subr.bf16.mxu0 %v13585_v56  ;;  %v1985_v37 = vld [vmem:[%s14815_s23 + $0xe0] sm:$0xff] }
 0x229   : > { %v1910_v47 = vadd.f32 %v12043_v39, %v14881_v59  ;;  %v12066_v48 = vpop.f32.mrf.mxu1  ;;  %v13587_v59 = vld [vmem:[#allocation13 + $0x638] sm:$0xff]   ;;  %v1986_v39 = vld [vmem:[%s14815_s23 + $0xe8] sm:$0xff] }
 0x22a   : > { %v12045_v53 = vpop.f32.mrf.mxu0  ;;  %12326 = vmatpush3.bf16.msra.mxu1 %v13584_v44  ;;  %4640 = vmatmul.mubr.bf16.vlgmr.msra.gmra.mxu0 %v11037_v49  ;;  %v11043_v44 = vcombine.low %v1970_v38, %v1986_v39  ;;  %v11044_v45 = vcombine.high %v1970_v38, %v1986_v39  ;;  %v13649_v39 = vld [vmem:[#allocation14 + $0x78] sm:$0xff]  }
 0x22b   : > { %v14892_v57 = vadd.f32 %v12065_v42, %v1910_v47  ;;  %v12046_v58 = vadd.f32 %v12045_v53, %v12044_v43  ;;  %v12067_v60 = vpop.f32.mrf.mxu1  ;;  %12355 = vmatprep.subr.bf16.mxu1 %v13586_v61  ;;  %12334 = vmatpush3.bf16.msra.mxu0 %v13587_v59  ;;  %v11041_v42 = vcombine.low %v1969_v34, %v1985_v37  ;;  %v13618_v47 = vld [vmem:[#allocation13 + $0x7f8] sm:$0xff]   ;;  %v13624_v61 = vld [vmem:[#allocation13 + $0x7b0] sm:$0xff]   ;;  %v13626_v59 = vld [vmem:[#allocation13 + $0x7e8] sm:$0xff]  }
 0x22c   : > { %v12068_v62 = vadd.f32 %v12067_v60, %v12066_v48  ;;  %12335 = vmatprep.subr.bf16.mxu0 %v13589_v2  ;;  %v11042_v43 = vcombine.high %v1969_v34, %v1985_v37  ;;  %v13623_v60 = vld [vmem:[#allocation13 + $0x730] sm:$0xff]   ;;  %v13629_v2 = vld [vmem:[#allocation13 + $0x760] sm:$0xff]   ;;  %v1988_v34 = vld [vmem:[%s14815_s23 + $0xf8] sm:$0xff] }
 0x22d   : > { %v1913_v0 = vadd.f32 %v12046_v58, %v14885_v8  ;;  %4681 = vmatmul.mubr.bf16.vlgmr.msra.gmra.mxu1 %v11039_v54  ;;  %v13595_v8 = vld [vmem:[#allocation13 + $0x628] sm:$0xff]   ;;  %v13620_v54 = vld [vmem:[#allocation13 + $0x7b8] sm:$0xff]   ;;  %v13622_v58 = vld [vmem:[#allocation13 + $0x7f0] sm:$0xff]  }
 0x22e   : > { %12356 = vmatpush3.bf16.msra.mxu1 %v13588_v1  ;;  %4721 = vmatprep.mubr.bf16.mxu0 %v11042_v43  ;;  %v13628_v1 = vld [vmem:[#allocation13 + $0x7a8] sm:$0xff]  }
 0x22f   : > { %v14895_v3 = vadd.f32 %v12068_v62, %v1913_v0  ;;  %12357 = vmatprep.subr.bf16.mxu1 %v13590_v4  ;;  %12336 = vmatpush3.bf16.msra.mxu0 %v13591_v63  ;;  %v13625_v62 = vld [vmem:[#allocation13 + $0x768] sm:$0xff]   ;;  %v13630_v4 = vld [vmem:[#allocation13 + $0x7e0] sm:$0xff]  }
 0x230   : > { %12337 = vmatprep.subr.bf16.mxu0 %v13593_v5  ;;  %4762 = vmatprep.mubr.bf16.mxu1 %v11044_v45  ;;  %v13627_v0 = vld [vmem:[#allocation13 + $0x728] sm:$0xff]   ;;  %v13631_v63 = vld [vmem:[#allocation13 + $0x720] sm:$0xff]   ;;  %v13633_v5 = vld [vmem:[#allocation13 + $0x758] sm:$0xff]  }
 0x231   : > { %v13651_v45 = vld [vmem:[#allocation14 + $0x38] sm:$0xff]  }
 0x232   : > { %12358 = vmatpush3.bf16.msra.mxu1 %v13592_v6  ;;  %v13632_v6 = vld [vmem:[#allocation13 + $0x7a0] sm:$0xff]  }
 0x233   : > { %12359 = vmatprep.subr.bf16.mxu1 %v13594_v7  ;;  %12338 = vmatpush3.bf16.msra.mxu0 %v13595_v8  ;;  %v13634_v7 = vld [vmem:[#allocation13 + $0x7d8] sm:$0xff]  }
 0x234   : > { %12339 = vmatprep.subr.bf16.mxu0 %v13597_v10  ;;  %v13635_v8 = vld [vmem:[#allocation13 + $0x718] sm:$0xff]   ;;  %v13637_v10 = vld [vmem:[#allocation13 + $0x750] sm:$0xff]  }
 0x236   : > { %12360 = vmatpush3.bf16.msra.mxu1 %v13596_v9  ;;  %v13636_v9 = vld [vmem:[#allocation13 + $0x798] sm:$0xff]  }
 0x237   : > { %12361 = vmatprep.subr.bf16.mxu1 %v13598_v11  ;;  %12340 = vmatpush3.bf16.msra.mxu0 %v13599_v12  ;;  %v13638_v11 = vld [vmem:[#allocation13 + $0x7d0] sm:$0xff]  }
 0x238   : > { %12341 = vmatprep.subr.bf16.mxu0 %v13601_v14  ;;  %v13639_v12 = vld [vmem:[#allocation13 + $0x710] sm:$0xff]   ;;  %v13641_v14 = vld [vmem:[#allocation13 + $0x748] sm:$0xff]  }
 0x23a   : > { %12362 = vmatpush3.bf16.msra.mxu1 %v13600_v13  ;;  %v13640_v13 = vld [vmem:[#allocation13 + $0x790] sm:$0xff]  }
 0x23b   : > { %12363 = vmatprep.subr.bf16.mxu1 %v13602_v15  ;;  %12342 = vmatpush3.bf16.msra.mxu0 %v13603_v16  ;;  %v13642_v15 = vld [vmem:[#allocation13 + $0x7c8] sm:$0xff]  }
 0x23c   : > { %12343 = vmatprep.subr.bf16.mxu0 %v13605_v18  ;;  %v13643_v16 = vld [vmem:[#allocation13 + $0x708] sm:$0xff]   ;;  %v13645_v18 = vld [vmem:[#allocation13 + $0x740] sm:$0xff]  }
 0x23e   : > { %12364 = vmatpush3.bf16.msra.mxu1 %v13604_v17  ;;  %v13644_v17 = vld [vmem:[#allocation13 + $0x788] sm:$0xff]  }
 0x23f   : > { %12365 = vmatprep.subr.bf16.mxu1 %v13606_v19  ;;  %12344 = vmatpush3.bf16.msra.mxu0 %v13607_v20  ;;  %v13646_v20 = vld [vmem:[#allocation13 + $0x7c0] sm:$0xff]  }
 0x240   : > { %12345 = vmatprep.subr.bf16.mxu0 %v13609_v22  ;;  %v13647_v22 = vld [vmem:[#allocation13 + $0x700] sm:$0xff]  }
 0x242   : > { %12366 = vmatpush3.bf16.msra.mxu1 %v13608_v21 }
 0x243   : > { %12367 = vmatprep.subr.bf16.mxu1 %v13610_v23  ;;  %12346 = vmatpush3.bf16.msra.mxu0 %v13611_v24  ;;  %v13648_v24 = vld [vmem:[#allocation13 + $0x780] sm:$0xff]  }
 0x244   : > { %v12085_v27 = vpop.f32.mrf.mxu0  ;;  %12347 = vmatprep.subr.bf16.mxu0 %v13613_v26 }
 0x245   : > { %v12107_v28 = vpop.f32.mrf.mxu1 }
 0x246   : > { %12368 = vmatpush3.bf16.msra.mxu1 %v13612_v25  ;;  %v12086_v31 = vpop.f32.mrf.mxu0 }
 0x247   : > { %v12108_v32 = vpop.f32.mrf.mxu1  ;;  %12369 = vmatprep.subr.bf16.mxu1 %v13614_v29  ;;  %v12087_v35 = vadd.f32 %v12086_v31, %v12085_v27  ;;  %12348 = vmatpush3.bf16.msra.mxu0 %v13615_v30  ;;  %v1971_v27 = vld [vmem:[%s14815_s23 + $0x70] sm:$0xff]  ;;  %v1972_v29 = vld [vmem:[%s14815_s23 + $0x78] sm:$0xff] }
 0x248   : > { %v12109_v36 = vadd.f32 %v12108_v32, %v12107_v28  ;;  %v12088_v40 = vpop.f32.mrf.mxu0  ;;  %12377 = vmatprep.subr.bf16.mxu0 %v13617_v46  ;;  %v1987_v28 = vld [vmem:[%s14815_s23 + $0xf0] sm:$0xff]  ;;  %v11047_v37 = vcombine.low %v1972_v29, %v1988_v34  ;;  %v11048_v38 = vcombine.high %v1972_v29, %v1988_v34 }
 0x249   : > { %v12110_v41 = vpop.f32.mrf.mxu1  ;;  %v11045_v32 = vcombine.low %v1971_v27, %v1987_v28 }
 0x24a   : > { %12370 = vmatpush3.bf16.msra.mxu1 %v13616_v33  ;;  %v14901_v48 = vadd.f32 %v12109_v36, %v12087_v35  ;;  %v12089_v49 = vpop.f32.mrf.mxu0  ;;  %4722 = vmatmul.mubr.bf16.vlgmr.msra.gmra.mxu0 %v11041_v42  ;;  %v11046_v33 = vcombine.high %v1971_v27, %v1987_v28  ;;  %v4856_v27 = vld [vmem:[%s14817_s16 + $0x8] sm:$0xff] }
 0x24b   : > { %v12111_v50 = vpop.f32.mrf.mxu1  ;;  %v12090_v52 = vadd.f32 %v12089_v49, %v12088_v40  ;;  %12399 = vmatprep.subr.bf16.mxu1 %v13618_v47  ;;  %12378 = vmatpush3.bf16.msra.mxu0 %v13619_v51  ;;  %v13652_v47 = vld [vmem:[#allocation14 + $0xb8] sm:$0xff]   ;;  %v13653_v49 = vld [vmem:[#allocation14 + $0x70] sm:$0xff]   ;;  %v4888_v28 = vld [vmem:[%s14817_s16 + $0x108] sm:$0xff] }
 0x24c   : > { %v12112_v53 = vadd.f32 %v12111_v50, %v12110_v41  ;;  %12379 = vmatprep.subr.bf16.mxu0 %v13621_v55  ;;  %4803 = vmatprep.mubr.bf16.mxu0 %v11046_v33  ;;  %v13650_v41 = vld [vmem:[#allocation14 + $0xf8] sm:$0xff]   ;;  %v13654_v50 = vld [vmem:[#allocation14 + $0xf0] sm:$0xff]   ;;  %v13658_v55 = vld [vmem:[#allocation14 + $0xe8] sm:$0xff]  }
 0x24d   : > { %4763 = vmatmul.mubr.bf16.vlgmr.msra.gmra.mxu1 %v11043_v44  ;;  %v13681_v33 = vld [vmem:[#allocation14 + $0x178] sm:$0xff]  }
 0x24e   : > { %v14903_v56 = vadd.f32 %v12112_v53, %v12090_v52  ;;  %12400 = vmatpush3.bf16.msra.mxu1 %v13620_v54  ;;  %4844 = vmatprep.mubr.bf16.mxu1 %v11048_v38  ;;  %v13655_v52 = vld [vmem:[#allocation14 + $0x30] sm:$0xff]   ;;  %v13657_v54 = vld [vmem:[#allocation14 + $0x68] sm:$0xff]  }
 0x24f   : > { %12401 = vmatprep.subr.bf16.mxu1 %v13622_v58  ;;  %12380 = vmatpush3.bf16.msra.mxu0 %v13623_v60  ;;  %v13656_v53 = vld [vmem:[#allocation14 + $0xb0] sm:$0xff]   ;;  %v13659_v58 = vld [vmem:[#allocation14 + $0x28] sm:$0xff]  }
 0x250   : > { %12381 = vmatprep.subr.bf16.mxu0 %v13625_v62  ;;  %v13660_v60 = vld [vmem:[#allocation14 + $0xa8] sm:$0xff]   ;;  %v13663_v62 = vld [vmem:[#allocation14 + $0x20] sm:$0xff]  }
 0x252   : > { %12402 = vmatpush3.bf16.msra.mxu1 %v13624_v61  ;;  %v13662_v61 = vld [vmem:[#allocation14 + $0xe0] sm:$0xff]  }
 0x253   : > { %12403 = vmatprep.subr.bf16.mxu1 %v13626_v59  ;;  %12382 = vmatpush3.bf16.msra.mxu0 %v13627_v0  ;;  %v13664_v59 = vld [vmem:[#allocation14 + $0xa0] sm:$0xff]   ;;  %v13665_v0 = vld [vmem:[#allocation14 + $0x58] sm:$0xff]  }
 0x254   : > { %12383 = vmatprep.subr.bf16.mxu0 %v13629_v2  ;;  %v13667_v2 = vld [vmem:[#allocation14 + $0x18] sm:$0xff]  }
 0x256   : > { %12404 = vmatpush3.bf16.msra.mxu1 %v13628_v1  ;;  %v13666_v1 = vld [vmem:[#allocation14 + $0xd8] sm:$0xff]  }
 0x257   : > { %12405 = vmatprep.subr.bf16.mxu1 %v13630_v4  ;;  %12384 = vmatpush3.bf16.msra.mxu0 %v13631_v63  ;;  %v13668_v4 = vld [vmem:[#allocation14 + $0x98] sm:$0xff]   ;;  %v13669_v63 = vld [vmem:[#allocation14 + $0x50] sm:$0xff]  }
 0x258   : > { %12385 = vmatprep.subr.bf16.mxu0 %v13633_v5  ;;  %v13671_v5 = vld [vmem:[#allocation14 + $0x10] sm:$0xff]  }
 0x25a   : > { %12406 = vmatpush3.bf16.msra.mxu1 %v13632_v6  ;;  %v13670_v6 = vld [vmem:[#allocation14 + $0xd0] sm:$0xff]  }
 0x25b   : > { %12407 = vmatprep.subr.bf16.mxu1 %v13634_v7  ;;  %12386 = vmatpush3.bf16.msra.mxu0 %v13635_v8  ;;  %v13672_v7 = vld [vmem:[#allocation14 + $0x90] sm:$0xff]   ;;  %v13673_v8 = vld [vmem:[#allocation14 + $0x48] sm:$0xff]  }
 0x25c   : > { %12387 = vmatprep.subr.bf16.mxu0 %v13637_v10  ;;  %v13675_v10 = vld [vmem:[#allocation14 + $0x8] sm:$0xff]  }
 0x25e   : > { %12408 = vmatpush3.bf16.msra.mxu1 %v13636_v9  ;;  %v13674_v9 = vld [vmem:[#allocation14 + $0xc8] sm:$0xff]  }
 0x25f   : > { %12409 = vmatprep.subr.bf16.mxu1 %v13638_v11  ;;  %12388 = vmatpush3.bf16.msra.mxu0 %v13639_v12  ;;  %v13676_v11 = vld [vmem:[#allocation14 + $0x88] sm:$0xff]  }
 0x260   : > { %12389 = vmatprep.subr.bf16.mxu0 %v13641_v14 }
 0x262   : > { %12410 = vmatpush3.bf16.msra.mxu1 %v13640_v13  ;;  %v13677_v13 = vld [vmem:[#allocation14 + $0x40] sm:$0xff]  }
 0x263   : > { %12411 = vmatprep.subr.bf16.mxu1 %v13642_v15  ;;  %12390 = vmatpush3.bf16.msra.mxu0 %v13643_v16  ;;  %v13678_v15 = vld [vmem:[#allocation14 + $0xc0] sm:$0xff]  }
 0x264   : > { %v12129_v19 = vpop.f32.mrf.mxu0  ;;  %12391 = vmatprep.subr.bf16.mxu0 %v13645_v18 }
 0x265   : > { %v12151_v21 = vpop.f32.mrf.mxu1 }
 0x266   : > { %12412 = vmatpush3.bf16.msra.mxu1 %v13644_v17  ;;  %v12130_v23 = vpop.f32.mrf.mxu0  ;;  %v13679_v17 = vld [vmem:[#allocation14] sm:$0xff]  }
 0x267   : > { %12413 = vmatprep.subr.bf16.mxu1 %v13646_v20  ;;  %v12131_v25 = vadd.f32 %v12130_v23, %v12129_v19  ;;  %v12152_v26 = vpop.f32.mrf.mxu1  ;;  %12392 = vmatpush3.bf16.msra.mxu0 %v13647_v22  ;;  %v13680_v20 = vld [vmem:[#allocation14 + $0x80] sm:$0xff]  }
 0x268   : > { %v12153_v30 = vadd.f32 %v12152_v26, %v12151_v21  ;;  %v12132_v31 = vpop.f32.mrf.mxu0  ;;  %12421 = vmatprep.subr.bf16.mxu0 %v13649_v39  ;;  %v4855_v21 = vld [vmem:[%s14817_s16] sm:$0xff]  ;;  %v13683_v39 = vld [vmem:[#allocation14 + $0x138] sm:$0xff]  }
 0x269   : > { %v4314_v35 = vadd.f32 %v12131_v25, %v14901_v48  ;;  %v12154_v36 = vpop.f32.mrf.mxu1  ;;  %v4887_v22 = vld [vmem:[%s14817_s16 + $0x100] sm:$0xff] }
 0x26a   : > { %12414 = vmatpush3.bf16.msra.mxu1 %v13648_v24  ;;  %v12133_v40 = vpop.f32.mrf.mxu0  ;;  %4804 = vmatmul.mubr.bf16.vlgmr.msra.gmra.mxu0 %v11045_v32  ;;  %v11305_v25 = vcombine.low %v4855_v21, %v4887_v22  ;;  %v11306_v26 = vcombine.high %v4855_v21, %v4887_v22  ;;  %v11308_v32 = vcombine.high %v4856_v27, %v4888_v28 }
 0x26b   : > { %v14910_v42 = vadd.f32 %v12153_v30, %v4314_v35  ;;  %v12134_v43 = vadd.f32 %v12133_v40, %v12132_v31  ;;  %v12155_v44 = vpop.f32.mrf.mxu1  ;;  %12443 = vmatprep.subr.bf16.mxu1 %v13650_v41  ;;  %12422 = vmatpush3.bf16.msra.mxu0 %v13651_v45  ;;  %v11307_v31 = vcombine.low %v4856_v27, %v4888_v28  ;;  %v13682_v35 = vld [vmem:[#allocation14 + $0x1f8] sm:$0xff]  }
 0x26c   : > { %v12156_v46 = vadd.f32 %v12155_v44, %v12154_v36  ;;  %12423 = vmatprep.subr.bf16.mxu0 %v13653_v49  ;;  %9367 = vmatprep.mubr.bf16.mxu0 %v11306_v26  ;;  %v13684_v41 = vld [vmem:[#allocation14 + $0x1b8] sm:$0xff]   ;;  %v13686_v44 = vld [vmem:[#allocation14 + $0x1f0] sm:$0xff]   ;;  %v13690_v49 = vld [vmem:[#allocation14 + $0x1e8] sm:$0xff]  }
 0x26d   : > { %4845 = vmatmul.mubr.bf16.vlgmr.msra.gmra.mxu1 %v11047_v37  ;;  %v4317_v48 = vadd.f32 %v12134_v43, %v14903_v56  ;;  %v13661_v56 = vld [vmem:[#allocation14 + $0x60] sm:$0xff]   ;;  %v13685_v43 = vld [vmem:[#allocation14 + $0x170] sm:$0xff]   ;;  %v13713_v26 = vld [vmem:[#allocation14 + $0x278] sm:$0xff]  }
 0x26e   : > { %12444 = vmatpush3.bf16.msra.mxu1 %v13652_v47  ;;  %9408 = vmatprep.mubr.bf16.mxu1 %v11308_v32  ;;  %v13688_v47 = vld [vmem:[#allocation14 + $0x1b0] sm:$0xff]   ;;  %v13714_v27 = vld [vmem:[#allocation14 + $0x2f8] sm:$0xff]  }
 0x26f   : > { %v14913_v51 = vadd.f32 %v12156_v46, %v4317_v48  ;;  %12445 = vmatprep.subr.bf16.mxu1 %v13654_v50  ;;  %12424 = vmatpush3.bf16.msra.mxu0 %v13655_v52  ;;  %v13687_v46 = vld [vmem:[#allocation14 + $0x130] sm:$0xff]   ;;  %v13689_v48 = vld [vmem:[#allocation14 + $0x168] sm:$0xff]  }
 0x270   : > { %12425 = vmatprep.subr.bf16.mxu0 %v13657_v54  ;;  %v13691_v50 = vld [vmem:[#allocation14 + $0x128] sm:$0xff]   ;;  %v13695_v54 = vld [vmem:[#allocation14 + $0x120] sm:$0xff]  }
 0x271   : > { %v13692_v52 = vld [vmem:[#allocation14 + $0x1a8] sm:$0xff]  }
 0x272   : > { %12446 = vmatpush3.bf16.msra.mxu1 %v13656_v53  ;;  %v13694_v53 = vld [vmem:[#allocation14 + $0x1e0] sm:$0xff]  }
 0x273   : > { %12447 = vmatprep.subr.bf16.mxu1 %v13658_v55  ;;  %12426 = vmatpush3.bf16.msra.mxu0 %v13659_v58  ;;  %v13696_v55 = vld [vmem:[#allocation14 + $0x1a0] sm:$0xff]   ;;  %v13697_v58 = vld [vmem:[#allocation14 + $0x158] sm:$0xff]  }
 0x274   : > { %12427 = vmatprep.subr.bf16.mxu0 %v13661_v56  ;;  %v13699_v56 = vld [vmem:[#allocation14 + $0x118] sm:$0xff]  }
 0x276   : > { %12448 = vmatpush3.bf16.msra.mxu1 %v13660_v60  ;;  %v13698_v60 = vld [vmem:[#allocation14 + $0x1d8] sm:$0xff]  }
 0x277   : > { %12449 = vmatprep.subr.bf16.mxu1 %v13662_v61  ;;  %12428 = vmatpush3.bf16.msra.mxu0 %v13663_v62  ;;  %v13700_v61 = vld [vmem:[#allocation14 + $0x198] sm:$0xff]   ;;  %v13701_v62 = vld [vmem:[#allocation14 + $0x150] sm:$0xff]  }
 0x278   : > { %12429 = vmatprep.subr.bf16.mxu0 %v13665_v0  ;;  %v13703_v0 = vld [vmem:[#allocation14 + $0x110] sm:$0xff]  }
 0x27a   : > { %12450 = vmatpush3.bf16.msra.mxu1 %v13664_v59  ;;  %v13702_v59 = vld [vmem:[#allocation14 + $0x1d0] sm:$0xff]  }
 0x27b   : > { %12451 = vmatprep.subr.bf16.mxu1 %v13666_v1  ;;  %12430 = vmatpush3.bf16.msra.mxu0 %v13667_v2  ;;  %v13704_v1 = vld [vmem:[#allocation14 + $0x190] sm:$0xff]   ;;  %v13705_v2 = vld [vmem:[#allocation14 + $0x148] sm:$0xff]  }
 0x27c   : > { %12431 = vmatprep.subr.bf16.mxu0 %v13669_v63  ;;  %v13707_v63 = vld [vmem:[#allocation14 + $0x108] sm:$0xff]  }
 0x27e   : > { %12452 = vmatpush3.bf16.msra.mxu1 %v13668_v4  ;;  %v13706_v4 = vld [vmem:[#allocation14 + $0x1c8] sm:$0xff]  }
 0x27f   : > { %12453 = vmatprep.subr.bf16.mxu1 %v13670_v6  ;;  %12432 = vmatpush3.bf16.msra.mxu0 %v13671_v5  ;;  %v13708_v6 = vld [vmem:[#allocation14 + $0x188] sm:$0xff]   ;;  %v13709_v5 = vld [vmem:[#allocation14 + $0x140] sm:$0xff]  }
 0x280   : > { %12433 = vmatprep.subr.bf16.mxu0 %v13673_v8 }
 0x282   : > { %12454 = vmatpush3.bf16.msra.mxu1 %v13672_v7 }
 0x283   : > { %12455 = vmatprep.subr.bf16.mxu1 %v13674_v9  ;;  %12434 = vmatpush3.bf16.msra.mxu0 %v13675_v10  ;;  %v13710_v9 = vld [vmem:[#allocation14 + $0x1c0] sm:$0xff]  }
 0x284   : > { %v12173_v12 = vpop.f32.mrf.mxu0  ;;  %12435 = vmatprep.subr.bf16.mxu0 %v13677_v13  ;;  %v13711_v10 = vld [vmem:[#allocation14 + $0x100] sm:$0xff]  }
 0x285   : > { %v12195_v14 = vpop.f32.mrf.mxu1  ;;  %v13712_v13 = vld [vmem:[#allocation14 + $0x180] sm:$0xff]  }
 0x286   : > { %12456 = vmatpush3.bf16.msra.mxu1 %v13676_v11  ;;  %v12174_v16 = vpop.f32.mrf.mxu0 }
 0x287   : > { %v12175_v18 = vadd.f32 %v12174_v16, %v12173_v12  ;;  %v12196_v19 = vpop.f32.mrf.mxu1  ;;  %12457 = vmatprep.subr.bf16.mxu1 %v13678_v15  ;;  %12436 = vmatpush3.bf16.msra.mxu0 %v13679_v17  ;;  %v4889_v17 = vld [vmem:[%s14817_s16 + $0x110] sm:$0xff] }
 0x288   : > { %v12197_v23 = vadd.f32 %v12196_v19, %v12195_v14  ;;  %v12176_v24 = vpop.f32.mrf.mxu0  ;;  %12465 = vmatprep.subr.bf16.mxu0 %v13681_v33  ;;  %v4857_v14 = vld [vmem:[%s14817_s16 + $0x10] sm:$0xff]  ;;  %v4890_v19 = vld [vmem:[%s14817_s16 + $0x118] sm:$0xff] }
 0x289   : > { %v4396_v29 = vadd.f32 %v12175_v18, %v14910_v42  ;;  %v12198_v30 = vpop.f32.mrf.mxu1  ;;  %v4858_v18 = vld [vmem:[%s14817_s16 + $0x18] sm:$0xff]  ;;  %v11309_v22 = vcombine.low %v4857_v14, %v4889_v17 }
 0x28a   : > { %12458 = vmatpush3.bf16.msra.mxu1 %v13680_v20  ;;  %v12177_v34 = vpop.f32.mrf.mxu0  ;;  %9368 = vmatmul.mubr.bf16.vlgmr.msra.gmra.mxu0 %v11305_v25  ;;  %v11312_v25 = vcombine.high %v4858_v18, %v4890_v19 }
 0x28b   : > { %v14920_v36 = vadd.f32 %v12197_v23, %v4396_v29  ;;  %v12178_v37 = vadd.f32 %v12177_v34, %v12176_v24  ;;  %v12199_v38 = vpop.f32.mrf.mxu1  ;;  %12487 = vmatprep.subr.bf16.mxu1 %v13682_v35  ;;  %12466 = vmatpush3.bf16.msra.mxu0 %v13683_v39  ;;  %v11310_v23 = vcombine.high %v4857_v14, %v4889_v17  ;;  %v13716_v34 = vld [vmem:[#allocation14 + $0x2b8] sm:$0xff]   ;;  %v13719_v39 = vld [vmem:[#allocation14 + $0x230] sm:$0xff]  }
 0x28c   : > { %v12200_v40 = vadd.f32 %v12199_v38, %v12198_v30  ;;  %12467 = vmatprep.subr.bf16.mxu0 %v13685_v43  ;;  %v11311_v24 = vcombine.low %v4858_v18, %v4890_v19  ;;  %v13722_v43 = vld [vmem:[#allocation14 + $0x2e8] sm:$0xff]  }
 0x28d   : > { %9409 = vmatmul.mubr.bf16.vlgmr.msra.gmra.mxu1 %v11307_v31  ;;  %v4399_v42 = vadd.f32 %v12178_v37, %v14913_v51  ;;  %v13693_v51 = vld [vmem:[#allocation14 + $0x160] sm:$0xff]   ;;  %9449 = vmatprep.mubr.bf16.mxu0 %v11310_v23  ;;  %v13715_v31 = vld [vmem:[#allocation14 + $0x238] sm:$0xff]   ;;  %v13717_v37 = vld [vmem:[#allocation14 + $0x270] sm:$0xff]  }
 0x28e   : > { %12488 = vmatpush3.bf16.msra.mxu1 %v13684_v41  ;;  %9490 = vmatprep.mubr.bf16.mxu1 %v11312_v25  ;;  %v13720_v41 = vld [vmem:[#allocation14 + $0x2b0] sm:$0xff]   ;;  %v13746_v23 = vld [vmem:[#allocation14 + $0x3f8] sm:$0xff]  }
 0x28f   : > { %v14923_v45 = vadd.f32 %v12200_v40, %v4399_v42  ;;  %12489 = vmatprep.subr.bf16.mxu1 %v13686_v44  ;;  %12468 = vmatpush3.bf16.msra.mxu0 %v13687_v46  ;;  %v13721_v42 = vld [vmem:[#allocation14 + $0x268] sm:$0xff]  }
 0x290   : > { %12469 = vmatprep.subr.bf16.mxu0 %v13689_v48  ;;  %v13723_v44 = vld [vmem:[#allocation14 + $0x228] sm:$0xff]   ;;  %v13727_v48 = vld [vmem:[#allocation14 + $0x220] sm:$0xff]  }
 0x291   : > { %v13724_v46 = vld [vmem:[#allocation14 + $0x2a8] sm:$0xff]  }
 0x292   : > { %12490 = vmatpush3.bf16.msra.mxu1 %v13688_v47  ;;  %v13725_v47 = vld [vmem:[#allocation14 + $0x260] sm:$0xff]  }
 0x293   : > { %12491 = vmatprep.subr.bf16.mxu1 %v13690_v49  ;;  %12470 = vmatpush3.bf16.msra.mxu0 %v13691_v50  ;;  %v13728_v49 = vld [vmem:[#allocation14 + $0x2a0] sm:$0xff]   ;;  %v13729_v50 = vld [vmem:[#allocation14 + $0x258] sm:$0xff]  }
 0x294   : > { %12471 = vmatprep.subr.bf16.mxu0 %v13693_v51  ;;  %v13731_v51 = vld [vmem:[#allocation14 + $0x218] sm:$0xff]  }
 0x296   : > { %12492 = vmatpush3.bf16.msra.mxu1 %v13692_v52  ;;  %v13730_v52 = vld [vmem:[#allocation14 + $0x2d8] sm:$0xff]  }
 0x297   : > { %12493 = vmatprep.subr.bf16.mxu1 %v13694_v53  ;;  %12472 = vmatpush3.bf16.msra.mxu0 %v13695_v54  ;;  %v13732_v53 = vld [vmem:[#allocation14 + $0x298] sm:$0xff]   ;;  %v13733_v54 = vld [vmem:[#allocation14 + $0x250] sm:$0xff]  }
 0x298   : > { %12473 = vmatprep.subr.bf16.mxu0 %v13697_v58  ;;  %v13735_v58 = vld [vmem:[#allocation14 + $0x210] sm:$0xff]  }
 0x29a   : > { %12494 = vmatpush3.bf16.msra.mxu1 %v13696_v55  ;;  %v13734_v55 = vld [vmem:[#allocation14 + $0x2d0] sm:$0xff]  }
 0x29b   : > { %12495 = vmatprep.subr.bf16.mxu1 %v13698_v60  ;;  %12474 = vmatpush3.bf16.msra.mxu0 %v13699_v56  ;;  %v13736_v60 = vld [vmem:[#allocation14 + $0x290] sm:$0xff]   ;;  %v13737_v56 = vld [vmem:[#allocation14 + $0x248] sm:$0xff]  }
 0x29c   : > { %12475 = vmatprep.subr.bf16.mxu0 %v13701_v62  ;;  %v13739_v62 = vld [vmem:[#allocation14 + $0x208] sm:$0xff]  }
 0x29e   : > { %12496 = vmatpush3.bf16.msra.mxu1 %v13700_v61  ;;  %v13738_v61 = vld [vmem:[#allocation14 + $0x2c8] sm:$0xff]  }
 0x29f   : > { %12497 = vmatprep.subr.bf16.mxu1 %v13702_v59  ;;  %12476 = vmatpush3.bf16.msra.mxu0 %v13703_v0  ;;  %v13740_v59 = vld [vmem:[#allocation14 + $0x288] sm:$0xff]   ;;  %v13741_v0 = vld [vmem:[#allocation14 + $0x240] sm:$0xff]  }
 0x2a0   : > { %12477 = vmatprep.subr.bf16.mxu0 %v13705_v2  ;;  %v13742_v2 = vld [vmem:[#allocation14 + $0x2c0] sm:$0xff]  }
 0x2a2   : > { %12498 = vmatpush3.bf16.msra.mxu1 %v13704_v1 }
 0x2a3   : > { %12499 = vmatprep.subr.bf16.mxu1 %v13706_v4  ;;  %12478 = vmatpush3.bf16.msra.mxu0 %v13707_v63  ;;  %v13743_v63 = vld [vmem:[#allocation14 + $0x200] sm:$0xff]  }
 0x2a4   : > { %v12217_v7 = vpop.f32.mrf.mxu0  ;;  %12479 = vmatprep.subr.bf16.mxu0 %v13709_v5  ;;  %v13744_v5 = vld [vmem:[#allocation14 + $0x280] sm:$0xff]  }
 0x2a6   : > { %12500 = vmatpush3.bf16.msra.mxu1 %v13708_v6  ;;  %v12218_v11 = vpop.f32.mrf.mxu0 }
 0x2a7   : > { %12501 = vmatprep.subr.bf16.mxu1 %v13710_v9  ;;  %v12219_v15 = vadd.f32 %v12218_v11, %v12217_v7  ;;  %12480 = vmatpush3.bf16.msra.mxu0 %v13711_v10  ;;  %v4859_v9 = vld [vmem:[%s14817_s16 + $0x20] sm:$0xff]  ;;  %v4860_v11 = vld [vmem:[%s14817_s16 + $0x28] sm:$0xff] }
 0x2a8   : > { %v12220_v20 = vpop.f32.mrf.mxu0  ;;  %12509 = vmatprep.subr.bf16.mxu0 %v13713_v26  ;;  %v4891_v10 = vld [vmem:[%s14817_s16 + $0x120] sm:$0xff] }
 0x2a9   : > { %v4478_v28 = vadd.f32 %v12219_v15, %v14920_v36  ;;  %v13718_v36 = vld [vmem:[#allocation14 + $0x2f0] sm:$0xff]   ;;  %v11313_v14 = vcombine.low %v4859_v9, %v4891_v10  ;;  %v11314_v15 = vcombine.high %v4859_v9, %v4891_v10  ;;  %v4862_v9 = vld [vmem:[%s14817_s16 + $0x38] sm:$0xff] }
 0x2aa   : > { %12502 = vmatpush3.bf16.msra.mxu1 %v13712_v13  ;;  %v12221_v29 = vpop.f32.mrf.mxu0  ;;  %9450 = vmatmul.mubr.bf16.vlgmr.msra.gmra.mxu0 %v11309_v22  ;;  %v4894_v10 = vld [vmem:[%s14817_s16 + $0x138] sm:$0xff] }
 0x2ab   : > { %v12222_v32 = vadd.f32 %v12221_v29, %v12220_v20  ;;  %12531 = vmatprep.subr.bf16.mxu1 %v13714_v27  ;;  %12510 = vmatpush3.bf16.msra.mxu0 %v13715_v31  ;;  %v13747_v27 = vld [vmem:[#allocation14 + $0x338] sm:$0xff]   ;;  %v13749_v31 = vld [vmem:[#allocation14 + $0x370] sm:$0xff]  }
 0x2ac   : > { %12511 = vmatprep.subr.bf16.mxu0 %v13717_v37  ;;  %9531 = vmatprep.mubr.bf16.mxu0 %v11314_v15  ;;  %v13748_v29 = vld [vmem:[#allocation14 + $0x3b8] sm:$0xff]   ;;  %v13753_v37 = vld [vmem:[#allocation14 + $0x368] sm:$0xff]  }
 0x2ad   : > { %v12239_v8 = vpop.f32.mrf.mxu1  ;;  %9491 = vmatmul.mubr.bf16.vlgmr.msra.gmra.mxu1 %v11311_v24  ;;  %v4481_v38 = vadd.f32 %v12222_v32, %v14923_v45  ;;  %v13726_v45 = vld [vmem:[#allocation14 + $0x2e0] sm:$0xff]   ;;  %v13750_v32 = vld [vmem:[#allocation14 + $0x3f0] sm:$0xff]   ;;  %v13777_v15 = vld [vmem:[#allocation14 + $0x478] sm:$0xff]  }
 0x2ae   : > { %12532 = vmatpush3.bf16.msra.mxu1 %v13716_v34  ;;  %v13751_v34 = vld [vmem:[#allocation14 + $0x330] sm:$0xff]  }
 0x2af   : > { %v12240_v12 = vpop.f32.mrf.mxu1  ;;  %12533 = vmatprep.subr.bf16.mxu1 %v13718_v36  ;;  %12512 = vmatpush3.bf16.msra.mxu0 %v13719_v39  ;;  %v13755_v36 = vld [vmem:[#allocation14 + $0x328] sm:$0xff]  }
 0x2b0   : > { %v12241_v16 = vadd.f32 %v12240_v12, %v12239_v8  ;;  %12513 = vmatprep.subr.bf16.mxu0 %v13721_v42  ;;  %v13756_v39 = vld [vmem:[#allocation14 + $0x3a8] sm:$0xff]   ;;  %v13759_v42 = vld [vmem:[#allocation14 + $0x320] sm:$0xff]  }
 0x2b1   : > { %v12242_v21 = vpop.f32.mrf.mxu1 }
 0x2b2   : > { %v14930_v35 = vadd.f32 %v12241_v16, %v4478_v28  ;;  %12534 = vmatpush3.bf16.msra.mxu1 %v13720_v41  ;;  %v4892_v16 = vld [vmem:[%s14817_s16 + $0x128] sm:$0xff]  ;;  %v13758_v41 = vld [vmem:[#allocation14 + $0x3e0] sm:$0xff]  }
 0x2b3   : > { %v12243_v30 = vpop.f32.mrf.mxu1  ;;  %12535 = vmatprep.subr.bf16.mxu1 %v13722_v43  ;;  %12514 = vmatpush3.bf16.msra.mxu0 %v13723_v44  ;;  %v11315_v19 = vcombine.low %v4860_v11, %v4892_v16  ;;  %v11316_v20 = vcombine.high %v4860_v11, %v4892_v16  ;;  %v13760_v43 = vld [vmem:[#allocation14 + $0x3a0] sm:$0xff]   ;;  %v13761_v44 = vld [vmem:[#allocation14 + $0x358] sm:$0xff]  }
 0x2b4   : > { %v12244_v33 = vadd.f32 %v12243_v30, %v12242_v21  ;;  %12515 = vmatprep.subr.bf16.mxu0 %v13725_v47  ;;  %v13745_v21 = vld [vmem:[#allocation14 + $0x378] sm:$0xff]  }
 0x2b5   : > { %9572 = vmatprep.mubr.bf16.mxu1 %v11316_v20  ;;  %v13763_v47 = vld [vmem:[#allocation14 + $0x318] sm:$0xff]  }
 0x2b6   : > { %v14933_v40 = vadd.f32 %v12244_v33, %v4481_v38  ;;  %12536 = vmatpush3.bf16.msra.mxu1 %v13724_v46  ;;  %v13754_v38 = vld [vmem:[#allocation14 + $0x3e8] sm:$0xff]   ;;  %v13762_v46 = vld [vmem:[#allocation14 + $0x3d8] sm:$0xff]  }
 0x2b7   : > { %12537 = vmatprep.subr.bf16.mxu1 %v13726_v45  ;;  %12516 = vmatpush3.bf16.msra.mxu0 %v13727_v48  ;;  %v13764_v45 = vld [vmem:[#allocation14 + $0x398] sm:$0xff]   ;;  %v13765_v48 = vld [vmem:[#allocation14 + $0x350] sm:$0xff]  }
 0x2b8   : > { %12517 = vmatprep.subr.bf16.mxu0 %v13729_v50  ;;  %v13767_v50 = vld [vmem:[#allocation14 + $0x310] sm:$0xff]  }
 0x2ba   : > { %12538 = vmatpush3.bf16.msra.mxu1 %v13728_v49  ;;  %v13766_v49 = vld [vmem:[#allocation14 + $0x3d0] sm:$0xff]  }
 0x2bb   : > { %12539 = vmatprep.subr.bf16.mxu1 %v13730_v52  ;;  %12518 = vmatpush3.bf16.msra.mxu0 %v13731_v51  ;;  %v13768_v52 = vld [vmem:[#allocation14 + $0x390] sm:$0xff]   ;;  %v13769_v51 = vld [vmem:[#allocation14 + $0x348] sm:$0xff]  }
 0x2bc   : > { %12519 = vmatprep.subr.bf16.mxu0 %v13733_v54  ;;  %v13771_v54 = vld [vmem:[#allocation14 + $0x308] sm:$0xff]  }
 0x2be   : > { %12540 = vmatpush3.bf16.msra.mxu1 %v13732_v53  ;;  %v13770_v53 = vld [vmem:[#allocation14 + $0x3c8] sm:$0xff]  }
 0x2bf   : > { %12541 = vmatprep.subr.bf16.mxu1 %v13734_v55  ;;  %12520 = vmatpush3.bf16.msra.mxu0 %v13735_v58  ;;  %v13772_v55 = vld [vmem:[#allocation14 + $0x388] sm:$0xff]  }
 0x2c0   : > { %12521 = vmatprep.subr.bf16.mxu0 %v13737_v56 }
 0x2c2   : > { %12542 = vmatpush3.bf16.msra.mxu1 %v13736_v60  ;;  %v13773_v60 = vld [vmem:[#allocation14 + $0x340] sm:$0xff]  }
 0x2c3   : > { %12543 = vmatprep.subr.bf16.mxu1 %v13738_v61  ;;  %12522 = vmatpush3.bf16.msra.mxu0 %v13739_v62  ;;  %v13774_v61 = vld [vmem:[#allocation14 + $0x3c0] sm:$0xff]  }
 0x2c4   : > { %v12261_v1 = vpop.f32.mrf.mxu0  ;;  %12523 = vmatprep.subr.bf16.mxu0 %v13741_v0 }
 0x2c6   : > { %12544 = vmatpush3.bf16.msra.mxu1 %v13740_v59  ;;  %v12262_v6 = vpop.f32.mrf.mxu0  ;;  %v13775_v59 = vld [vmem:[#allocation14 + $0x300] sm:$0xff]  }
 0x2c7   : > { %12545 = vmatprep.subr.bf16.mxu1 %v13742_v2  ;;  %v12263_v7 = vadd.f32 %v12262_v6, %v12261_v1  ;;  %12524 = vmatpush3.bf16.msra.mxu0 %v13743_v63  ;;  %v13776_v2 = vld [vmem:[#allocation14 + $0x380] sm:$0xff]   ;;  %v4893_v63 = vld [vmem:[%s14817_s16 + $0x130] sm:$0xff] }
 0x2c8   : > { %v12264_v13 = vpop.f32.mrf.mxu0  ;;  %12553 = vmatprep.subr.bf16.mxu0 %v13745_v21  ;;  %v13779_v21 = vld [vmem:[#allocation14 + $0x438] sm:$0xff]  }
 0x2c9   : > { %v4560_v17 = vadd.f32 %v12263_v7, %v14930_v35  ;;  %v13752_v35 = vld [vmem:[#allocation14 + $0x3b0] sm:$0xff]  }
 0x2ca   : > { %12546 = vmatpush3.bf16.msra.mxu1 %v13744_v5  ;;  %v12265_v22 = vpop.f32.mrf.mxu0  ;;  %9532 = vmatmul.mubr.bf16.vlgmr.msra.gmra.mxu0 %v11313_v14  ;;  %v11320_v14 = vcombine.high %v4862_v9, %v4894_v10 }
 0x2cb   : > { %v12266_v25 = vadd.f32 %v12265_v22, %v12264_v13  ;;  %12575 = vmatprep.subr.bf16.mxu1 %v13746_v23  ;;  %12554 = vmatpush3.bf16.msra.mxu0 %v13747_v27  ;;  %v11319_v13 = vcombine.low %v4862_v9, %v4894_v10  ;;  %v13780_v23 = vld [vmem:[#allocation14 + $0x4b8] sm:$0xff]  }
 0x2cc   : > { %12555 = vmatprep.subr.bf16.mxu0 %v13749_v31  ;;  %v13786_v31 = vld [vmem:[#allocation14 + $0x4e8] sm:$0xff]   ;;  %v13810_v9 = vld [vmem:[#allocation14 + $0x5f8] sm:$0xff]  }
 0x2cd   : > { %v12283_v4 = vpop.f32.mrf.mxu1  ;;  %9573 = vmatmul.mubr.bf16.vlgmr.msra.gmra.mxu1 %v11315_v19  ;;  %v4563_v30 = vadd.f32 %v12266_v25, %v14933_v40  ;;  %v13757_v40 = vld [vmem:[#allocation14 + $0x360] sm:$0xff]   ;;  %v13781_v25 = vld [vmem:[#allocation14 + $0x470] sm:$0xff]  }
 0x2ce   : > { %12576 = vmatpush3.bf16.msra.mxu1 %v13748_v29  ;;  %9654 = vmatprep.mubr.bf16.mxu1 %v11320_v14  ;;  %v13784_v29 = vld [vmem:[#allocation14 + $0x4b0] sm:$0xff]  }
 0x2cf   : > { %v12284_v8 = vpop.f32.mrf.mxu1  ;;  %12577 = vmatprep.subr.bf16.mxu1 %v13750_v32  ;;  %12556 = vmatpush3.bf16.msra.mxu0 %v13751_v34  ;;  %v13787_v32 = vld [vmem:[#allocation14 + $0x428] sm:$0xff]  }
 0x2d0   : > { %v12285_v12 = vadd.f32 %v12284_v8, %v12283_v4  ;;  %12557 = vmatprep.subr.bf16.mxu0 %v13753_v37  ;;  %v4861_v4 = vld [vmem:[%s14817_s16 + $0x30] sm:$0xff]  ;;  %v13788_v34 = vld [vmem:[#allocation14 + $0x4a8] sm:$0xff]   ;;  %v13791_v37 = vld [vmem:[#allocation14 + $0x420] sm:$0xff]  }
 0x2d1   : > { %v12286_v18 = vpop.f32.mrf.mxu1  ;;  %v11317_v7 = vcombine.low %v4861_v4, %v4893_v63  ;;  %v11318_v8 = vcombine.high %v4861_v4, %v4893_v63 }
 0x2d2   : > { %v14940_v24 = vadd.f32 %v12285_v12, %v4560_v17  ;;  %12578 = vmatpush3.bf16.msra.mxu1 %v13752_v35  ;;  %v13778_v17 = vld [vmem:[#allocation14 + $0x4f8] sm:$0xff]   ;;  %v13790_v35 = vld [vmem:[#allocation14 + $0x4e0] sm:$0xff]  }
 0x2d3   : > { %v12287_v26 = vpop.f32.mrf.mxu1  ;;  %12579 = vmatprep.subr.bf16.mxu1 %v13754_v38  ;;  %12558 = vmatpush3.bf16.msra.mxu0 %v13755_v36  ;;  %v13792_v38 = vld [vmem:[#allocation14 + $0x4a0] sm:$0xff]   ;;  %v13793_v36 = vld [vmem:[#allocation14 + $0x458] sm:$0xff]  }
 0x2d4   : > { %v12288_v28 = vadd.f32 %v12287_v26, %v12286_v18  ;;  %12559 = vmatprep.subr.bf16.mxu0 %v13757_v40  ;;  %9613 = vmatprep.mubr.bf16.mxu0 %v11318_v8  ;;  %v13782_v26 = vld [vmem:[#allocation14 + $0x4f0] sm:$0xff]   ;;  %v13795_v40 = vld [vmem:[#allocation14 + $0x418] sm:$0xff]  }
 0x2d5   : > { %v13809_v8 = vld [vmem:[#allocation14 + $0x578] sm:$0xff]  }
 0x2d6   : > { %v14943_v33 = vadd.f32 %v12288_v28, %v4563_v30  ;;  %12580 = vmatpush3.bf16.msra.mxu1 %v13756_v39  ;;  %v13783_v28 = vld [vmem:[#allocation14 + $0x430] sm:$0xff]   ;;  %v13785_v30 = vld [vmem:[#allocation14 + $0x468] sm:$0xff]   ;;  %v13794_v39 = vld [vmem:[#allocation14 + $0x4d8] sm:$0xff]  }
 0x2d7   : > { %12581 = vmatprep.subr.bf16.mxu1 %v13758_v41  ;;  %12560 = vmatpush3.bf16.msra.mxu0 %v13759_v42  ;;  %v13796_v41 = vld [vmem:[#allocation14 + $0x498] sm:$0xff]   ;;  %v13797_v42 = vld [vmem:[#allocation14 + $0x450] sm:$0xff]  }
 0x2d8   : > { %12561 = vmatprep.subr.bf16.mxu0 %v13761_v44  ;;  %v13799_v44 = vld [vmem:[#allocation14 + $0x410] sm:$0xff]  }
 0x2da   : > { %12582 = vmatpush3.bf16.msra.mxu1 %v13760_v43  ;;  %v13798_v43 = vld [vmem:[#allocation14 + $0x4d0] sm:$0xff]  }
 0x2db   : > { %12583 = vmatprep.subr.bf16.mxu1 %v13762_v46  ;;  %12562 = vmatpush3.bf16.msra.mxu0 %v13763_v47  ;;  %v13800_v46 = vld [vmem:[#allocation14 + $0x490] sm:$0xff]   ;;  %v13801_v47 = vld [vmem:[#allocation14 + $0x448] sm:$0xff]  }
 0x2dc   : > { %12563 = vmatprep.subr.bf16.mxu0 %v13765_v48  ;;  %v13803_v48 = vld [vmem:[#allocation14 + $0x408] sm:$0xff]  }
 0x2de   : > { %12584 = vmatpush3.bf16.msra.mxu1 %v13764_v45  ;;  %v13802_v45 = vld [vmem:[#allocation14 + $0x4c8] sm:$0xff]  }
 0x2df   : > { %12585 = vmatprep.subr.bf16.mxu1 %v13766_v49  ;;  %12564 = vmatpush3.bf16.msra.mxu0 %v13767_v50  ;;  %v13804_v49 = vld [vmem:[#allocation14 + $0x488] sm:$0xff]   ;;  %v13805_v50 = vld [vmem:[#allocation14 + $0x440] sm:$0xff]  }
 0x2e0   : > { %12565 = vmatprep.subr.bf16.mxu0 %v13769_v51 }
 0x2e2   : > { %12586 = vmatpush3.bf16.msra.mxu1 %v13768_v52 }
 0x2e3   : > { %12587 = vmatprep.subr.bf16.mxu1 %v13770_v53  ;;  %12566 = vmatpush3.bf16.msra.mxu0 %v13771_v54  ;;  %v13806_v53 = vld [vmem:[#allocation14 + $0x4c0] sm:$0xff]  }
 0x2e4   : > { %12567 = vmatprep.subr.bf16.mxu0 %v13773_v60  ;;  %v13807_v54 = vld [vmem:[#allocation14 + $0x400] sm:$0xff]  }
 0x2e5   : > { %v13808_v60 = vld [vmem:[#allocation14 + $0x480] sm:$0xff]  }
 0x2e6   : > { %12588 = vmatpush3.bf16.msra.mxu1 %v13772_v55 }
 0x2e7   : > { %12589 = vmatprep.subr.bf16.mxu1 %v13774_v61  ;;  %12568 = vmatpush3.bf16.msra.mxu0 %v13775_v59  ;;  %v4895_v59 = vld [vmem:[%s14817_s16 + $0x140] sm:$0xff] }
 0x2e8   : > { %12597 = vmatprep.subr.bf16.mxu0 %v13777_v15 }
 0x2ea   : > { %v12305_v58 = vpop.f32.mrf.mxu0  ;;  %12590 = vmatpush3.bf16.msra.mxu1 %v13776_v2  ;;  %9614 = vmatmul.mubr.bf16.vlgmr.msra.gmra.mxu0 %v11317_v7 }
 0x2eb   : > { %12619 = vmatprep.subr.bf16.mxu1 %v13778_v17  ;;  %12598 = vmatpush3.bf16.msra.mxu0 %v13779_v21  ;;  %v13815_v21 = vld [vmem:[#allocation14 + $0x530] sm:$0xff]  }
 0x2ec   : > { %v12306_v62 = vpop.f32.mrf.mxu0  ;;  %12599 = vmatprep.subr.bf16.mxu0 %v13781_v25  ;;  %v13818_v25 = vld [vmem:[#allocation14 + $0x5e8] sm:$0xff]  }
 0x2ed   : > { %v12327_v56 = vpop.f32.mrf.mxu1  ;;  %v12307_v0 = vadd.f32 %v12306_v62, %v12305_v58  ;;  %9655 = vmatmul.mubr.bf16.vlgmr.msra.gmra.mxu1 %v11319_v13  ;;  %v13811_v13 = vld [vmem:[#allocation14 + $0x538] sm:$0xff]  }
 0x2ee   : > { %v12308_v5 = vpop.f32.mrf.mxu0  ;;  %12620 = vmatpush3.bf16.msra.mxu1 %v13780_v23  ;;  %v13816_v23 = vld [vmem:[#allocation14 + $0x5b0] sm:$0xff]  }
 0x2ef   : > { %v12328_v1 = vpop.f32.mrf.mxu1  ;;  %v4642_v11 = vadd.f32 %v12307_v0, %v14940_v24  ;;  %12621 = vmatprep.subr.bf16.mxu1 %v13782_v26  ;;  %12600 = vmatpush3.bf16.msra.mxu0 %v13783_v28  ;;  %v4864_v0 = vld [vmem:[%s14817_s16 + $0x48] sm:$0xff] }
 0x2f0   : > { %v12329_v6 = vadd.f32 %v12328_v1, %v12327_v56  ;;  %v12309_v16 = vpop.f32.mrf.mxu0  ;;  %12601 = vmatprep.subr.bf16.mxu0 %v13785_v30  ;;  %v4863_v56 = vld [vmem:[%s14817_s16 + $0x40] sm:$0xff]  ;;  %v4896_v1 = vld [vmem:[%s14817_s16 + $0x148] sm:$0xff] }
 0x2f1   : > { %v12330_v12 = vpop.f32.mrf.mxu1  ;;  %v12310_v19 = vadd.f32 %v12309_v16, %v12308_v5  ;;  %v11321_v63 = vcombine.low %v4863_v56, %v4895_v59  ;;  %v11323_v5 = vcombine.low %v4864_v0, %v4896_v1  ;;  %v11324_v7 = vcombine.high %v4864_v0, %v4896_v1  ;;  %v13812_v16 = vld [vmem:[#allocation14 + $0x5b8] sm:$0xff]   ;;  %v13819_v26 = vld [vmem:[#allocation14 + $0x528] sm:$0xff]   ;;  %v13823_v30 = vld [vmem:[#allocation14 + $0x520] sm:$0xff]  }
 0x2f2   : > { %v14950_v18 = vadd.f32 %v12329_v6, %v4642_v11  ;;  %12622 = vmatpush3.bf16.msra.mxu1 %v13784_v29  ;;  %v11322_v6 = vcombine.high %v4863_v56, %v4895_v59  ;;  %v13820_v28 = vld [vmem:[#allocation14 + $0x5a8] sm:$0xff]   ;;  %v13821_v29 = vld [vmem:[#allocation14 + $0x560] sm:$0xff]  }
 0x2f3   : > { %v12331_v20 = vpop.f32.mrf.mxu1  ;;  %v4645_v24 = vadd.f32 %v12310_v19, %v14943_v33  ;;  %12623 = vmatprep.subr.bf16.mxu1 %v13786_v31  ;;  %12602 = vmatpush3.bf16.msra.mxu0 %v13787_v32  ;;  %v13789_v33 = vld [vmem:[#allocation14 + $0x460] sm:$0xff]   ;;  %v13813_v19 = vld [vmem:[#allocation14 + $0x570] sm:$0xff]   ;;  %v13825_v32 = vld [vmem:[#allocation14 + $0x558] sm:$0xff]  }
 0x2f4   : > { %v12332_v22 = vadd.f32 %v12331_v20, %v12330_v12  ;;  %12603 = vmatprep.subr.bf16.mxu0 %v13789_v33  ;;  %9695 = vmatprep.mubr.bf16.mxu0 %v11322_v6  ;;  %v13824_v31 = vld [vmem:[#allocation14 + $0x5a0] sm:$0xff]   ;;  %v13827_v33 = vld [vmem:[#allocation14 + $0x518] sm:$0xff]  }
 0x2f5   : > { %9736 = vmatprep.mubr.bf16.mxu1 %v11324_v7  ;;  %v13842_v6 = vld [vmem:[#allocation14 + $0x6f8] sm:$0xff]  }
 0x2f6   : > { %v14953_v27 = vadd.f32 %v12332_v22, %v4645_v24  ;;  %12624 = vmatpush3.bf16.msra.mxu1 %v13788_v34  ;;  %v13817_v24 = vld [vmem:[#allocation14 + $0x568] sm:$0xff]   ;;  %v13826_v34 = vld [vmem:[#allocation14 + $0x5d8] sm:$0xff]  }
 0x2f7   : > { %12625 = vmatprep.subr.bf16.mxu1 %v13790_v35  ;;  %12604 = vmatpush3.bf16.msra.mxu0 %v13791_v37  ;;  %v13828_v35 = vld [vmem:[#allocation14 + $0x598] sm:$0xff]   ;;  %v13829_v37 = vld [vmem:[#allocation14 + $0x550] sm:$0xff]  }
 0x2f8   : > { %12605 = vmatprep.subr.bf16.mxu0 %v13793_v36  ;;  %v13831_v36 = vld [vmem:[#allocation14 + $0x510] sm:$0xff]  }
 0x2fa   : > { %12626 = vmatpush3.bf16.msra.mxu1 %v13792_v38  ;;  %v13830_v38 = vld [vmem:[#allocation14 + $0x5d0] sm:$0xff]  }
 0x2fb   : > { %12627 = vmatprep.subr.bf16.mxu1 %v13794_v39  ;;  %12606 = vmatpush3.bf16.msra.mxu0 %v13795_v40  ;;  %v13832_v39 = vld [vmem:[#allocation14 + $0x590] sm:$0xff]   ;;  %v13833_v40 = vld [vmem:[#allocation14 + $0x548] sm:$0xff]  }
 0x2fc   : > { %12607 = vmatprep.subr.bf16.mxu0 %v13797_v42  ;;  %v13835_v42 = vld [vmem:[#allocation14 + $0x508] sm:$0xff]  }
 0x2fe   : > { %12628 = vmatpush3.bf16.msra.mxu1 %v13796_v41  ;;  %v13834_v41 = vld [vmem:[#allocation14 + $0x5c8] sm:$0xff]  }
 0x2ff   : > { %12629 = vmatprep.subr.bf16.mxu1 %v13798_v43  ;;  %12608 = vmatpush3.bf16.msra.mxu0 %v13799_v44  ;;  %v13836_v43 = vld [vmem:[#allocation14 + $0x588] sm:$0xff]   ;;  %v13837_v44 = vld [vmem:[#allocation14 + $0x540] sm:$0xff]  }
 0x300   : > { %12609 = vmatprep.subr.bf16.mxu0 %v13801_v47  ;;  %v13838_v47 = vld [vmem:[#allocation14 + $0x5c0] sm:$0xff]  }
 0x302   : > { %12630 = vmatpush3.bf16.msra.mxu1 %v13800_v46 }
 0x303   : > { %12631 = vmatprep.subr.bf16.mxu1 %v13802_v45  ;;  %12610 = vmatpush3.bf16.msra.mxu0 %v13803_v48  ;;  %v13839_v48 = vld [vmem:[#allocation14 + $0x500] sm:$0xff]  }
 0x304   : > { %12611 = vmatprep.subr.bf16.mxu0 %v13805_v50  ;;  %v13840_v50 = vld [vmem:[#allocation14 + $0x580] sm:$0xff]  }
 0x306   : > { %12632 = vmatpush3.bf16.msra.mxu1 %v13804_v49 }
 0x307   : > { %12633 = vmatprep.subr.bf16.mxu1 %v13806_v53  ;;  %12612 = vmatpush3.bf16.msra.mxu0 %v13807_v54  ;;  %v4865_v53 = vld [vmem:[%s14817_s16 + $0x50] sm:$0xff] }
 0x308   : > { %12641 = vmatprep.subr.bf16.mxu0 %v13809_v8  ;;  %v4897_v54 = vld [vmem:[%s14817_s16 + $0x150] sm:$0xff] }
 0x309   : > { %v11325_v56 = vcombine.low %v4865_v53, %v4897_v54 }
 0x30a   : > { %v12349_v52 = vpop.f32.mrf.mxu0  ;;  %12634 = vmatpush3.bf16.msra.mxu1 %v13808_v60  ;;  %9696 = vmatmul.mubr.bf16.vlgmr.msra.gmra.mxu0 %v11321_v63 }
 0x30b   : > { %12663 = vmatprep.subr.bf16.mxu1 %v13810_v9  ;;  %12642 = vmatpush3.bf16.msra.mxu0 %v13811_v13  ;;  %v13843_v9 = vld [vmem:[#allocation14 + $0x638] sm:$0xff]  }
 0x30c   : > { %v12350_v55 = vpop.f32.mrf.mxu0  ;;  %12643 = vmatprep.subr.bf16.mxu0 %v13813_v19  ;;  %v13848_v19 = vld [vmem:[#allocation14 + $0x6b0] sm:$0xff]  }
 0x30d   : > { %v12371_v51 = vpop.f32.mrf.mxu1  ;;  %v12351_v61 = vadd.f32 %v12350_v55, %v12349_v52  ;;  %9737 = vmatmul.mubr.bf16.vlgmr.msra.gmra.mxu1 %v11323_v5  ;;  %v4866_v55 = vld [vmem:[%s14817_s16 + $0x58] sm:$0xff] }
 0x30e   : > { %v12352_v2 = vpop.f32.mrf.mxu0  ;;  %12664 = vmatpush3.bf16.msra.mxu1 %v13812_v16 }
 0x30f   : > { %v12372_v58 = vpop.f32.mrf.mxu1  ;;  %v4724_v10 = vadd.f32 %v12351_v61, %v14950_v18  ;;  %v13814_v18 = vld [vmem:[#allocation14 + $0x5f0] sm:$0xff]   ;;  %12644 = vmatpush3.bf16.msra.mxu0 %v13815_v21  ;;  %v11326_v61 = vcombine.high %v4865_v53, %v4897_v54  ;;  %v13851_v21 = vld [vmem:[#allocation14 + $0x628] sm:$0xff]   ;;  %v13876_v53 = vld [vmem:[#allocation14 + $0x7b8] sm:$0xff]  }
 0x310   : > { %v12373_v62 = vadd.f32 %v12372_v58, %v12371_v51  ;;  %v12353_v11 = vpop.f32.mrf.mxu0  ;;  %12665 = vmatprep.subr.bf16.mxu1 %v13814_v18  ;;  %12645 = vmatprep.subr.bf16.mxu0 %v13817_v24  ;;  %v13849_v18 = vld [vmem:[#allocation14 + $0x668] sm:$0xff]   ;;  %v13854_v24 = vld [vmem:[#allocation14 + $0x6e0] sm:$0xff]   ;;  %v13877_v54 = vld [vmem:[#allocation14 + $0x770] sm:$0xff]  }
 0x311   : > { %v12374_v4 = vpop.f32.mrf.mxu1  ;;  %v12354_v14 = vadd.f32 %v12353_v11, %v12352_v2  ;;  %9777 = vmatprep.mubr.bf16.mxu0 %v11326_v61  ;;  %v13844_v11 = vld [vmem:[#allocation14 + $0x6b8] sm:$0xff]   ;;  %v13882_v61 = vld [vmem:[#allocation14 + $0x7e8] sm:$0xff]  }
 0x312   : > { %v14960_v17 = vadd.f32 %v12373_v62, %v4724_v10  ;;  %12666 = vmatpush3.bf16.msra.mxu1 %v13816_v23  ;;  %v4898_v62 = vld [vmem:[%s14817_s16 + $0x158] sm:$0xff]  ;;  %v13853_v23 = vld [vmem:[#allocation14 + $0x660] sm:$0xff]  }
 0x313   : > { %v12375_v12 = vpop.f32.mrf.mxu1  ;;  %v4727_v20 = vadd.f32 %v12354_v14, %v14953_v27  ;;  %12667 = vmatprep.subr.bf16.mxu1 %v13818_v25  ;;  %12646 = vmatpush3.bf16.msra.mxu0 %v13819_v26  ;;  %v13822_v27 = vld [vmem:[#allocation14 + $0x5e0] sm:$0xff]   ;;  %v11327_v1 = vcombine.low %v4866_v55, %v4898_v62  ;;  %v11328_v2 = vcombine.high %v4866_v55, %v4898_v62  ;;  %v13845_v14 = vld [vmem:[#allocation14 + $0x670] sm:$0xff]   ;;  %v13883_v62 = vld [vmem:[#allocation14 + $0x728] sm:$0xff]  }
 0x314   : > { %v12376_v15 = vadd.f32 %v12375_v12, %v12374_v4  ;;  %12647 = vmatprep.subr.bf16.mxu0 %v13821_v29  ;;  %v13841_v4 = vld [vmem:[#allocation14 + $0x678] sm:$0xff]   ;;  %v13855_v25 = vld [vmem:[#allocation14 + $0x620] sm:$0xff]   ;;  %v13878_v55 = vld [vmem:[#allocation14 + $0x7f0] sm:$0xff]  }
 0x315   : > { %9818 = vmatprep.mubr.bf16.mxu1 %v11328_v2  ;;  %v13856_v26 = vld [vmem:[#allocation14 + $0x6a0] sm:$0xff]   ;;  %v13859_v29 = vld [vmem:[#allocation14 + $0x618] sm:$0xff]  }
 0x316   : > { %v14963_v22 = vadd.f32 %v12376_v15, %v4727_v20  ;;  %12668 = vmatpush3.bf16.msra.mxu1 %v13820_v28  ;;  %v13846_v15 = vld [vmem:[#allocation14 + $0x6f0] sm:$0xff]   ;;  %v13857_v28 = vld [vmem:[#allocation14 + $0x658] sm:$0xff]   ;;  %v13887_v2 = vld [vmem:[#allocation14 + $0x720] sm:$0xff]  }
 0x317   : > { %12669 = vmatprep.subr.bf16.mxu1 %v13822_v27  ;;  %12648 = vmatpush3.bf16.msra.mxu0 %v13823_v30  ;;  %v13860_v27 = vld [vmem:[#allocation14 + $0x698] sm:$0xff]   ;;  %v13861_v30 = vld [vmem:[#allocation14 + $0x650] sm:$0xff]  }
 0x318   : > { %12649 = vmatprep.subr.bf16.mxu0 %v13825_v32  ;;  %v13863_v32 = vld [vmem:[#allocation14 + $0x610] sm:$0xff]  }
 0x31a   : > { %12670 = vmatpush3.bf16.msra.mxu1 %v13824_v31  ;;  %v13862_v31 = vld [vmem:[#allocation14 + $0x6d0] sm:$0xff]  }
 0x31b   : > { %12671 = vmatprep.subr.bf16.mxu1 %v13826_v34  ;;  %12650 = vmatpush3.bf16.msra.mxu0 %v13827_v33  ;;  %v13864_v34 = vld [vmem:[#allocation14 + $0x690] sm:$0xff]   ;;  %v13865_v33 = vld [vmem:[#allocation14 + $0x648] sm:$0xff]  }
 0x31c   : > { %12651 = vmatprep.subr.bf16.mxu0 %v13829_v37  ;;  %v13867_v37 = vld [vmem:[#allocation14 + $0x608] sm:$0xff]  }
 0x31e   : > { %12672 = vmatpush3.bf16.msra.mxu1 %v13828_v35  ;;  %v13866_v35 = vld [vmem:[#allocation14 + $0x6c8] sm:$0xff]  }
 0x31f   : > { %12673 = vmatprep.subr.bf16.mxu1 %v13830_v38  ;;  %12652 = vmatpush3.bf16.msra.mxu0 %v13831_v36  ;;  %v13868_v38 = vld [vmem:[#allocation14 + $0x688] sm:$0xff]   ;;  %v13869_v36 = vld [vmem:[#allocation14 + $0x640] sm:$0xff]  }
 0x320   : > { %12653 = vmatprep.subr.bf16.mxu0 %v13833_v40  ;;  %v13871_v40 = vld [vmem:[#allocation14 + $0x600] sm:$0xff]  }
 0x322   : > { %12674 = vmatpush3.bf16.msra.mxu1 %v13832_v39  ;;  %v13870_v39 = vld [vmem:[#allocation14 + $0x6c0] sm:$0xff]  }
 0x323   : > { %12675 = vmatprep.subr.bf16.mxu1 %v13834_v41  ;;  %12654 = vmatpush3.bf16.msra.mxu0 %v13835_v42  ;;  %v13872_v41 = vld [vmem:[#allocation14 + $0x680] sm:$0xff]  }
 0x324   : > { %12655 = vmatprep.subr.bf16.mxu0 %v13837_v44  ;;  %v4867_v42 = vld [vmem:[%s14817_s16 + $0x60] sm:$0xff] }
 0x326   : > { %12676 = vmatpush3.bf16.msra.mxu1 %v13836_v43  ;;  %v4899_v43 = vld [vmem:[%s14817_s16 + $0x160] sm:$0xff] }
 0x327   : > { %12677 = vmatprep.subr.bf16.mxu1 %v13838_v47  ;;  %12656 = vmatpush3.bf16.msra.mxu0 %v13839_v48  ;;  %v11329_v44 = vcombine.low %v4867_v42, %v4899_v43  ;;  %v4868_v47 = vld [vmem:[%s14817_s16 + $0x68] sm:$0xff] }
 0x328   : > { %12685 = vmatprep.subr.bf16.mxu0 %v13841_v4  ;;  %v13888_v4 = vld [vmem:[#allocation14 + $0x7a0] sm:$0xff]  }
 0x32a   : > { %v12393_v46 = vpop.f32.mrf.mxu0  ;;  %12678 = vmatpush3.bf16.msra.mxu1 %v13840_v50  ;;  %9778 = vmatmul.mubr.bf16.vlgmr.msra.gmra.mxu0 %v11325_v56  ;;  %v13873_v50 = vld [vmem:[#allocation14 + $0x778] sm:$0xff]   ;;  %v13881_v56 = vld [vmem:[#allocation14 + $0x768] sm:$0xff]  }
 0x32b   : > { %12707 = vmatprep.subr.bf16.mxu1 %v13842_v6  ;;  %12686 = vmatpush3.bf16.msra.mxu0 %v13843_v9  ;;  %v13890_v6 = vld [vmem:[#allocation14 + $0x7d8] sm:$0xff]   ;;  %v13894_v9 = vld [vmem:[#allocation14 + $0x7d0] sm:$0xff]  }
 0x32c   : > { %v12394_v49 = vpop.f32.mrf.mxu0  ;;  %12687 = vmatprep.subr.bf16.mxu0 %v13845_v14  ;;  %v13898_v14 = vld [vmem:[#allocation14 + $0x7c8] sm:$0xff]  }
 0x32d   : > { %v12415_v45 = vpop.f32.mrf.mxu1  ;;  %v12395_v52 = vadd.f32 %v12394_v49, %v12393_v46  ;;  %9819 = vmatmul.mubr.bf16.vlgmr.msra.gmra.mxu1 %v11327_v1  ;;  %v11330_v46 = vcombine.high %v4867_v42, %v4899_v43  ;;  %v13886_v1 = vld [vmem:[#allocation14 + $0x7e0] sm:$0xff]  }
 0x32e   : > { %v12396_v60 = vpop.f32.mrf.mxu0  ;;  %12708 = vmatpush3.bf16.msra.mxu1 %v13844_v11  ;;  %v13896_v11 = vld [vmem:[#allocation14 + $0x790] sm:$0xff]   ;;  %v13919_v42 = vld [vmem:[#allocation14 + $0x820] sm:$0xff]  }
 0x32f   : > { %v12416_v51 = vpop.f32.mrf.mxu1  ;;  %v4806_v59 = vadd.f32 %v12395_v52, %v14960_v17  ;;  %v13847_v17 = vld [vmem:[#allocation14 + $0x630] sm:$0xff]   ;;  %12709 = vmatprep.subr.bf16.mxu1 %v13846_v15  ;;  %9859 = vmatprep.mubr.bf16.mxu0 %v11330_v46  ;;  %v13874_v52 = vld [vmem:[#allocation14 + $0x7f8] sm:$0xff]   ;;  %v13899_v15 = vld [vmem:[#allocation14 + $0x708] sm:$0xff]  }
 0x330   : > { %v12417_v58 = vadd.f32 %v12416_v51, %v12415_v45  ;;  %v12397_v63 = vpop.f32.mrf.mxu0  ;;  %12688 = vmatpush3.bf16.msra.mxu0 %v13847_v17  ;;  %v4900_v45 = vld [vmem:[%s14817_s16 + $0x168] sm:$0xff]  ;;  %v13875_v51 = vld [vmem:[#allocation14 + $0x738] sm:$0xff]   ;;  %v13901_v17 = vld [vmem:[#allocation14 + $0x740] sm:$0xff]  }
 0x331   : > { %v12418_v0 = vpop.f32.mrf.mxu1  ;;  %v12398_v7 = vadd.f32 %v12397_v63, %v12396_v60  ;;  %12689 = vmatprep.subr.bf16.mxu0 %v13849_v18  ;;  %v11331_v48 = vcombine.low %v4868_v47, %v4900_v45  ;;  %v11332_v49 = vcombine.high %v4868_v47, %v4900_v45  ;;  %v13880_v60 = vld [vmem:[#allocation14 + $0x7b0] sm:$0xff]   ;;  %v13889_v63 = vld [vmem:[#allocation14 + $0x758] sm:$0xff]   ;;  %v13903_v18 = vld [vmem:[#allocation14 + $0x700] sm:$0xff]  }
 0x332   : > { %v4847_v5 = vadd.f32 %v12417_v58, %v4806_v59  ;;  %12710 = vmatpush3.bf16.msra.mxu1 %v13848_v19  ;;  %v13879_v58 = vld [vmem:[#allocation14 + $0x730] sm:$0xff]   ;;  %v13884_v59 = vld [vmem:[#allocation14 + $0x7a8] sm:$0xff]   ;;  %v13902_v19 = vld [vmem:[#allocation14 + $0x7c0] sm:$0xff]  }
 0x333   : > { %v12419_v8 = vpop.f32.mrf.mxu1  ;;  %v4809_v13 = vadd.f32 %v12398_v7, %v14963_v22  ;;  %v13852_v22 = vld [vmem:[#allocation14 + $0x6a8] sm:$0xff]   ;;  %9900 = vmatprep.mubr.bf16.mxu1 %v11332_v49  ;;  %v13892_v7 = vld [vmem:[#allocation14 + $0x798] sm:$0xff]   ;;  %v13920_v43 = vld [vmem:[#allocation14 + $0x8a0] sm:$0xff]  }
 0x334   : > { %v12420_v10 = vadd.f32 %v12419_v8, %v12418_v0  ;;  %v14971_v12 = vadd.f32 %v4847_v5, %v14892_v57  ;;  %v13850_v57 = vld [vmem:[#allocation14 + $0x6e8] sm:$0xff]   ;;  %12690 = vmatpush3.bf16.msra.mxu0 %v13851_v21  ;;  %v13885_v0 = vld [vmem:[#allocation14 + $0x760] sm:$0xff]   ;;  %v13891_v5 = vld [vmem:[#allocation14 + $0x718] sm:$0xff]  }
 0x335   : > { %12711 = vmatprep.subr.bf16.mxu1 %v13850_v57  ;;  %12691 = vmatprep.subr.bf16.mxu0 %v13853_v23  ;;  %v13893_v8 = vld [vmem:[#allocation14 + $0x750] sm:$0xff]   ;;  %v13904_v57 = vld [vmem:[#allocation14 + $0x780] sm:$0xff]   ;;  %v4870_v23 = vld [vmem:[%s14817_s16 + $0x78] sm:$0xff] }
 0x336   : > { %15396 = vst [vmem:[#allocation27_spill] sm:$0xff] %v14971_v12  ;;  %v4850_v16 = vadd.f32 %v12420_v10, %v4809_v13  ;;  %12712 = vmatpush3.bf16.msra.mxu1 %v13852_v22  ;;  %v13895_v10 = vld [vmem:[#allocation14 + $0x710] sm:$0xff]   ;;  %v13897_v13 = vld [vmem:[#allocation14 + $0x748] sm:$0xff]   ;;  %v13922_v46 = vld [vmem:[#allocation14 + $0x8d8] sm:$0xff]  }
 0x337   : > { %12713 = vmatprep.subr.bf16.mxu1 %v13854_v24  ;;  %v4869_v21 = vld [vmem:[%s14817_s16 + $0x70] sm:$0xff]  ;;  %v4902_v24 = vld [vmem:[%s14817_s16 + $0x178] sm:$0xff] }
 0x338   : > { %v14975_v20 = vadd.f32 %v4850_v16, %v14895_v3  ;;  %12692 = vmatpush3.bf16.msra.mxu0 %v13855_v25  ;;  %v13858_v3 = vld [vmem:[#allocation14 + $0x6d8] sm:$0xff]   ;;  %v13900_v16 = vld [vmem:[#allocation14 + $0x788] sm:$0xff]   ;;  %v4901_v22 = vld [vmem:[%s14817_s16 + $0x170] sm:$0xff] }
 0x339   : > { %12693 = vmatprep.subr.bf16.mxu0 %v13857_v28  ;;  %v11333_v25 = vcombine.low %v4869_v21, %v4901_v22  ;;  %v11335_v28 = vcombine.low %v4870_v23, %v4902_v24  ;;  %v13923_v47 = vld [vmem:[#allocation14 + $0x818] sm:$0xff]   ;;  %v13926_v49 = vld [vmem:[#allocation14 + $0x8d0] sm:$0xff]  }
 0x33a   : > { %15397 = vst [vmem:[#allocation28_spill] sm:$0xff] %v14975_v20  ;;  %12714 = vmatpush3.bf16.msra.mxu1 %v13856_v26  ;;  %v11334_v26 = vcombine.high %v4869_v21, %v4901_v22  ;;  %v13924_v45 = vld [vmem:[#allocation14 + $0x898] sm:$0xff]   ;;  %v13951_v21 = vld [vmem:[#allocation14 + $0x920] sm:$0xff]  }
 0x33b   : > { %12715 = vmatprep.subr.bf16.mxu1 %v13858_v3  ;;  %v11336_v3 = vcombine.high %v4870_v23, %v4902_v24  ;;  %v13952_v22 = vld [vmem:[#allocation14 + $0x9a0] sm:$0xff]   ;;  %v13953_v23 = vld [vmem:[#allocation14 + $0x958] sm:$0xff]  }
 0x33c   : > { %12694 = vmatpush3.bf16.msra.mxu0 %v13859_v29  ;;  %v13905_v29 = vld [vmem:[#allocation14 + $0x878] sm:$0xff]  }
 0x33d   : > { %12695 = vmatprep.subr.bf16.mxu0 %v13861_v30  ;;  %v13907_v30 = vld [vmem:[#allocation14 + $0x838] sm:$0xff]  }
 0x33e   : > { %12716 = vmatpush3.bf16.msra.mxu1 %v13860_v27  ;;  %v13906_v27 = vld [vmem:[#allocation14 + $0x8f8] sm:$0xff]  }
 0x33f   : > { %12717 = vmatprep.subr.bf16.mxu1 %v13862_v31  ;;  %v13908_v31 = vld [vmem:[#allocation14 + $0x8b8] sm:$0xff]  }
 0x340   : > { %12696 = vmatpush3.bf16.msra.mxu0 %v13863_v32  ;;  %v13909_v32 = vld [vmem:[#allocation14 + $0x870] sm:$0xff]   ;;  %v13954_v24 = vld [vmem:[#allocation14 + $0x9d8] sm:$0xff]  }
 0x341   : > { %12697 = vmatprep.subr.bf16.mxu0 %v13865_v33  ;;  %v13911_v33 = vld [vmem:[#allocation14 + $0x830] sm:$0xff]  }
 0x342   : > { %12718 = vmatpush3.bf16.msra.mxu1 %v13864_v34  ;;  %v13910_v34 = vld [vmem:[#allocation14 + $0x8f0] sm:$0xff]  }
 0x343   : > { %12719 = vmatprep.subr.bf16.mxu1 %v13866_v35  ;;  %v13912_v35 = vld [vmem:[#allocation14 + $0x8b0] sm:$0xff]  }
 0x344   : > { %12698 = vmatpush3.bf16.msra.mxu0 %v13867_v37  ;;  %v13913_v37 = vld [vmem:[#allocation14 + $0x868] sm:$0xff]  }
 0x345   : > { %12699 = vmatprep.subr.bf16.mxu0 %v13869_v36  ;;  %v13915_v36 = vld [vmem:[#allocation14 + $0x828] sm:$0xff]  }
 0x346   : > { %12720 = vmatpush3.bf16.msra.mxu1 %v13868_v38  ;;  %v13914_v38 = vld [vmem:[#allocation14 + $0x8e8] sm:$0xff]  }
 0x347   : > { %12721 = vmatprep.subr.bf16.mxu1 %v13870_v39  ;;  %v13916_v39 = vld [vmem:[#allocation14 + $0x8a8] sm:$0xff]  }
 0x348   : > { %12700 = vmatpush3.bf16.msra.mxu0 %v13871_v40  ;;  %v13917_v40 = vld [vmem:[#allocation14 + $0x860] sm:$0xff]  }
 0x349   : > { %12729 = vmatprep.subr.bf16.mxu0 %v13873_v50  ;;  %v13927_v50 = vld [vmem:[#allocation14 + $0x810] sm:$0xff]  }
 0x34a   : > { %12722 = vmatpush3.bf16.msra.mxu1 %v13872_v41  ;;  %v13918_v41 = vld [vmem:[#allocation14 + $0x8e0] sm:$0xff]  }
 0x34b   : > { %9860 = vmatmul.mubr.bf16.vlgmr.msra.gmra.mxu0 %v11329_v44  ;;  %12751 = vmatprep.subr.bf16.mxu1 %v13874_v52  ;;  %v13921_v44 = vld [vmem:[#allocation14 + $0x858] sm:$0xff]   ;;  %v13928_v52 = vld [vmem:[#allocation14 + $0x890] sm:$0xff]  }
 0x34c   : > { %12730 = vmatpush3.bf16.msra.mxu0 %v13875_v51  ;;  %9941 = vmatprep.mubr.bf16.mxu0 %v11334_v26  ;;  %v13929_v51 = vld [vmem:[#allocation14 + $0x848] sm:$0xff]   ;;  %v13956_v26 = vld [vmem:[#allocation14 + $0x998] sm:$0xff]  }
 0x34d   : > { %9901 = vmatmul.mubr.bf16.vlgmr.msra.gmra.mxu1 %v11331_v48  ;;  %12731 = vmatprep.subr.bf16.mxu0 %v13877_v54  ;;  %v13925_v48 = vld [vmem:[#allocation14 + $0x850] sm:$0xff]   ;;  %v13931_v54 = vld [vmem:[#allocation14 + $0x808] sm:$0xff]  }
 0x34e   : > { %12752 = vmatpush3.bf16.msra.mxu1 %v13876_v53  ;;  %9982 = vmatprep.mubr.bf16.mxu1 %v11336_v3  ;;  %v13930_v53 = vld [vmem:[#allocation14 + $0x8c8] sm:$0xff]   ;;  %v13958_v3 = vld [vmem:[#allocation14 + $0x9d0] sm:$0xff]  }
 0x34f   : > { %12753 = vmatprep.subr.bf16.mxu1 %v13878_v55  ;;  %v13932_v55 = vld [vmem:[#allocation14 + $0x888] sm:$0xff]  }
 0x350   : > { %12732 = vmatpush3.bf16.msra.mxu0 %v13879_v58  ;;  %v13933_v58 = vld [vmem:[#allocation14 + $0x840] sm:$0xff]  }
 0x351   : > { %12733 = vmatprep.subr.bf16.mxu0 %v13881_v56  ;;  %v13935_v56 = vld [vmem:[#allocation14 + $0x800] sm:$0xff]  }
 0x352   : > { %12754 = vmatpush3.bf16.msra.mxu1 %v13880_v60  ;;  %v13934_v60 = vld [vmem:[#allocation14 + $0x8c0] sm:$0xff]  }
 0x353   : > { %12755 = vmatprep.subr.bf16.mxu1 %v13882_v61  ;;  %v13936_v61 = vld [vmem:[#allocation14 + $0x880] sm:$0xff]  }
 0x354   : > { %12734 = vmatpush3.bf16.msra.mxu0 %v13883_v62  ;;  %v4871_v62 = vld [vmem:[%s14817_s16 + $0x80] sm:$0xff] }
 0x355   : > { %12735 = vmatprep.subr.bf16.mxu0 %v13885_v0  ;;  %v4872_v0 = vld [vmem:[%s14817_s16 + $0x88] sm:$0xff] }
 0x356   : > { %12756 = vmatpush3.bf16.msra.mxu1 %v13884_v59  ;;  %v4903_v59 = vld [vmem:[%s14817_s16 + $0x180] sm:$0xff] }
 0x357   : > { %12757 = vmatprep.subr.bf16.mxu1 %v13886_v1  ;;  %v11337_v1 = vcombine.low %v4871_v62, %v4903_v59 }
 0x358   : > { %12736 = vmatpush3.bf16.msra.mxu0 %v13887_v2  ;;  %v11338_v2 = vcombine.high %v4871_v62, %v4903_v59  ;;  %v13983_v62 = vld [vmem:[#allocation14 + $0xa20] sm:$0xff]  }
 0x359   : > { %12737 = vmatprep.subr.bf16.mxu0 %v13889_v63  ;;  %v13984_v59 = vld [vmem:[#allocation14 + $0xaa0] sm:$0xff]  }
 0x35a   : > { %12758 = vmatpush3.bf16.msra.mxu1 %v13888_v4  ;;  %v4904_v4 = vld [vmem:[%s14817_s16 + $0x188] sm:$0xff] }
 0x35b   : > { %12759 = vmatprep.subr.bf16.mxu1 %v13890_v6  ;;  %v11339_v63 = vcombine.low %v4872_v0, %v4904_v4  ;;  %v11340_v6 = vcombine.high %v4872_v0, %v4904_v4  ;;  %v13985_v0 = vld [vmem:[#allocation14 + $0xa58] sm:$0xff]  }
 0x35c   : > { %12738 = vmatpush3.bf16.msra.mxu0 %v13891_v5  ;;  %v13937_v5 = vld [vmem:[#allocation14 + $0x978] sm:$0xff]  }
 0x35d   : > { %12739 = vmatprep.subr.bf16.mxu0 %v13893_v8  ;;  %v13939_v8 = vld [vmem:[#allocation14 + $0x938] sm:$0xff]  }
 0x35e   : > { %12760 = vmatpush3.bf16.msra.mxu1 %v13892_v7  ;;  %v13938_v7 = vld [vmem:[#allocation14 + $0x9f8] sm:$0xff]  }
 0x35f   : > { %12761 = vmatprep.subr.bf16.mxu1 %v13894_v9  ;;  %v13940_v9 = vld [vmem:[#allocation14 + $0x9b8] sm:$0xff]  }
 0x360   : > { %12740 = vmatpush3.bf16.msra.mxu0 %v13895_v10  ;;  %v13941_v10 = vld [vmem:[#allocation14 + $0x970] sm:$0xff]   ;;  %v13988_v4 = vld [vmem:[#allocation14 + $0xa98] sm:$0xff]  }
 0x361   : > { %12741 = vmatprep.subr.bf16.mxu0 %v13897_v13  ;;  %v13943_v13 = vld [vmem:[#allocation14 + $0x930] sm:$0xff]  }
 0x362   : > { %12762 = vmatpush3.bf16.msra.mxu1 %v13896_v11  ;;  %v13942_v11 = vld [vmem:[#allocation14 + $0x9f0] sm:$0xff]  }
 0x363   : > { %12763 = vmatprep.subr.bf16.mxu1 %v13898_v14  ;;  %v13944_v14 = vld [vmem:[#allocation14 + $0x9b0] sm:$0xff]  }
 0x364   : > { %12742 = vmatpush3.bf16.msra.mxu0 %v13899_v15  ;;  %v13945_v15 = vld [vmem:[#allocation14 + $0x968] sm:$0xff]  }
 0x365   : > { %12743 = vmatprep.subr.bf16.mxu0 %v13901_v17  ;;  %v13947_v17 = vld [vmem:[#allocation14 + $0x928] sm:$0xff]  }
 0x366   : > { %12764 = vmatpush3.bf16.msra.mxu1 %v13900_v16  ;;  %v13946_v16 = vld [vmem:[#allocation14 + $0x9e8] sm:$0xff]  }
 0x367   : > { %12765 = vmatprep.subr.bf16.mxu1 %v13902_v19  ;;  %v13948_v19 = vld [vmem:[#allocation14 + $0x9a8] sm:$0xff]  }
 0x368   : > { %12744 = vmatpush3.bf16.msra.mxu0 %v13903_v18  ;;  %v13949_v18 = vld [vmem:[#allocation14 + $0x960] sm:$0xff]  }
 0x369   : > { %12773 = vmatprep.subr.bf16.mxu0 %v13905_v29  ;;  %v13959_v29 = vld [vmem:[#allocation14 + $0x910] sm:$0xff]  }
 0x36a   : > { %12766 = vmatpush3.bf16.msra.mxu1 %v13904_v57  ;;  %v13950_v57 = vld [vmem:[#allocation14 + $0x9e0] sm:$0xff]  }
 0x36b   : > { %9942 = vmatmul.mubr.bf16.vlgmr.msra.gmra.mxu0 %v11333_v25  ;;  %12795 = vmatprep.subr.bf16.mxu1 %v13906_v27  ;;  %v13955_v25 = vld [vmem:[#allocation14 + $0x918] sm:$0xff]   ;;  %v13960_v27 = vld [vmem:[#allocation14 + $0x990] sm:$0xff]  }
 0x36c   : > { %12774 = vmatpush3.bf16.msra.mxu0 %v13907_v30  ;;  %10023 = vmatprep.mubr.bf16.mxu0 %v11338_v2  ;;  %v13961_v30 = vld [vmem:[#allocation14 + $0x948] sm:$0xff]   ;;  %v13987_v2 = vld [vmem:[#allocation14 + $0xa18] sm:$0xff]  }
 0x36d   : > { %9983 = vmatmul.mubr.bf16.vlgmr.msra.gmra.mxu1 %v11335_v28  ;;  %12775 = vmatprep.subr.bf16.mxu0 %v13909_v32  ;;  %v13957_v28 = vld [vmem:[#allocation14 + $0x950] sm:$0xff]   ;;  %v13963_v32 = vld [vmem:[#allocation14 + $0x908] sm:$0xff]  }
 0x36e   : > { %12796 = vmatpush3.bf16.msra.mxu1 %v13908_v31  ;;  %10064 = vmatprep.mubr.bf16.mxu1 %v11340_v6  ;;  %v13962_v31 = vld [vmem:[#allocation14 + $0x9c8] sm:$0xff]   ;;  %v13990_v6 = vld [vmem:[#allocation14 + $0xad0] sm:$0xff]  }
 0x36f   : > { %12797 = vmatprep.subr.bf16.mxu1 %v13910_v34  ;;  %v13964_v34 = vld [vmem:[#allocation14 + $0x988] sm:$0xff]  }
 0x370   : > { %12776 = vmatpush3.bf16.msra.mxu0 %v13911_v33  ;;  %v13965_v33 = vld [vmem:[#allocation14 + $0x940] sm:$0xff]  }
 0x371   : > { %12777 = vmatprep.subr.bf16.mxu0 %v13913_v37  ;;  %v13967_v37 = vld [vmem:[#allocation14 + $0x900] sm:$0xff]  }
 0x372   : > { %12798 = vmatpush3.bf16.msra.mxu1 %v13912_v35  ;;  %v13966_v35 = vld [vmem:[#allocation14 + $0x9c0] sm:$0xff]  }
 0x373   : > { %12799 = vmatprep.subr.bf16.mxu1 %v13914_v38  ;;  %v13968_v38 = vld [vmem:[#allocation14 + $0x980] sm:$0xff]  }
 0x374   : > { %12778 = vmatpush3.bf16.msra.mxu0 %v13915_v36  ;;  %v4873_v36 = vld [vmem:[%s14817_s16 + $0x90] sm:$0xff] }
 0x375   : > { %12779 = vmatprep.subr.bf16.mxu0 %v13917_v40 }
 0x376   : > { %12800 = vmatpush3.bf16.msra.mxu1 %v13916_v39  ;;  %v4905_v39 = vld [vmem:[%s14817_s16 + $0x190] sm:$0xff] }
 0x377   : > { %12801 = vmatprep.subr.bf16.mxu1 %v13918_v41  ;;  %v11341_v40 = vcombine.low %v4873_v36, %v4905_v39  ;;  %v11342_v41 = vcombine.high %v4873_v36, %v4905_v39  ;;  %v14015_v36 = vld [vmem:[#allocation14 + $0xb20] sm:$0xff]  }
 0x378   : > { %12780 = vmatpush3.bf16.msra.mxu0 %v13919_v42  ;;  %v4874_v42 = vld [vmem:[%s14817_s16 + $0x98] sm:$0xff]  ;;  %v14016_v39 = vld [vmem:[#allocation14 + $0xba0] sm:$0xff]  }
 0x379   : > { %12781 = vmatprep.subr.bf16.mxu0 %v13921_v44 }
 0x37a   : > { %12802 = vmatpush3.bf16.msra.mxu1 %v13920_v43  ;;  %v4906_v43 = vld [vmem:[%s14817_s16 + $0x198] sm:$0xff] }
 0x37b   : > { %12803 = vmatprep.subr.bf16.mxu1 %v13922_v46  ;;  %v11343_v44 = vcombine.low %v4874_v42, %v4906_v43  ;;  %v11344_v46 = vcombine.high %v4874_v42, %v4906_v43  ;;  %v14019_v42 = vld [vmem:[#allocation14 + $0xb18] sm:$0xff]  }
 0x37c   : > { %12782 = vmatpush3.bf16.msra.mxu0 %v13923_v47  ;;  %v13969_v47 = vld [vmem:[#allocation14 + $0xa78] sm:$0xff]  }
 0x37d   : > { %12783 = vmatprep.subr.bf16.mxu0 %v13925_v48  ;;  %v13971_v48 = vld [vmem:[#allocation14 + $0xa38] sm:$0xff]  }
 0x37e   : > { %12804 = vmatpush3.bf16.msra.mxu1 %v13924_v45  ;;  %v13970_v45 = vld [vmem:[#allocation14 + $0xaf8] sm:$0xff]  }
 0x37f   : > { %12805 = vmatprep.subr.bf16.mxu1 %v13926_v49  ;;  %v13972_v49 = vld [vmem:[#allocation14 + $0xab8] sm:$0xff]  }
 0x380   : > { %12784 = vmatpush3.bf16.msra.mxu0 %v13927_v50  ;;  %v13973_v50 = vld [vmem:[#allocation14 + $0xa70] sm:$0xff]   ;;  %v14020_v43 = vld [vmem:[#allocation14 + $0xb98] sm:$0xff]  }
 0x381   : > { %12785 = vmatprep.subr.bf16.mxu0 %v13929_v51  ;;  %v13975_v51 = vld [vmem:[#allocation14 + $0xa30] sm:$0xff]  }
 0x382   : > { %12806 = vmatpush3.bf16.msra.mxu1 %v13928_v52  ;;  %v13974_v52 = vld [vmem:[#allocation14 + $0xaf0] sm:$0xff]  }
 0x383   : > { %12807 = vmatprep.subr.bf16.mxu1 %v13930_v53  ;;  %v13976_v53 = vld [vmem:[#allocation14 + $0xab0] sm:$0xff]  }
 0x384   : > { %12786 = vmatpush3.bf16.msra.mxu0 %v13931_v54  ;;  %v13977_v54 = vld [vmem:[#allocation14 + $0xa68] sm:$0xff]  }
 0x385   : > { %12787 = vmatprep.subr.bf16.mxu0 %v13933_v58  ;;  %v13979_v58 = vld [vmem:[#allocation14 + $0xa28] sm:$0xff]  }
 0x386   : > { %12808 = vmatpush3.bf16.msra.mxu1 %v13932_v55  ;;  %v13978_v55 = vld [vmem:[#allocation14 + $0xae8] sm:$0xff]  }
 0x387   : > { %12809 = vmatprep.subr.bf16.mxu1 %v13934_v60  ;;  %v13980_v60 = vld [vmem:[#allocation14 + $0xaa8] sm:$0xff]  }
 0x388   : > { %12788 = vmatpush3.bf16.msra.mxu0 %v13935_v56  ;;  %v13981_v56 = vld [vmem:[#allocation14 + $0xa60] sm:$0xff]  }
 0x389   : > { %12817 = vmatprep.subr.bf16.mxu0 %v13937_v5  ;;  %v13991_v5 = vld [vmem:[#allocation14 + $0xa10] sm:$0xff]  }
 0x38a   : > { %12810 = vmatpush3.bf16.msra.mxu1 %v13936_v61  ;;  %v13982_v61 = vld [vmem:[#allocation14 + $0xae0] sm:$0xff]  }
 0x38b   : > { %10024 = vmatmul.mubr.bf16.vlgmr.msra.gmra.mxu0 %v11337_v1  ;;  %12839 = vmatprep.subr.bf16.mxu1 %v13938_v7  ;;  %v13986_v1 = vld [vmem:[#allocation14 + $0xad8] sm:$0xff]   ;;  %v13992_v7 = vld [vmem:[#allocation14 + $0xa90] sm:$0xff]  }
 0x38c   : > { %12818 = vmatpush3.bf16.msra.mxu0 %v13939_v8  ;;  %10105 = vmatprep.mubr.bf16.mxu0 %v11342_v41  ;;  %v13993_v8 = vld [vmem:[#allocation14 + $0xa48] sm:$0xff]   ;;  %v14018_v41 = vld [vmem:[#allocation14 + $0xbd8] sm:$0xff]  }
 0x38d   : > { %10065 = vmatmul.mubr.bf16.vlgmr.msra.gmra.mxu1 %v11339_v63  ;;  %12819 = vmatprep.subr.bf16.mxu0 %v13941_v10  ;;  %v13989_v63 = vld [vmem:[#allocation14 + $0xa50] sm:$0xff]   ;;  %v13995_v10 = vld [vmem:[#allocation14 + $0xa08] sm:$0xff]  }
 0x38e   : > { %12840 = vmatpush3.bf16.msra.mxu1 %v13940_v9  ;;  %10146 = vmatprep.mubr.bf16.mxu1 %v11344_v46  ;;  %v13994_v9 = vld [vmem:[#allocation14 + $0xac8] sm:$0xff]   ;;  %v14022_v46 = vld [vmem:[#allocation14 + $0xbd0] sm:$0xff]  }
 0x38f   : > { %12841 = vmatprep.subr.bf16.mxu1 %v13942_v11  ;;  %v13996_v11 = vld [vmem:[#allocation14 + $0xa88] sm:$0xff]  }
 0x390   : > { %12820 = vmatpush3.bf16.msra.mxu0 %v13943_v13  ;;  %v13997_v13 = vld [vmem:[#allocation14 + $0xa40] sm:$0xff]  }
 0x391   : > { %12821 = vmatprep.subr.bf16.mxu0 %v13945_v15  ;;  %v13999_v15 = vld [vmem:[#allocation14 + $0xa00] sm:$0xff]  }
 0x392   : > { %12842 = vmatpush3.bf16.msra.mxu1 %v13944_v14  ;;  %v13998_v14 = vld [vmem:[#allocation14 + $0xac0] sm:$0xff]  }
 0x393   : > { %12843 = vmatprep.subr.bf16.mxu1 %v13946_v16  ;;  %v14000_v16 = vld [vmem:[#allocation14 + $0xa80] sm:$0xff]  }
 0x394   : > { %12822 = vmatpush3.bf16.msra.mxu0 %v13947_v17  ;;  %v4875_v17 = vld [vmem:[%s14817_s16 + $0xa0] sm:$0xff] }
 0x395   : > { %12823 = vmatprep.subr.bf16.mxu0 %v13949_v18  ;;  %v4876_v18 = vld [vmem:[%s14817_s16 + $0xa8] sm:$0xff] }
 0x396   : > { %12844 = vmatpush3.bf16.msra.mxu1 %v13948_v19  ;;  %v4907_v19 = vld [vmem:[%s14817_s16 + $0x1a0] sm:$0xff] }
 0x397   : > { %12845 = vmatprep.subr.bf16.mxu1 %v13950_v57  ;;  %v4908_v57 = vld [vmem:[%s14817_s16 + $0x1a8] sm:$0xff] }
 0x398   : > { %12824 = vmatpush3.bf16.msra.mxu0 %v13951_v21  ;;  %v11345_v21 = vcombine.low %v4875_v17, %v4907_v19 }
 0x399   : > { %12825 = vmatprep.subr.bf16.mxu0 %v13953_v23  ;;  %v11347_v23 = vcombine.low %v4876_v18, %v4908_v57 }
 0x39a   : > { %12846 = vmatpush3.bf16.msra.mxu1 %v13952_v22  ;;  %v11346_v22 = vcombine.high %v4875_v17, %v4907_v19  ;;  %v14047_v17 = vld [vmem:[#allocation14 + $0xc20] sm:$0xff]  }
 0x39b   : > { %12847 = vmatprep.subr.bf16.mxu1 %v13954_v24  ;;  %v11348_v24 = vcombine.high %v4876_v18, %v4908_v57  ;;  %v14048_v19 = vld [vmem:[#allocation14 + $0xca0] sm:$0xff]   ;;  %v14049_v18 = vld [vmem:[#allocation14 + $0xc58] sm:$0xff]  }
 0x39c   : > { %12826 = vmatpush3.bf16.msra.mxu0 %v13955_v25  ;;  %v14001_v25 = vld [vmem:[#allocation14 + $0xb78] sm:$0xff]  }
 0x39d   : > { %12827 = vmatprep.subr.bf16.mxu0 %v13957_v28  ;;  %v14003_v28 = vld [vmem:[#allocation14 + $0xb38] sm:$0xff]  }
 0x39e   : > { %12848 = vmatpush3.bf16.msra.mxu1 %v13956_v26  ;;  %v14002_v26 = vld [vmem:[#allocation14 + $0xbf8] sm:$0xff]  }
 0x39f   : > { %12849 = vmatprep.subr.bf16.mxu1 %v13958_v3  ;;  %v14004_v3 = vld [vmem:[#allocation14 + $0xbb8] sm:$0xff]  }
 0x3a0   : > { %12828 = vmatpush3.bf16.msra.mxu0 %v13959_v29  ;;  %v14005_v29 = vld [vmem:[#allocation14 + $0xb70] sm:$0xff]   ;;  %v14050_v57 = vld [vmem:[#allocation14 + $0xcd8] sm:$0xff]  }
 0x3a1   : > { %12829 = vmatprep.subr.bf16.mxu0 %v13961_v30  ;;  %v14007_v30 = vld [vmem:[#allocation14 + $0xb30] sm:$0xff]  }
 0x3a2   : > { %12850 = vmatpush3.bf16.msra.mxu1 %v13960_v27  ;;  %v14006_v27 = vld [vmem:[#allocation14 + $0xbf0] sm:$0xff]  }
 0x3a3   : > { %12851 = vmatprep.subr.bf16.mxu1 %v13962_v31  ;;  %v14008_v31 = vld [vmem:[#allocation14 + $0xbb0] sm:$0xff]  }
 0x3a4   : > { %12830 = vmatpush3.bf16.msra.mxu0 %v13963_v32  ;;  %v14009_v32 = vld [vmem:[#allocation14 + $0xb68] sm:$0xff]  }
 0x3a5   : > { %12831 = vmatprep.subr.bf16.mxu0 %v13965_v33  ;;  %v14011_v33 = vld [vmem:[#allocation14 + $0xb28] sm:$0xff]  }
 0x3a6   : > { %12852 = vmatpush3.bf16.msra.mxu1 %v13964_v34  ;;  %v14010_v34 = vld [vmem:[#allocation14 + $0xbe8] sm:$0xff]  }
 0x3a7   : > { %12853 = vmatprep.subr.bf16.mxu1 %v13966_v35  ;;  %v14012_v35 = vld [vmem:[#allocation14 + $0xba8] sm:$0xff]  }
 0x3a8   : > { %12832 = vmatpush3.bf16.msra.mxu0 %v13967_v37  ;;  %v14013_v37 = vld [vmem:[#allocation14 + $0xb60] sm:$0xff]  }
 0x3a9   : > { %12861 = vmatprep.subr.bf16.mxu0 %v13969_v47  ;;  %v14023_v47 = vld [vmem:[#allocation14 + $0xb10] sm:$0xff]  }
 0x3aa   : > { %12854 = vmatpush3.bf16.msra.mxu1 %v13968_v38  ;;  %v14014_v38 = vld [vmem:[#allocation14 + $0xbe0] sm:$0xff]  }
 0x3ab   : > { %10106 = vmatmul.mubr.bf16.vlgmr.msra.gmra.mxu0 %v11341_v40  ;;  %12883 = vmatprep.subr.bf16.mxu1 %v13970_v45  ;;  %v14017_v40 = vld [vmem:[#allocation14 + $0xb58] sm:$0xff]   ;;  %v14024_v45 = vld [vmem:[#allocation14 + $0xb90] sm:$0xff]  }
 0x3ac   : > { %12862 = vmatpush3.bf16.msra.mxu0 %v13971_v48  ;;  %10187 = vmatprep.mubr.bf16.mxu0 %v11346_v22  ;;  %v14025_v48 = vld [vmem:[#allocation14 + $0xb48] sm:$0xff]   ;;  %v14052_v22 = vld [vmem:[#allocation14 + $0xc98] sm:$0xff]  }
 0x3ad   : > { %10147 = vmatmul.mubr.bf16.vlgmr.msra.gmra.mxu1 %v11343_v44  ;;  %12863 = vmatprep.subr.bf16.mxu0 %v13973_v50  ;;  %v14021_v44 = vld [vmem:[#allocation14 + $0xb50] sm:$0xff]   ;;  %v14027_v50 = vld [vmem:[#allocation14 + $0xb08] sm:$0xff]  }
 0x3ae   : > { %12884 = vmatpush3.bf16.msra.mxu1 %v13972_v49  ;;  %10228 = vmatprep.mubr.bf16.mxu1 %v11348_v24  ;;  %v14026_v49 = vld [vmem:[#allocation14 + $0xbc8] sm:$0xff]   ;;  %v14054_v24 = vld [vmem:[#allocation14 + $0xcd0] sm:$0xff]  }
 0x3af   : > { %12885 = vmatprep.subr.bf16.mxu1 %v13974_v52  ;;  %v14028_v52 = vld [vmem:[#allocation14 + $0xb88] sm:$0xff]  }
 0x3b0   : > { %12864 = vmatpush3.bf16.msra.mxu0 %v13975_v51  ;;  %v14029_v51 = vld [vmem:[#allocation14 + $0xb40] sm:$0xff]  }
 0x3b1   : > { %12865 = vmatprep.subr.bf16.mxu0 %v13977_v54  ;;  %v14031_v54 = vld [vmem:[#allocation14 + $0xb00] sm:$0xff]  }
 0x3b2   : > { %12886 = vmatpush3.bf16.msra.mxu1 %v13976_v53  ;;  %v14030_v53 = vld [vmem:[#allocation14 + $0xbc0] sm:$0xff]  }
 0x3b3   : > { %12887 = vmatprep.subr.bf16.mxu1 %v13978_v55  ;;  %v14032_v55 = vld [vmem:[#allocation14 + $0xb80] sm:$0xff]  }
 0x3b4   : > { %12866 = vmatpush3.bf16.msra.mxu0 %v13979_v58  ;;  %v4877_v58 = vld [vmem:[%s14817_s16 + $0xb0] sm:$0xff] }
 0x3b5   : > { %12867 = vmatprep.subr.bf16.mxu0 %v13981_v56  ;;  %v4878_v56 = vld [vmem:[%s14817_s16 + $0xb8] sm:$0xff] }
 0x3b6   : > { %12888 = vmatpush3.bf16.msra.mxu1 %v13980_v60  ;;  %v4909_v60 = vld [vmem:[%s14817_s16 + $0x1b0] sm:$0xff] }
 0x3b7   : > { %12889 = vmatprep.subr.bf16.mxu1 %v13982_v61  ;;  %v11349_v61 = vcombine.low %v4877_v58, %v4909_v60 }
 0x3b8   : > { %12868 = vmatpush3.bf16.msra.mxu0 %v13983_v62  ;;  %v11350_v62 = vcombine.high %v4877_v58, %v4909_v60  ;;  %v14079_v58 = vld [vmem:[#allocation14 + $0xd20] sm:$0xff]  }
 0x3b9   : > { %12869 = vmatprep.subr.bf16.mxu0 %v13985_v0  ;;  %v14080_v60 = vld [vmem:[#allocation14 + $0xda0] sm:$0xff]  }
 0x3ba   : > { %12890 = vmatpush3.bf16.msra.mxu1 %v13984_v59  ;;  %v4910_v59 = vld [vmem:[%s14817_s16 + $0x1b8] sm:$0xff] }
 0x3bb   : > { %12891 = vmatprep.subr.bf16.mxu1 %v13986_v1  ;;  %v11351_v0 = vcombine.low %v4878_v56, %v4910_v59  ;;  %v11352_v1 = vcombine.high %v4878_v56, %v4910_v59  ;;  %v14081_v56 = vld [vmem:[#allocation14 + $0xd58] sm:$0xff]  }
 0x3bc   : > { %12870 = vmatpush3.bf16.msra.mxu0 %v13987_v2  ;;  %v14033_v2 = vld [vmem:[#allocation14 + $0xc78] sm:$0xff]  }
 0x3bd   : > { %12871 = vmatprep.subr.bf16.mxu0 %v13989_v63  ;;  %v14035_v63 = vld [vmem:[#allocation14 + $0xc38] sm:$0xff]  }
 0x3be   : > { %12892 = vmatpush3.bf16.msra.mxu1 %v13988_v4  ;;  %v14034_v4 = vld [vmem:[#allocation14 + $0xcf8] sm:$0xff]  }
 0x3bf   : > { %12893 = vmatprep.subr.bf16.mxu1 %v13990_v6  ;;  %v14036_v6 = vld [vmem:[#allocation14 + $0xcb8] sm:$0xff]  }
 0x3c0   : > { %12872 = vmatpush3.bf16.msra.mxu0 %v13991_v5  ;;  %v14037_v5 = vld [vmem:[#allocation14 + $0xc70] sm:$0xff]   ;;  %v14084_v59 = vld [vmem:[#allocation14 + $0xd98] sm:$0xff]  }
 0x3c1   : > { %12873 = vmatprep.subr.bf16.mxu0 %v13993_v8  ;;  %v14039_v8 = vld [vmem:[#allocation14 + $0xc30] sm:$0xff]  }
 0x3c2   : > { %12894 = vmatpush3.bf16.msra.mxu1 %v13992_v7  ;;  %v14038_v7 = vld [vmem:[#allocation14 + $0xcf0] sm:$0xff]  }
 0x3c3   : > { %12895 = vmatprep.subr.bf16.mxu1 %v13994_v9  ;;  %v14040_v9 = vld [vmem:[#allocation14 + $0xcb0] sm:$0xff]  }
 0x3c4   : > { %12874 = vmatpush3.bf16.msra.mxu0 %v13995_v10  ;;  %v14041_v10 = vld [vmem:[#allocation14 + $0xc68] sm:$0xff]  }
 0x3c5   : > { %12875 = vmatprep.subr.bf16.mxu0 %v13997_v13  ;;  %v14043_v13 = vld [vmem:[#allocation14 + $0xc28] sm:$0xff]  }
 0x3c6   : > { %12896 = vmatpush3.bf16.msra.mxu1 %v13996_v11  ;;  %v14042_v11 = vld [vmem:[#allocation14 + $0xce8] sm:$0xff]  }
 0x3c7   : > { %12897 = vmatprep.subr.bf16.mxu1 %v13998_v14  ;;  %v14044_v14 = vld [vmem:[#allocation14 + $0xca8] sm:$0xff]  }
 0x3c8   : > { %12876 = vmatpush3.bf16.msra.mxu0 %v13999_v15  ;;  %v14045_v15 = vld [vmem:[#allocation14 + $0xc60] sm:$0xff]  }
 0x3c9   : > { %12905 = vmatprep.subr.bf16.mxu0 %v14001_v25  ;;  %v14055_v25 = vld [vmem:[#allocation14 + $0xc10] sm:$0xff]  }
 0x3ca   : > { %12898 = vmatpush3.bf16.msra.mxu1 %v14000_v16  ;;  %v14046_v16 = vld [vmem:[#allocation14 + $0xce0] sm:$0xff]  }
 0x3cb   : > { %10188 = vmatmul.mubr.bf16.vlgmr.msra.gmra.mxu0 %v11345_v21  ;;  %12927 = vmatprep.subr.bf16.mxu1 %v14002_v26  ;;  %v14051_v21 = vld [vmem:[#allocation14 + $0xc18] sm:$0xff]   ;;  %v14056_v26 = vld [vmem:[#allocation14 + $0xc90] sm:$0xff]  }
 0x3cc   : > { %12906 = vmatpush3.bf16.msra.mxu0 %v14003_v28  ;;  %10269 = vmatprep.mubr.bf16.mxu0 %v11350_v62  ;;  %v14057_v28 = vld [vmem:[#allocation14 + $0xc48] sm:$0xff]   ;;  %v14083_v62 = vld [vmem:[#allocation14 + $0xd18] sm:$0xff]  }
 0x3cd   : > { %10229 = vmatmul.mubr.bf16.vlgmr.msra.gmra.mxu1 %v11347_v23  ;;  %12907 = vmatprep.subr.bf16.mxu0 %v14005_v29  ;;  %v14053_v23 = vld [vmem:[#allocation14 + $0xc50] sm:$0xff]   ;;  %v14059_v29 = vld [vmem:[#allocation14 + $0xc08] sm:$0xff]  }
 0x3ce   : > { %12928 = vmatpush3.bf16.msra.mxu1 %v14004_v3  ;;  %10310 = vmatprep.mubr.bf16.mxu1 %v11352_v1  ;;  %v14058_v3 = vld [vmem:[#allocation14 + $0xcc8] sm:$0xff]   ;;  %v14086_v1 = vld [vmem:[#allocation14 + $0xdd0] sm:$0xff]  }
 0x3cf   : > { %12929 = vmatprep.subr.bf16.mxu1 %v14006_v27  ;;  %v14060_v27 = vld [vmem:[#allocation14 + $0xc88] sm:$0xff]  }
 0x3d0   : > { %12908 = vmatpush3.bf16.msra.mxu0 %v14007_v30  ;;  %v14061_v30 = vld [vmem:[#allocation14 + $0xc40] sm:$0xff]  }
 0x3d1   : > { %12909 = vmatprep.subr.bf16.mxu0 %v14009_v32  ;;  %v14063_v32 = vld [vmem:[#allocation14 + $0xc00] sm:$0xff]  }
 0x3d2   : > { %12930 = vmatpush3.bf16.msra.mxu1 %v14008_v31  ;;  %v14062_v31 = vld [vmem:[#allocation14 + $0xcc0] sm:$0xff]  }
 0x3d3   : > { %12931 = vmatprep.subr.bf16.mxu1 %v14010_v34  ;;  %v14064_v34 = vld [vmem:[#allocation14 + $0xc80] sm:$0xff]  }
 0x3d4   : > { %12910 = vmatpush3.bf16.msra.mxu0 %v14011_v33  ;;  %v4879_v33 = vld [vmem:[%s14817_s16 + $0xc0] sm:$0xff] }
 0x3d5   : > { %12911 = vmatprep.subr.bf16.mxu0 %v14013_v37 }
 0x3d6   : > { %12932 = vmatpush3.bf16.msra.mxu1 %v14012_v35  ;;  %v4911_v35 = vld [vmem:[%s14817_s16 + $0x1c0] sm:$0xff] }
 0x3d7   : > { %12933 = vmatprep.subr.bf16.mxu1 %v14014_v38  ;;  %v11353_v37 = vcombine.low %v4879_v33, %v4911_v35  ;;  %v11354_v38 = vcombine.high %v4879_v33, %v4911_v35  ;;  %v14111_v33 = vld [vmem:[#allocation14 + $0xe20] sm:$0xff]  }
 0x3d8   : > { %12912 = vmatpush3.bf16.msra.mxu0 %v14015_v36  ;;  %v4880_v36 = vld [vmem:[%s14817_s16 + $0xc8] sm:$0xff]  ;;  %v14112_v35 = vld [vmem:[#allocation14 + $0xea0] sm:$0xff]  }
 0x3d9   : > { %12913 = vmatprep.subr.bf16.mxu0 %v14017_v40 }
 0x3da   : > { %12934 = vmatpush3.bf16.msra.mxu1 %v14016_v39  ;;  %v4912_v39 = vld [vmem:[%s14817_s16 + $0x1c8] sm:$0xff] }
 0x3db   : > { %12935 = vmatprep.subr.bf16.mxu1 %v14018_v41  ;;  %v11355_v40 = vcombine.low %v4880_v36, %v4912_v39  ;;  %v11356_v41 = vcombine.high %v4880_v36, %v4912_v39  ;;  %v14115_v36 = vld [vmem:[#allocation14 + $0xe18] sm:$0xff]  }
 0x3dc   : > { %12914 = vmatpush3.bf16.msra.mxu0 %v14019_v42  ;;  %v14065_v42 = vld [vmem:[#allocation14 + $0xd78] sm:$0xff]  }
 0x3dd   : > { %12915 = vmatprep.subr.bf16.mxu0 %v14021_v44  ;;  %v14067_v44 = vld [vmem:[#allocation14 + $0xd38] sm:$0xff]  }
 0x3de   : > { %12936 = vmatpush3.bf16.msra.mxu1 %v14020_v43  ;;  %v14066_v43 = vld [vmem:[#allocation14 + $0xdf8] sm:$0xff]  }
 0x3df   : > { %12937 = vmatprep.subr.bf16.mxu1 %v14022_v46  ;;  %v14068_v46 = vld [vmem:[#allocation14 + $0xdb8] sm:$0xff]  }
 0x3e0   : > { %12916 = vmatpush3.bf16.msra.mxu0 %v14023_v47  ;;  %v14069_v47 = vld [vmem:[#allocation14 + $0xd70] sm:$0xff]   ;;  %v14116_v39 = vld [vmem:[#allocation14 + $0xe98] sm:$0xff]  }
 0x3e1   : > { %12917 = vmatprep.subr.bf16.mxu0 %v14025_v48  ;;  %v14071_v48 = vld [vmem:[#allocation14 + $0xd30] sm:$0xff]  }
 0x3e2   : > { %12938 = vmatpush3.bf16.msra.mxu1 %v14024_v45  ;;  %v14070_v45 = vld [vmem:[#allocation14 + $0xdf0] sm:$0xff]  }
 0x3e3   : > { %12939 = vmatprep.subr.bf16.mxu1 %v14026_v49  ;;  %v14072_v49 = vld [vmem:[#allocation14 + $0xdb0] sm:$0xff]  }
 0x3e4   : > { %12918 = vmatpush3.bf16.msra.mxu0 %v14027_v50  ;;  %v14073_v50 = vld [vmem:[#allocation14 + $0xd68] sm:$0xff]  }
 0x3e5   : > { %12919 = vmatprep.subr.bf16.mxu0 %v14029_v51  ;;  %v14075_v51 = vld [vmem:[#allocation14 + $0xd28] sm:$0xff]  }
 0x3e6   : > { %12940 = vmatpush3.bf16.msra.mxu1 %v14028_v52  ;;  %v14074_v52 = vld [vmem:[#allocation14 + $0xde8] sm:$0xff]  }
 0x3e7   : > { %12941 = vmatprep.subr.bf16.mxu1 %v14030_v53  ;;  %v14076_v53 = vld [vmem:[#allocation14 + $0xda8] sm:$0xff]  }
 0x3e8   : > { %12920 = vmatpush3.bf16.msra.mxu0 %v14031_v54  ;;  %v14077_v54 = vld [vmem:[#allocation14 + $0xd60] sm:$0xff]  }
 0x3e9   : > { %12949 = vmatprep.subr.bf16.mxu0 %v14033_v2  ;;  %v14087_v2 = vld [vmem:[#allocation14 + $0xd10] sm:$0xff]  }
 0x3ea   : > { %12942 = vmatpush3.bf16.msra.mxu1 %v14032_v55  ;;  %v14078_v55 = vld [vmem:[#allocation14 + $0xde0] sm:$0xff]  }
 0x3eb   : > { %10270 = vmatmul.mubr.bf16.vlgmr.msra.gmra.mxu0 %v11349_v61  ;;  %12971 = vmatprep.subr.bf16.mxu1 %v14034_v4  ;;  %v14082_v61 = vld [vmem:[#allocation14 + $0xdd8] sm:$0xff]   ;;  %v14088_v4 = vld [vmem:[#allocation14 + $0xd90] sm:$0xff]  }
 0x3ec   : > { %12950 = vmatpush3.bf16.msra.mxu0 %v14035_v63  ;;  %10351 = vmatprep.mubr.bf16.mxu0 %v11354_v38  ;;  %v14089_v63 = vld [vmem:[#allocation14 + $0xd48] sm:$0xff]   ;;  %v14114_v38 = vld [vmem:[#allocation14 + $0xed8] sm:$0xff]  }
 0x3ed   : > { %10311 = vmatmul.mubr.bf16.vlgmr.msra.gmra.mxu1 %v11351_v0  ;;  %12951 = vmatprep.subr.bf16.mxu0 %v14037_v5  ;;  %v14085_v0 = vld [vmem:[#allocation14 + $0xd50] sm:$0xff]   ;;  %v14091_v5 = vld [vmem:[#allocation14 + $0xd08] sm:$0xff]  }
 0x3ee   : > { %12972 = vmatpush3.bf16.msra.mxu1 %v14036_v6  ;;  %10392 = vmatprep.mubr.bf16.mxu1 %v11356_v41  ;;  %v14090_v6 = vld [vmem:[#allocation14 + $0xdc8] sm:$0xff]   ;;  %v14118_v41 = vld [vmem:[#allocation14 + $0xed0] sm:$0xff]  }
 0x3ef   : > { %12973 = vmatprep.subr.bf16.mxu1 %v14038_v7  ;;  %v14092_v7 = vld [vmem:[#allocation14 + $0xd88] sm:$0xff]  }
 0x3f0   : > { %12952 = vmatpush3.bf16.msra.mxu0 %v14039_v8  ;;  %v14093_v8 = vld [vmem:[#allocation14 + $0xd40] sm:$0xff]  }
 0x3f1   : > { %12953 = vmatprep.subr.bf16.mxu0 %v14041_v10  ;;  %v14095_v10 = vld [vmem:[#allocation14 + $0xd00] sm:$0xff]  }
 0x3f2   : > { %12974 = vmatpush3.bf16.msra.mxu1 %v14040_v9  ;;  %v14094_v9 = vld [vmem:[#allocation14 + $0xdc0] sm:$0xff]  }
 0x3f3   : > { %12975 = vmatprep.subr.bf16.mxu1 %v14042_v11  ;;  %v14096_v11 = vld [vmem:[#allocation14 + $0xd80] sm:$0xff]  }
 0x3f4   : > { %12954 = vmatpush3.bf16.msra.mxu0 %v14043_v13  ;;  %v4881_v13 = vld [vmem:[%s14817_s16 + $0xd0] sm:$0xff] }
 0x3f5   : > { %12955 = vmatprep.subr.bf16.mxu0 %v14045_v15  ;;  %v4882_v15 = vld [vmem:[%s14817_s16 + $0xd8] sm:$0xff] }
 0x3f6   : > { %12976 = vmatpush3.bf16.msra.mxu1 %v14044_v14  ;;  %v4913_v14 = vld [vmem:[%s14817_s16 + $0x1d0] sm:$0xff] }
 0x3f7   : > { %12977 = vmatprep.subr.bf16.mxu1 %v14046_v16  ;;  %v4914_v16 = vld [vmem:[%s14817_s16 + $0x1d8] sm:$0xff] }
 0x3f8   : > { %12956 = vmatpush3.bf16.msra.mxu0 %v14047_v17  ;;  %v11357_v17 = vcombine.low %v4881_v13, %v4913_v14 }
 0x3f9   : > { %12957 = vmatprep.subr.bf16.mxu0 %v14049_v18  ;;  %v11359_v18 = vcombine.low %v4882_v15, %v4914_v16 }
 0x3fa   : > { %12978 = vmatpush3.bf16.msra.mxu1 %v14048_v19  ;;  %v11358_v19 = vcombine.high %v4881_v13, %v4913_v14  ;;  %v14143_v13 = vld [vmem:[#allocation14 + $0xf20] sm:$0xff]   ;;  %v15013_v14 = vpop.f32.mrf.mxu0 }
 0x3fb   : > { %12979 = vmatprep.subr.bf16.mxu1 %v14050_v57  ;;  %v11360_v57 = vcombine.high %v4882_v15, %v4914_v16  ;;  %v14144_v15 = vld [vmem:[#allocation14 + $0xfa0] sm:$0xff]   ;;  %v14145_v16 = vld [vmem:[#allocation14 + $0xf58] sm:$0xff]  }
 0x3fc   : > { %12958 = vmatpush3.bf16.msra.mxu0 %v14051_v21  ;;  %v14097_v21 = vld [vmem:[#allocation14 + $0xe78] sm:$0xff]  }
 0x3fd   : > { %12959 = vmatprep.subr.bf16.mxu0 %v14053_v23  ;;  %v14099_v23 = vld [vmem:[#allocation14 + $0xe38] sm:$0xff]  }
 0x3fe   : > { %12980 = vmatpush3.bf16.msra.mxu1 %v14052_v22  ;;  %v14098_v22 = vld [vmem:[#allocation14 + $0xef8] sm:$0xff]  }
 0x3ff   : > { %12981 = vmatprep.subr.bf16.mxu1 %v14054_v24  ;;  %v14100_v24 = vld [vmem:[#allocation14 + $0xeb8] sm:$0xff]  }
 0x400   : > { %12960 = vmatpush3.bf16.msra.mxu0 %v14055_v25  ;;  %v14101_v25 = vld [vmem:[#allocation14 + $0xe70] sm:$0xff]  }
 0x401   : > { %12961 = vmatprep.subr.bf16.mxu0 %v14057_v28  ;;  %v14103_v28 = vld [vmem:[#allocation14 + $0xe30] sm:$0xff]  }
 0x402   : > { %12982 = vmatpush3.bf16.msra.mxu1 %v14056_v26  ;;  %v14102_v26 = vld [vmem:[#allocation14 + $0xef0] sm:$0xff]  }
 0x403   : > { %12983 = vmatprep.subr.bf16.mxu1 %v14058_v3  ;;  %v14104_v3 = vld [vmem:[#allocation14 + $0xeb0] sm:$0xff]  }
 0x404   : > { %12962 = vmatpush3.bf16.msra.mxu0 %v14059_v29  ;;  %v14105_v29 = vld [vmem:[#allocation14 + $0xe68] sm:$0xff]  }
 0x405   : > { %12963 = vmatprep.subr.bf16.mxu0 %v14061_v30  ;;  %v14107_v30 = vld [vmem:[#allocation14 + $0xe28] sm:$0xff]  }
 0x406   : > { %12984 = vmatpush3.bf16.msra.mxu1 %v14060_v27  ;;  %v14106_v27 = vld [vmem:[#allocation14 + $0xee8] sm:$0xff]  }
 0x407   : > { %12985 = vmatprep.subr.bf16.mxu1 %v14062_v31  ;;  %v14108_v31 = vld [vmem:[#allocation14 + $0xea8] sm:$0xff]  }
 0x408   : > { %12964 = vmatpush3.bf16.msra.mxu0 %v14063_v32  ;;  %v14109_v32 = vld [vmem:[#allocation14 + $0xe60] sm:$0xff]  }
 0x409   : > { %12993 = vmatprep.subr.bf16.mxu0 %v14065_v42  ;;  %v14119_v42 = vld [vmem:[#allocation14 + $0xe10] sm:$0xff]  }
 0x40a   : > { %12986 = vmatpush3.bf16.msra.mxu1 %v14064_v34  ;;  %v14110_v34 = vld [vmem:[#allocation14 + $0xee0] sm:$0xff]  }
 0x40b   : > { %10352 = vmatmul.mubr.bf16.vlgmr.msra.gmra.mxu0 %v11353_v37  ;;  %13015 = vmatprep.subr.bf16.mxu1 %v14066_v43  ;;  %v14113_v37 = vld [vmem:[#allocation14 + $0xe58] sm:$0xff]   ;;  %v14120_v43 = vld [vmem:[#allocation14 + $0xe90] sm:$0xff]  }
 0x40c   : > { %12994 = vmatpush3.bf16.msra.mxu0 %v14067_v44  ;;  %10433 = vmatprep.mubr.bf16.mxu0 %v11358_v19  ;;  %v14121_v44 = vld [vmem:[#allocation14 + $0xe48] sm:$0xff]   ;;  %v15015_v19 = vpop.f32.mrf.mxu1 }
 0x40d   : > { %10393 = vmatmul.mubr.bf16.vlgmr.msra.gmra.mxu1 %v11355_v40  ;;  %12995 = vmatprep.subr.bf16.mxu0 %v14069_v47  ;;  %v14117_v40 = vld [vmem:[#allocation14 + $0xe50] sm:$0xff]   ;;  %v14123_v47 = vld [vmem:[#allocation14 + $0xe08] sm:$0xff]  }
 0x40e   : > { %13016 = vmatpush3.bf16.msra.mxu1 %v14068_v46  ;;  %10474 = vmatprep.mubr.bf16.mxu1 %v11360_v57  ;;  %v14122_v46 = vld [vmem:[#allocation14 + $0xec8] sm:$0xff]   ;;  %v15017_v57 = vpop.f32.mrf.mxu0 }
 0x40f   : > { %13017 = vmatprep.subr.bf16.mxu1 %v14070_v45  ;;  %v14124_v45 = vld [vmem:[#allocation14 + $0xe88] sm:$0xff]  }
 0x410   : > { %12996 = vmatpush3.bf16.msra.mxu0 %v14071_v48  ;;  %v14125_v48 = vld [vmem:[#allocation14 + $0xe40] sm:$0xff]  }
 0x411   : > { %12997 = vmatprep.subr.bf16.mxu0 %v14073_v50  ;;  %v14127_v50 = vld [vmem:[#allocation14 + $0xe00] sm:$0xff]  }
 0x412   : > { %13018 = vmatpush3.bf16.msra.mxu1 %v14072_v49  ;;  %v14126_v49 = vld [vmem:[#allocation14 + $0xec0] sm:$0xff]  }
 0x413   : > { %13019 = vmatprep.subr.bf16.mxu1 %v14074_v52  ;;  %v14128_v52 = vld [vmem:[#allocation14 + $0xe80] sm:$0xff]  }
 0x414   : > { %12998 = vmatpush3.bf16.msra.mxu0 %v14075_v51  ;;  %v4883_v51 = vld [vmem:[%s14817_s16 + $0xe0] sm:$0xff] }
 0x415   : > { %12999 = vmatprep.subr.bf16.mxu0 %v14077_v54  ;;  %v4884_v54 = vld [vmem:[%s14817_s16 + $0xe8] sm:$0xff] }
 0x416   : > { %13020 = vmatpush3.bf16.msra.mxu1 %v14076_v53  ;;  %v4915_v53 = vld [vmem:[%s14817_s16 + $0x1e0] sm:$0xff] }
 0x417   : > { %13021 = vmatprep.subr.bf16.mxu1 %v14078_v55  ;;  %v11361_v55 = vcombine.low %v4883_v51, %v4915_v53 }
 0x418   : > { %13000 = vmatpush3.bf16.msra.mxu0 %v14079_v58  ;;  %v11362_v58 = vcombine.high %v4883_v51, %v4915_v53 }
 0x419   : > { %13001 = vmatprep.subr.bf16.mxu0 %v14081_v56 }
 0x41a   : > { %13022 = vmatpush3.bf16.msra.mxu1 %v14080_v60  ;;  %v4916_v60 = vld [vmem:[%s14817_s16 + $0x1e8] sm:$0xff] }
 0x41b   : > { %13023 = vmatprep.subr.bf16.mxu1 %v14082_v61  ;;  %v11363_v56 = vcombine.low %v4884_v54, %v4916_v60  ;;  %v11364_v61 = vcombine.high %v4884_v54, %v4916_v60 }
 0x41c   : > { %13002 = vmatpush3.bf16.msra.mxu0 %v14083_v62  ;;  %v14129_v62 = vld [vmem:[#allocation14 + $0xf78] sm:$0xff]  }
 0x41d   : > { %13003 = vmatprep.subr.bf16.mxu0 %v14085_v0  ;;  %v14131_v0 = vld [vmem:[#allocation14 + $0xf38] sm:$0xff]  }
 0x41e   : > { %13024 = vmatpush3.bf16.msra.mxu1 %v14084_v59  ;;  %v14130_v59 = vld [vmem:[#allocation14 + $0xff8] sm:$0xff]  }
 0x41f   : > { %13025 = vmatprep.subr.bf16.mxu1 %v14086_v1  ;;  %v14132_v1 = vld [vmem:[#allocation14 + $0xfb8] sm:$0xff]  }
 0x420   : > { %13004 = vmatpush3.bf16.msra.mxu0 %v14087_v2  ;;  %v14133_v2 = vld [vmem:[#allocation14 + $0xf70] sm:$0xff]  }
 0x421   : > { %13005 = vmatprep.subr.bf16.mxu0 %v14089_v63  ;;  %v14135_v63 = vld [vmem:[#allocation14 + $0xf30] sm:$0xff]  }
 0x422   : > { %13026 = vmatpush3.bf16.msra.mxu1 %v14088_v4  ;;  %v14134_v4 = vld [vmem:[#allocation14 + $0xff0] sm:$0xff]  }
 0x423   : > { %13027 = vmatprep.subr.bf16.mxu1 %v14090_v6  ;;  %v14136_v6 = vld [vmem:[#allocation14 + $0xfb0] sm:$0xff]  }
 0x424   : > { %13006 = vmatpush3.bf16.msra.mxu0 %v14091_v5  ;;  %v14137_v5 = vld [vmem:[#allocation14 + $0xf68] sm:$0xff]  }
 0x425   : > { %13007 = vmatprep.subr.bf16.mxu0 %v14093_v8  ;;  %v14139_v8 = vld [vmem:[#allocation14 + $0xf28] sm:$0xff]  }
 0x426   : > { %13028 = vmatpush3.bf16.msra.mxu1 %v14092_v7  ;;  %v14138_v7 = vld [vmem:[#allocation14 + $0xfe8] sm:$0xff]  }
 0x427   : > { %13029 = vmatprep.subr.bf16.mxu1 %v14094_v9  ;;  %v14140_v9 = vld [vmem:[#allocation14 + $0xfa8] sm:$0xff]  }
 0x428   : > { %13008 = vmatpush3.bf16.msra.mxu0 %v14095_v10  ;;  %v14141_v10 = vld [vmem:[#allocation14 + $0xf60] sm:$0xff]  }
 0x429   : > { %13037 = vmatprep.subr.bf16.mxu0 %v14097_v21  ;;  %v14148_v21 = vld [vmem:[#allocation14 + $0xf98] sm:$0xff]  }
 0x42a   : > { %13030 = vmatpush3.bf16.msra.mxu1 %v14096_v11  ;;  %v14142_v11 = vld [vmem:[#allocation14 + $0xfe0] sm:$0xff]  }
 0x42b   : > { %10434 = vmatmul.mubr.bf16.vlgmr.msra.gmra.mxu0 %v11357_v17  ;;  %13059 = vmatprep.subr.bf16.mxu1 %v14098_v22  ;;  %v14146_v17 = vld [vmem:[#allocation14 + $0xfd8] sm:$0xff]   ;;  %v14149_v22 = vld [vmem:[#allocation14 + $0xf50] sm:$0xff]  }
 0x42c   : > { %13038 = vmatpush3.bf16.msra.mxu0 %v14099_v23  ;;  %10515 = vmatprep.mubr.bf16.mxu0 %v11362_v58  ;;  %v14150_v23 = vld [vmem:[#allocation14 + $0xfd0] sm:$0xff]  }
 0x42d   : > { %10475 = vmatmul.mubr.bf16.vlgmr.msra.gmra.mxu1 %v11359_v18  ;;  %13039 = vmatprep.subr.bf16.mxu0 %v14101_v25  ;;  %v14147_v18 = vld [vmem:[#allocation14 + $0xf18] sm:$0xff]   ;;  %v14151_v25 = vld [vmem:[#allocation14 + $0xf10] sm:$0xff]  }
 0x42e   : > { %13060 = vmatpush3.bf16.msra.mxu1 %v14100_v24  ;;  %10556 = vmatprep.mubr.bf16.mxu1 %v11364_v61  ;;  %v15019_v24 = vpop.f32.mrf.mxu1 }
 0x42f   : > { %13061 = vmatprep.subr.bf16.mxu1 %v14102_v26  ;;  %v15021_v26 = vpop.f32.mrf.mxu0 }
 0x430   : > { %13040 = vmatpush3.bf16.msra.mxu0 %v14103_v28  ;;  %v14152_v28 = vld [vmem:[#allocation14 + $0xf90] sm:$0xff]  }
 0x431   : > { %13041 = vmatprep.subr.bf16.mxu0 %v14105_v29  ;;  %v14154_v29 = vld [vmem:[#allocation14 + $0xfc8] sm:$0xff]  }
 0x432   : > { %13062 = vmatpush3.bf16.msra.mxu1 %v14104_v3  ;;  %v14153_v3 = vld [vmem:[#allocation14 + $0xf48] sm:$0xff]  }
 0x433   : > { %13063 = vmatprep.subr.bf16.mxu1 %v14106_v27  ;;  %v15023_v27 = vpop.f32.mrf.mxu1 }
 0x434   : > { %13042 = vmatpush3.bf16.msra.mxu0 %v14107_v30  ;;  %v14155_v30 = vld [vmem:[#allocation14 + $0xf08] sm:$0xff]  }
 0x435   : > { %13043 = vmatprep.subr.bf16.mxu0 %v14109_v32  ;;  %v14156_v32 = vld [vmem:[#allocation14 + $0xf88] sm:$0xff]  }
 0x436   : > { %13064 = vmatpush3.bf16.msra.mxu1 %v14108_v31  ;;  %v15025_v31 = vpop.f32.mrf.mxu0 }
 0x437   : > { %13065 = vmatprep.subr.bf16.mxu1 %v14110_v34  ;;  %v14157_v34 = vld [vmem:[#allocation14 + $0xf40] sm:$0xff]  }
 0x438   : > { %13044 = vmatpush3.bf16.msra.mxu0 %v14111_v33  ;;  %v15027_v33 = vpop.f32.mrf.mxu0 }
 0x439   : > { %13045 = vmatprep.subr.bf16.mxu0 %v14113_v37  ;;  %v15029_v37 = vpop.f32.mrf.mxu1 }
 0x43a   : > { %13066 = vmatpush3.bf16.msra.mxu1 %v14112_v35  ;;  %v14158_v35 = vld [vmem:[#allocation14 + $0xfc0] sm:$0xff]  }
 0x43b   : > { %13067 = vmatprep.subr.bf16.mxu1 %v14114_v38  ;;  %v14159_v38 = vld [vmem:[#allocation14 + $0xf00] sm:$0xff]  }
 0x43c   : > { %13046 = vmatpush3.bf16.msra.mxu0 %v14115_v36  ;;  %v14160_v36 = vld [vmem:[#allocation14 + $0xf80] sm:$0xff]  }
 0x43d   : > { %13047 = vmatprep.subr.bf16.mxu0 %v14117_v40  ;;  %v4917_v40 = vld [vmem:[%s14817_s16 + $0x1f0] sm:$0xff] }
 0x43e   : > { %13068 = vmatpush3.bf16.msra.mxu1 %v14116_v39  ;;  %v4885_v39 = vld [vmem:[%s14817_s16 + $0xf0] sm:$0xff] }
 0x43f   : > { %13069 = vmatprep.subr.bf16.mxu1 %v14118_v41  ;;  %v15033_v41 = vpop.f32.mrf.mxu1 }
 0x440   : > { %13048 = vmatpush3.bf16.msra.mxu0 %v14119_v42  ;;  %v11365_v42 = vcombine.low %v4885_v39, %v4917_v40 }
 0x441   : > { %13049 = vmatprep.subr.bf16.mxu0 %v14121_v44  ;;  %v4886_v44 = vld [vmem:[%s14817_s16 + $0xf8] sm:$0xff] }
 0x442   : > { %13070 = vmatpush3.bf16.msra.mxu1 %v14120_v43  ;;  %v11366_v43 = vcombine.high %v4885_v39, %v4917_v40 }
 0x443   : > { %13071 = vmatprep.subr.bf16.mxu1 %v14122_v46  ;;  %v4918_v46 = vld [vmem:[%s14817_s16 + $0x1f8] sm:$0xff] }
 0x444   : > { %13050 = vmatpush3.bf16.msra.mxu0 %v14123_v47  ;;  %v15037_v47 = vpop.f32.mrf.mxu0 }
 0x445   : > { %13051 = vmatprep.subr.bf16.mxu0 %v14125_v48  ;;  %v11368_v48 = vcombine.high %v4886_v44, %v4918_v46 }
 0x446   : > { %13072 = vmatpush3.bf16.msra.mxu1 %v14124_v45  ;;  %v11367_v45 = vcombine.low %v4886_v44, %v4918_v46 }
 0x447   : > { %13073 = vmatprep.subr.bf16.mxu1 %v14126_v49  ;;  %v15039_v49 = vpop.f32.mrf.mxu1 }
 0x448   : > { %13052 = vmatpush3.bf16.msra.mxu0 %v14127_v50  ;;  %v15041_v50 = vpop.f32.mrf.mxu0 }
 0x449   : > { %13081 = vmatprep.subr.bf16.mxu0 %v14129_v62 }
 0x44a   : > { %13074 = vmatpush3.bf16.msra.mxu1 %v14128_v52  ;;  %v15043_v52 = vpop.f32.mrf.mxu1  ;;  %v15045_v51 = vpop.f32.mrf.mxu0 }
 0x44b   : > { %10516 = vmatmul.mubr.bf16.vlgmr.msra.gmra.mxu0 %v11361_v55  ;;  %13103 = vmatprep.subr.bf16.mxu1 %v14130_v59 }
 0x44c   : > { %13082 = vmatpush3.bf16.msra.mxu0 %v14131_v0  ;;  %10597 = vmatprep.mubr.bf16.mxu0 %v11366_v43  ;;  %v15047_v53 = vpop.f32.mrf.mxu0  ;;  %v15049_v54 = vpop.f32.mrf.mxu1 }
 0x44d   : > { %10557 = vmatmul.mubr.bf16.vlgmr.msra.gmra.mxu1 %v11363_v56  ;;  %13083 = vmatprep.subr.bf16.mxu0 %v14133_v2 }
 0x44e   : > { %13104 = vmatpush3.bf16.msra.mxu1 %v14132_v1  ;;  %10638 = vmatprep.mubr.bf16.mxu1 %v11368_v48  ;;  %v15051_v55 = vpop.f32.mrf.mxu1  ;;  %v15053_v58 = vpop.f32.mrf.mxu0 }
 0x44f   : > { %13105 = vmatprep.subr.bf16.mxu1 %v14134_v4 }
 0x450   : > { %13084 = vmatpush3.bf16.msra.mxu0 %v14135_v63  ;;  %v15055_v60 = vpop.f32.mrf.mxu1  ;;  %v15057_v56 = vpop.f32.mrf.mxu0 }
 0x451   : > { %13085 = vmatprep.subr.bf16.mxu0 %v14137_v5 }
 0x452   : > { %13106 = vmatpush3.bf16.msra.mxu1 %v14136_v6  ;;  %v15059_v61 = vpop.f32.mrf.mxu1  ;;  %v15061_v62 = vpop.f32.mrf.mxu0 }
 0x453   : > { %13107 = vmatprep.subr.bf16.mxu1 %v14138_v7 }
 0x454   : > { %13086 = vmatpush3.bf16.msra.mxu0 %v14139_v8  ;;  %v15063_v59 = vpop.f32.mrf.mxu0  ;;  %v15065_v0 = vpop.f32.mrf.mxu1 }
 0x455   : > { %13087 = vmatprep.subr.bf16.mxu0 %v14141_v10 }
 0x456   : > { %13108 = vmatpush3.bf16.msra.mxu1 %v14140_v9  ;;  %v15067_v1 = vpop.f32.mrf.mxu1  ;;  %v15069_v2 = vpop.f32.mrf.mxu0 }
 0x457   : > { %13109 = vmatprep.subr.bf16.mxu1 %v14142_v11 }
 0x458   : > { %13088 = vmatpush3.bf16.msra.mxu0 %v14143_v13  ;;  %v15071_v4 = vpop.f32.mrf.mxu1  ;;  %v15073_v63 = vpop.f32.mrf.mxu0 }
 0x459   : > { %13089 = vmatprep.subr.bf16.mxu0 %v14145_v16 }
 0x45a   : > { %13110 = vmatpush3.bf16.msra.mxu1 %v14144_v15  ;;  %v15075_v6 = vpop.f32.mrf.mxu1  ;;  %v15077_v5 = vpop.f32.mrf.mxu0 }
 0x45b   : > { %13111 = vmatprep.subr.bf16.mxu1 %v14146_v17 }
 0x45c   : > { %13090 = vmatpush3.bf16.msra.mxu0 %v14147_v18  ;;  %v15079_v7 = vpop.f32.mrf.mxu0  ;;  %v15081_v8 = vpop.f32.mrf.mxu1 }
 0x45d   : > { %13091 = vmatprep.subr.bf16.mxu0 %v14149_v22 }
 0x45e   : > { %13112 = vmatpush3.bf16.msra.mxu1 %v14148_v21  ;;  %v15083_v9 = vpop.f32.mrf.mxu1  ;;  %v15085_v10 = vpop.f32.mrf.mxu0 }
 0x45f   : > { %13113 = vmatprep.subr.bf16.mxu1 %v14150_v23 }
 0x460   : > { %13092 = vmatpush3.bf16.msra.mxu0 %v14151_v25  ;;  %v15087_v11 = vpop.f32.mrf.mxu1  ;;  %v15089_v13 = vpop.f32.mrf.mxu0 }
 0x461   : > { %13093 = vmatprep.subr.bf16.mxu0 %v14153_v3 }
 0x462   : > { %13114 = vmatpush3.bf16.msra.mxu1 %v14152_v28  ;;  %v15091_v15 = vpop.f32.mrf.mxu1  ;;  %v15093_v16 = vpop.f32.mrf.mxu0 }
 0x463   : > { %13115 = vmatprep.subr.bf16.mxu1 %v14154_v29 }
 0x464   : > { %13094 = vmatpush3.bf16.msra.mxu0 %v14155_v30  ;;  %v15095_v17 = vpop.f32.mrf.mxu0  ;;  %v15097_v18 = vpop.f32.mrf.mxu1 }
 0x465   : > { %13095 = vmatprep.subr.bf16.mxu0 %v14157_v34 }
 0x466   : > { %13116 = vmatpush3.bf16.msra.mxu1 %v14156_v32  ;;  %v15099_v21 = vpop.f32.mrf.mxu1  ;;  %v15101_v22 = vpop.f32.mrf.mxu0 }
 0x467   : > { %13117 = vmatprep.subr.bf16.mxu1 %v14158_v35 }
 0x468   : > { %13096 = vmatpush3.bf16.msra.mxu0 %v14159_v38  ;;  %v15103_v23 = vpop.f32.mrf.mxu1  ;;  %v15105_v25 = vpop.f32.mrf.mxu0 }
 0x46a   : > { %13118 = vmatpush3.bf16.msra.mxu1 %v14160_v36  ;;  %v15107_v28 = vpop.f32.mrf.mxu1  ;;  %v15109_v3 = vpop.f32.mrf.mxu0 }
 0x46b   : > { %10598 = vmatmul.mubr.bf16.vlgmr.msra.gmra.mxu0 %v11365_v42 }
 0x46c   : > { %v15111_v29 = vpop.f32.mrf.mxu0  ;;  %v15113_v30 = vpop.f32.mrf.mxu1 }
 0x46d   : > { %10639 = vmatmul.mubr.bf16.vlgmr.msra.gmra.mxu1 %v11367_v45 }
 0x46e   : > { %v15115_v32 = vpop.f32.mrf.mxu1  ;;  %v15117_v34 = vpop.f32.mrf.mxu0 }
 0x470   : > { %v15119_v35 = vpop.f32.mrf.mxu1  ;;  %v15121_v38 = vpop.f32.mrf.mxu0 }
 0x472   : > { %v15123_v36 = vpop.f32.mrf.mxu1  ;;  %v15125_v39 = vpop.f32.mrf.mxu0 }
 0x473   : > { %15398 = vst [vmem:[#allocation29_spill] sm:$0xff] %v15123_v36  ;;  %15399 = vst [vmem:[#allocation30_spill] sm:$0xff] %v15125_v39 }
 0x474   : > { %v15127_v40 = vpop.f32.mrf.mxu0  ;;  %v15129_v42 = vpop.f32.mrf.mxu1 }
 0x475   : > { %15400 = vst [vmem:[#allocation31_spill] sm:$0xff] %v15127_v40  ;;  %15401 = vst [vmem:[#allocation32_spill] sm:$0xff] %v15129_v42 }
 0x476   : > { %v15131_v43 = vpop.f32.mrf.mxu1  ;;  %v15133_v44 = vpop.f32.mrf.mxu0 }
 0x477   : > { %15402 = vst [vmem:[#allocation33_spill] sm:$0xff] %v15131_v43  ;;  %15403 = vst [vmem:[#allocation34_spill] sm:$0xff] %v15133_v44 }
 0x478   : > { %v15135_v46 = vpop.f32.mrf.mxu1  ;;  %v15137_v45 = vpop.f32.mrf.mxu0 }
 0x479   : > { %15404 = vst [vmem:[#allocation35_spill] sm:$0xff] %v15135_v46  ;;  %15405 = vst [vmem:[#allocation36_spill] sm:$0xff] %v15137_v45 }
 0x47a   : > { %v15139_v48 = vpop.f32.mrf.mxu1  ;;  %v15141_v20 = vpop.f32.mrf.mxu0 }
 0x47b   : > { %15406 = vst [vmem:[#allocation37_spill] sm:$0xff] %v15139_v48  ;;  %v12439_v48 = vadd.f32 %v15017_v57, %v15013_v14  ;;  %v12486_v57 = vadd.f32 %v15045_v51, %v15041_v50  ;;  %v12530_v50 = vadd.f32 %v15061_v62, %v15057_v56  ;;  %v12574_v56 = vadd.f32 %v15077_v5, %v15073_v63 }
 0x47c   : > { %v15143_v12 = vpop.f32.mrf.mxu0  ;;  %v15145_v36 = vpop.f32.mrf.mxu1 }
 0x47d   : > { %15407 = vst [vmem:[#allocation38_spill] sm:$0xff] %v15143_v12  ;;  %15408 = vst [vmem:[#allocation39_spill] sm:$0xff] %v15145_v36  ;;  %v12461_v36 = vadd.f32 %v15019_v24, %v15015_v19  ;;  %v12505_v19 = vadd.f32 %v15039_v49, %v15033_v41  ;;  %v12549_v49 = vadd.f32 %v15055_v60, %v15051_v55 }
 0x47e   : > { %v15147_v39 = vpop.f32.mrf.mxu1  ;;  %v15149_v40 = vpop.f32.mrf.mxu0  ;;  %v12593_v60 = vadd.f32 %v15071_v4, %v15067_v1  ;;  %v12637_v1 = vadd.f32 %v15087_v11, %v15083_v9  ;;  %v12618_v4 = vadd.f32 %v15093_v16, %v15089_v13  ;;  %v12681_v11 = vadd.f32 %v15103_v23, %v15099_v21  ;;  %v15415_v23 = vld [vmem:[#allocation30_spill] sm:$0xff] }
 0x47f   : > { %15409 = vst [vmem:[#allocation40_spill] sm:$0xff] %v15147_v39  ;;  %v12483_v39 = vadd.f32 %v15037_v47, %v15027_v33  ;;  %v12662_v13 = vadd.f32 %v15109_v3, %v15105_v25  ;;  %v12725_v21 = vadd.f32 %v15119_v35, %v15115_v32  ;;  %v12706_v25 = vadd.f32 %v15415_v23, %v15121_v38 }
 0x480   : > { %v15151_v42 = vpop.f32.mrf.mxu1  ;;  %v15153_v43 = vpop.f32.mrf.mxu0  ;;  %v15422_v32 = vld [vmem:[#allocation36_spill] sm:$0xff] }
 0x481   : > { %15410 = vst [vmem:[#allocation41_spill] sm:$0xff] %v15151_v42  ;;  %15411 = vst [vmem:[#allocation42_spill] sm:$0xff] %v15153_v43  ;;  %v12750_v35 = vadd.f32 %v15141_v20, %v15422_v32 }
 0x482   : > { %v15155_v44 = vpop.f32.mrf.mxu1  ;;  %v15157_v46 = vpop.f32.mrf.mxu0 }
 0x483   : > { %15412 = vst [vmem:[#allocation43_spill] sm:$0xff] %v15155_v44  ;;  %15413 = vst [vmem:[#allocation44_spill] sm:$0xff] %v15157_v46  ;;  %v9411_v44 = vadd.f32 %v12461_v36, %v12439_v48  ;;  %v12442_v46 = vadd.f32 %v15025_v31, %v15021_v26  ;;  %v12527_v36 = vadd.f32 %v15053_v58, %v15047_v53 }
 0x484   : > { %v15159_v45 = vpop.f32.mrf.mxu0  ;;  %v15165_v12 = vpop.f32.mrf.mxu1  ;;  %v12571_v53 = vadd.f32 %v15069_v2, %v15063_v59  ;;  %v12615_v59 = vadd.f32 %v15085_v10, %v15079_v7  ;;  %v12659_v10 = vadd.f32 %v15101_v22, %v15095_v17  ;;  %v12703_v22 = vadd.f32 %v15117_v34, %v15111_v29 }
 0x485   : > { %15414 = vst [vmem:[#allocation45_spill] sm:$0xff] %v15159_v45  ;;  %v12464_v45 = vadd.f32 %v15029_v37, %v15023_v27  ;;  %v9452_v14 = vadd.f32 %v12483_v39, %v9411_v44  ;;  %v12508_v37 = vadd.f32 %v15049_v54, %v15043_v52  ;;  %v12552_v54 = vadd.f32 %v15065_v0, %v15059_v61 }
 0x486   : > { %v15169_v42 = vpop.f32.mrf.mxu1  ;;  %v15171_v43 = vpop.f32.mrf.mxu0  ;;  %v12596_v61 = vadd.f32 %v15081_v8, %v15075_v6  ;;  %v12640_v8 = vadd.f32 %v15097_v18, %v15091_v15  ;;  %v12684_v15 = vadd.f32 %v15113_v30, %v15107_v28  ;;  %v15420_v30 = vld [vmem:[#allocation33_spill] sm:$0xff] }
 0x487   : > { %v9414_v47 = vadd.f32 %v12464_v45, %v12442_v46  ;;  %v9493_v48 = vadd.f32 %v12505_v19, %v9452_v14 }
 0x488   : > { %v15181_v24 = vpop.f32.mrf.mxu1  ;;  %v15183_v33 = vpop.f32.mrf.mxu0 }
 0x489   : > { %v9455_v26 = vadd.f32 %v12486_v57, %v9414_v47  ;;  %v9534_v41 = vadd.f32 %v12527_v36, %v9493_v48 }
 0x48a   : > { %v15187_v31 = vpop.f32.mrf.mxu1  ;;  %v15189_v27 = vpop.f32.mrf.mxu0 }
 0x48b   : > { %v9496_v39 = vadd.f32 %v12508_v37, %v9455_v26  ;;  %v9575_v44 = vadd.f32 %v12549_v49, %v9534_v41 }
 0x48c   : > { %v15197_v51 = vpop.f32.mrf.mxu0  ;;  %v15201_v58 = vpop.f32.mrf.mxu1 }
 0x48d   : > { %v9537_v46 = vadd.f32 %v12530_v50, %v9496_v39  ;;  %v9616_v55 = vadd.f32 %v12571_v53, %v9575_v44  ;;  %v15416_v39 = vld [vmem:[#allocation31_spill] sm:$0xff]  ;;  %v15417_v53 = vld [vmem:[#allocation34_spill] sm:$0xff] }
 0x48e   : > { %v15203_v45 = vpop.f32.mrf.mxu1  ;;  %v15205_v52 = vpop.f32.mrf.mxu0  ;;  %v12747_v44 = vadd.f32 %v15417_v53, %v15416_v39  ;;  %v15431_v53 = vld [vmem:[#allocation43_spill] sm:$0xff] }
 0x48f   : > { %v9578_v62 = vadd.f32 %v12552_v54, %v9537_v46  ;;  %v9657_v19 = vadd.f32 %v12593_v60, %v9616_v55  ;;  %v15418_v60 = vld [vmem:[#allocation29_spill] sm:$0xff] }
 0x490   : > { %v15215_v2 = vpop.f32.mrf.mxu1  ;;  %v15217_v14 = vpop.f32.mrf.mxu0 }
 0x491   : > { %v9619_v57 = vadd.f32 %v12574_v56, %v9578_v62  ;;  %v9698_v0 = vadd.f32 %v12615_v59, %v9657_v19  ;;  %v15419_v56 = vld [vmem:[#allocation32_spill] sm:$0xff]  ;;  %v15421_v59 = vld [vmem:[#allocation35_spill] sm:$0xff] }
 0x492   : > { %v15225_v63 = vpop.f32.mrf.mxu1  ;;  %v15227_v5 = vpop.f32.mrf.mxu0  ;;  %v12728_v62 = vadd.f32 %v15419_v56, %v15418_v60  ;;  %v12769_v19 = vadd.f32 %v15421_v59, %v15420_v30  ;;  %v12838_v60 = vadd.f32 %v15189_v27, %v15183_v33 }
 0x493   : > { %v9660_v7 = vadd.f32 %v12596_v61, %v9619_v57  ;;  %v9739_v36 = vadd.f32 %v12637_v1, %v9698_v0  ;;  %v15423_v61 = vld [vmem:[#allocation38_spill] sm:$0xff] }
 0x494   : > { %v15233_v6 = vpop.f32.mrf.mxu1  ;;  %v12791_v0 = vadd.f32 %v15149_v40, %v15423_v61 }
 0x495   : > { %v9701_v48 = vadd.f32 %v12618_v4, %v9660_v7  ;;  %v9780_v9 = vadd.f32 %v12659_v10, %v9739_v36  ;;  %v15424_v36 = vld [vmem:[#allocation37_spill] sm:$0xff] }
 0x497   : > { %v9742_v17 = vadd.f32 %v12640_v8, %v9701_v48  ;;  %v9821_v37 = vadd.f32 %v12681_v11, %v9780_v9  ;;  %v15425_v48 = vld [vmem:[#allocation39_spill] sm:$0xff]  ;;  %v15426_v11 = vld [vmem:[#allocation40_spill] sm:$0xff] }
 0x498   : > { %v12772_v8 = vadd.f32 %v15425_v48, %v15424_v36 }
 0x499   : > { %v9783_v41 = vadd.f32 %v12662_v13, %v9742_v17  ;;  %v9862_v18 = vadd.f32 %v12703_v22, %v9821_v37  ;;  %v15427_v13 = vld [vmem:[#allocation41_spill] sm:$0xff]  ;;  %v15428_v22 = vld [vmem:[#allocation42_spill] sm:$0xff]  ;;  %v15429_v37 = vld [vmem:[#allocation44_spill] sm:$0xff] }
 0x49a   : > { %v12813_v17 = vadd.f32 %v15427_v13, %v15426_v11 }
 0x49b   : > { %v9824_v3 = vadd.f32 %v12684_v15, %v9783_v41  ;;  %v9903_v34 = vadd.f32 %v12725_v21, %v9862_v18  ;;  %v12794_v41 = vadd.f32 %v15429_v37, %v15428_v22  ;;  %v15430_v21 = vld [vmem:[#allocation45_spill] sm:$0xff] }
 0x49c   : > { %v12835_v40 = vadd.f32 %v15171_v43, %v15430_v21 }
 0x49d   : > { %v9865_v54 = vadd.f32 %v12706_v25, %v9824_v3  ;;  %v9944_v28 = vadd.f32 %v12747_v44, %v9903_v34  ;;  %v12816_v44 = vadd.f32 %v15165_v12, %v15431_v53  ;;  %v12860_v12 = vadd.f32 %v15201_v58, %v15187_v31 }
 0x49f   : > { %v9906_v57 = vadd.f32 %v12728_v62, %v9865_v54  ;;  %v9985_v7 = vadd.f32 %v12769_v19, %v9944_v28  ;;  %v12857_v54 = vadd.f32 %v15181_v24, %v15169_v42  ;;  %v12879_v28 = vadd.f32 %v15205_v52, %v15197_v51 }
 0x4a0   : > { %v12901_v42 = vadd.f32 %v15215_v2, %v15203_v45  ;;  %v12882_v24 = vadd.f32 %v15227_v5, %v15217_v14 }
 0x4a1   : > { %v9947_v10 = vadd.f32 %v12750_v35, %v9906_v57  ;;  %v10026_v9 = vadd.f32 %v12791_v0, %v9985_v7  ;;  %v12904_v0 = vadd.f32 %v15233_v6, %v15225_v63 }
 0x4a3   : > { %v9988_v18 = vadd.f32 %v12772_v8, %v9947_v10  ;;  %v10067_v23 = vadd.f32 %v12813_v17, %v10026_v9 }
 0x4a5   : > { %v10029_v25 = vadd.f32 %v12794_v41, %v9988_v18  ;;  %v10108_v34 = vadd.f32 %v12835_v40, %v10067_v23 }
 0x4a7   : > { %v10070_v62 = vadd.f32 %v12816_v44, %v10029_v25  ;;  %v10149_v30 = vadd.f32 %v12857_v54, %v10108_v34 }
 0x4a9   : > { %v10111_v59 = vadd.f32 %v12838_v60, %v10070_v62  ;;  %v10190_v35 = vadd.f32 %v12879_v28, %v10149_v30 }
 0x4ab   : > { %v15231_v47 = vpop.f32.mrf.mxu0  ;;  %v10152_v33 = vadd.f32 %v12860_v12, %v10111_v59  ;;  %v10231_v52 = vadd.f32 %v12901_v42, %v10190_v35 }
 0x4ad   : > { %v15241_v16 = vpop.f32.mrf.mxu1  ;;  %v12922_v26 = vpop.f32.mrf.mxu0  ;;  %v10193_v61 = vadd.f32 %v12882_v24, %v10152_v33  ;;  %v15432_v24 = vld [vmem:[#allocation27_spill] sm:$0xff] }
 0x4ae   : > { %v12923_v27 = vadd.f32 %v12922_v26, %v15231_v47 }
 0x4af   : > { %v12944_v49 = vpop.f32.mrf.mxu1  ;;  %v12924_v50 = vpop.f32.mrf.mxu0  ;;  %v10234_v45 = vadd.f32 %v12904_v0, %v10193_v61 }
 0x4b0   : > { %v10272_v7 = vadd.f32 %v12923_v27, %v10231_v52  ;;  %v12945_v31 = vadd.f32 %v12944_v49, %v15241_v16  ;;  %v15433_v52 = vld [vmem:[#allocation28_spill] sm:$0xff] }
 0x4b1   : > { %v12946_v46 = vpop.f32.mrf.mxu1  ;;  %v12925_v29 = vpop.f32.mrf.mxu0 }
 0x4b2   : > { %v12926_v58 = vadd.f32 %v12925_v29, %v12924_v50  ;;  %v10313_v14 = vadd.f32 %v12945_v31, %v10272_v7 }
 0x4b3   : > { %v12947_v38 = vpop.f32.mrf.mxu1 }
 0x4b4   : > { %v10275_v5 = vadd.f32 %v12926_v58, %v10234_v45  ;;  %v12948_v47 = vadd.f32 %v12947_v38, %v12946_v46 }
 0x4b6   : > { %v10316_v22 = vadd.f32 %v12948_v47, %v10275_v5 }
 0x4cb   : > { %v12965_v55 = vpop.f32.mrf.mxu0 }
 0x4cd   : > { %v12987_v1 = vpop.f32.mrf.mxu1  ;;  %v12966_v4 = vpop.f32.mrf.mxu0 }
 0x4ce   : > { %v12967_v2 = vadd.f32 %v12966_v4, %v12965_v55 }
 0x4cf   : > { %v12988_v20 = vpop.f32.mrf.mxu1  ;;  %v12968_v15 = vpop.f32.mrf.mxu0 }
 0x4d0   : > { %v10354_v26 = vadd.f32 %v12967_v2, %v10313_v14  ;;  %v12989_v9 = vadd.f32 %v12988_v20, %v12987_v1 }
 0x4d1   : > { %v12990_v3 = vpop.f32.mrf.mxu1  ;;  %v12969_v39 = vpop.f32.mrf.mxu0 }
 0x4d2   : > { %v12970_v11 = vadd.f32 %v12969_v39, %v12968_v15  ;;  %v10395_v6 = vadd.f32 %v12989_v9, %v10354_v26 }
 0x4d3   : > { %v12991_v43 = vpop.f32.mrf.mxu1 }
 0x4d4   : > { %v10357_v37 = vadd.f32 %v12970_v11, %v10316_v22  ;;  %v12992_v50 = vadd.f32 %v12991_v43, %v12990_v3 }
 0x4d6   : > { %v10398_v4 = vadd.f32 %v12992_v50, %v10357_v37 }
 0x4eb   : > { %v13009_v56 = vpop.f32.mrf.mxu0 }
 0x4ed   : > { %v13031_v19 = vpop.f32.mrf.mxu1  ;;  %v13010_v32 = vpop.f32.mrf.mxu0 }
 0x4ee   : > { %v13011_v63 = vadd.f32 %v13010_v32, %v13009_v56 }
 0x4ef   : > { %v13032_v57 = vpop.f32.mrf.mxu1  ;;  %v13012_v51 = vpop.f32.mrf.mxu0 }
 0x4f0   : > { %v10436_v29 = vadd.f32 %v13011_v63, %v10395_v6  ;;  %v13033_v41 = vadd.f32 %v13032_v57, %v13031_v19 }
 0x4f1   : > { %v13034_v10 = vpop.f32.mrf.mxu1  ;;  %v13013_v36 = vpop.f32.mrf.mxu0 }
 0x4f2   : > { %v13014_v55 = vadd.f32 %v13013_v36, %v13012_v51  ;;  %v10477_v46 = vadd.f32 %v13033_v41, %v10436_v29 }
 0x4f3   : > { %v13035_v8 = vpop.f32.mrf.mxu1 }
 0x4f4   : > { %v10439_v38 = vadd.f32 %v13014_v55, %v10398_v4  ;;  %v13036_v1 = vadd.f32 %v13035_v8, %v13034_v10 }
 0x4f6   : > { %v10480_v53 = vadd.f32 %v13036_v1, %v10439_v38 }
 0x50b   : > { %v13053_v48 = vpop.f32.mrf.mxu0 }
 0x50d   : > { %v13075_v13 = vpop.f32.mrf.mxu1  ;;  %v13054_v17 = vpop.f32.mrf.mxu0 }
 0x50e   : > { %v13055_v18 = vadd.f32 %v13054_v17, %v13053_v48 }
 0x50f   : > { %v13076_v16 = vpop.f32.mrf.mxu1  ;;  %v13056_v49 = vpop.f32.mrf.mxu0 }
 0x510   : > { %v10518_v20 = vadd.f32 %v13055_v18, %v10477_v46  ;;  %v13077_v15 = vadd.f32 %v13076_v16, %v13075_v13 }
 0x511   : > { %v13078_v21 = vpop.f32.mrf.mxu1  ;;  %v13057_v40 = vpop.f32.mrf.mxu0 }
 0x512   : > { %v13058_v23 = vadd.f32 %v13057_v40, %v13056_v49  ;;  %v10559_v3 = vadd.f32 %v13077_v15, %v10518_v20 }
 0x513   : > { %v13079_v25 = vpop.f32.mrf.mxu1 }
 0x514   : > { %v10521_v54 = vadd.f32 %v13058_v23, %v10480_v53  ;;  %v13080_v28 = vadd.f32 %v13079_v25, %v13078_v21 }
 0x516   : > { %v10562_v32 = vadd.f32 %v13080_v28, %v10521_v54 }
 0x52b   : > { %v13097_v39 = vpop.f32.mrf.mxu0 }
 0x52d   : > { %v13119_v44 = vpop.f32.mrf.mxu1  ;;  %v13098_v34 = vpop.f32.mrf.mxu0 }
 0x52e   : > { %v13099_v60 = vadd.f32 %v13098_v34, %v13097_v39 }
 0x52f   : > { %v13120_v56 = vpop.f32.mrf.mxu1  ;;  %v13100_v62 = vpop.f32.mrf.mxu0 }
 0x530   : > { %v10600_v43 = vadd.f32 %v13099_v60, %v10559_v3  ;;  %v13121_v30 = vadd.f32 %v13120_v56, %v13119_v44 }
 0x531   : > { %v13122_v59 = vpop.f32.mrf.mxu1  ;;  %v13101_v19 = vpop.f32.mrf.mxu0 }
 0x532   : > { %v10641_v12 = vadd.f32 %v13121_v30, %v10600_v43  ;;  %v13102_v35 = vadd.f32 %v13101_v19, %v13100_v62 }
 0x533   : > { %v13123_v42 = vpop.f32.mrf.mxu1 }
 0x534   : > { %v10647_v33 = vadd.f32 %v10641_v12, %v15432_v24  ;;  %v10603_v27 = vadd.f32 %v13102_v35, %v10562_v32  ;;  %v13124_v57 = vadd.f32 %v13123_v42, %v13122_v59 }
 0x536   : > { %10649 = vst [vmem:[%s502_s15] sm:$0xff] %v10647_v33  ;;  %v10644_v51 = vadd.f32 %v13124_v57, %v10603_v27 }
 0x538   : > { %v10648_v61 = vadd.f32 %v10644_v51, %v15433_v52 }
 0x53a   : > { %10650 = vst [vmem:[%s502_s15 + $0x8] sm:$0xff] %v10648_v61 }
 0x53b   : > { %14390 = shalt.err (!%p14387_p13)
}
 0x53c   : > { %s14391_s24 = scalar_lea.hbm %s15295_s5, 256  ;;  %s14395_s25 = scalar_lea.hbm %s15346_s8, 1024 }
 0x53d   : > { %p14392_p9 = scmp.ne.s32.totalorder %s15295_s5, %s14391_s24  ;;  %p14396_p8 = scmp.lt.s32.totalorder %s15295_s5, %s15346_s8 }
 0x53e   : > { %p14397_p10 = scmp.lt.s32.totalorder %s14395_s25, %s14391_s24 }
 0x53f   : > { %p14393_p1 = pnand %p14392_p9, %p15434_p3 }
 0x540   : > { %p14398_p11 = por %p14397_p10, %p14396_p8 }
 0x541   : > { %p14394_p4 = pneg %p14393_p1 }
 0x543   : > { %p14399_p0 = pnand %p14398_p11, %p14394_p4 }
 0x545   : > { %14402 = shalt.err (!%p14399_p0)
}
 0x546   : > { %s14481_s29 = smov 128   ;;  %s14482_s16 = smov 8  }
 0x547   : > { %13152 = dma.vmem_to_hbm [thread:$0]  (%p15434_p3), %s15290_s20, 256, %s15295_s5, %s10652_s4, %s14481_s29, %s14481_s29, %s14482_s16  }
 0x548 PF: > { %p13193_p6 = scmp.ge.s32.totalorder %s14461_s30, 2  ;;  %s10680_s11 = sand.u32 1, %s14449_s27  }
 0x549   : > { %p15435_p5 = scmp.ne.s32.totalorder %s15369_s12, 0  ;;  %s10681_s15 = scalar_lea.sflag [#allocation4], %s10680_s11 }
 0x54b   : > { %p13181_p7 = pnand %p13193_p6, %p15435_p5 }
 0x54d   : > { %p13182_p2 = pneg %p13181_p7 }
 0x54f   : > { %14444 = dma.done.wait (%p13182_p2), %s10681_s15, 256  }
 0x550   : > { %14446 = vsyncadd (%p13182_p2), %s10681_s15, 4294967040  ;;  %s15436_s30 = sld [smem:[#allocation25_spill]]  ;;  %s15439_s27 = smov %s14453_s28 }
 0x551   : > { %s15437_s21 = sld [smem:[#allocation24_spill]] }
 0x552   : > { %s15438_s29 = sld [smem:[#allocation26_spill]] }
 0x556   : > { %p29_p12 = scmp.ge.s32.totalorder %s15436_s30, 6  }
 0x557   : > { %s15440_s28 = smov %s15437_s21 }
 0x558   :  { %31 = sbr.rel (!%p29_p12) target bundleno = 16 (0x10), region = 150 }
 0x55d   :  { %10686 = vsyncpa [#allocation3], 1 }
 0x55e   :  { %10688 = vsyncpa [#allocation3 + $0x1], 1 }
 0x55f   :  { %10689 = vsyncpa [#allocation6], 1 }
 0x560   :  { %10691 = vsyncpa [#allocation6 + $0x1], 1 }
 0x561   :  { %10692 = vsyncpa [#allocation9], 1 }
 0x562   :  { %10694 = vsyncpa [#allocation9 + $0x1], 1 }
 0x563   :  { %10695 = vsyncpa [#allocation12], 1 }
 0x564   :  { %10696 = vsyncpa [#allocation15], 1 }
 0x565   :  { %10697 = vsyncpa [#allocation4], 1 }
 0x566   :  { %10699 = vsyncpa [#allocation4 + $0x1], 1 }

</bundles_post_ra>
